<compile_context>
chip_gen: v7x
topology: tpu7x:2x2x1
jax: 0.10.0
libtpu: 0.0.40
codegen_flags: <defaults>
</compile_context>

<pallas_src>
import functools

import jax
import jax.numpy as jnp
from jax.experimental import pallas as pl
from jax.experimental.pallas import tpu as pltpu

VMEM_LIMIT = 64 * 1024 * 1024

_LAYER_KEYS = ("wq", "bq", "wk", "bk", "wv", "bv", "wo", "bo",
               "w1", "b1", "w2", "b2", "g1", "be1", "g2", "be2")


# ----------------------------------------------------------------------------
# Small helpers
# ----------------------------------------------------------------------------
def _layer_norm(y, gamma, beta, eps=1e-5):
    mean = jnp.mean(y, axis=-1, keepdims=True)
    c = y - mean
    var = jnp.mean(c * c, axis=-1, keepdims=True)
    return c * jax.lax.rsqrt(var + eps) * gamma + beta


def _largest_divisor_tile(n, target):
    t = min(target, n)
    while n % t:
        t -= 1
    return t


def _row_tile_2d(n, target):
    # sublane dim of a 2-D block: must be a multiple of 8 or the full extent
    t = min(target, n)
    while t > 0:
        if n % t == 0 and (t % 8 == 0 or t == n):
            return t
        t -= 1
    return n


def _dff_tile(d_ff, target):
    # lane dim of the w1 block: multiple of 128 or the full extent
    if d_ff <= target:
        return d_ff
    t = (target // 128) * 128
    while t >= 128:
        if d_ff % t == 0:
            return t
        t -= 128
    return d_ff


# ----------------------------------------------------------------------------
# Pallas kernels
# ----------------------------------------------------------------------------
def encoder_layer_kernel(x_ref,
                         wq, bq, wk, bk, wv, bv, wo, bo,
                         w1, b1, w2, b2,
                         g1, be1, g2, be2,
                         o_ref, y_sc, acc_sc, *, n_head):
    """Post-norm encoder layer on a (R, S, D) row tile.

    Grid axis 0 = row tiles ("parallel"), axis 1 = d_ff tiles ("arbitrary").
    Attention + norm1 run once per row tile; the FFN is accumulated over the
    d_ff reduction axis in f32 scratch; norm2 + store happen on the last step.
    """
    k_step = pl.program_id(1)
    R, S, D = x_ref.shape
    RS = R * S
    dh = D // n_head
    scale = 1.0 / float(dh) ** 0.5

    @pl.when(k_step == 0)
    def _attn_and_norm1():
        x = x_ref[...].reshape(RS, D).astype(jnp.float32)
        xb = x.astype(jnp.bfloat16)
        q = jnp.dot(xb, wq[...], preferred_element_type=jnp.float32) + bq[...]
        k = jnp.dot(xb, wk[...], preferred_element_type=jnp.float32) + bk[...]
        v = jnp.dot(xb, wv[...], preferred_element_type=jnp.float32) + bv[...]
        q3 = q.reshape(R, S, D).astype(jnp.bfloat16)
        k3 = k.reshape(R, S, D).astype(jnp.bfloat16)
        v3 = v.reshape(R, S, D).astype(jnp.bfloat16)
        wo_all = wo[...]                         # (D, D) bf16

        out = jnp.zeros((RS, D), jnp.float32)
        for h in range(n_head):                  # static unroll; work batched over R rows
            sl = slice(h * dh, (h + 1) * dh)
            s = jnp.einsum('bqd,bkd->bqk', q3[:, :, sl], k3[:, :, sl],
                           preferred_element_type=jnp.float32) * scale
            s = s - jnp.max(s, axis=-1, keepdims=True)
            p = jnp.exp(s)
            p = p * pl.reciprocal(jnp.sum(p, axis=-1, keepdims=True), approx=True)
            oh = jnp.einsum('bqk,bkd->bqd', p.astype(jnp.bfloat16), v3[:, :, sl],
                            preferred_element_type=jnp.float32)
            # Fold head output straight into the output projection (no concat).
            out = out + jnp.dot(oh.reshape(RS, dh).astype(jnp.bfloat16),
                                wo_all[sl, :],
                                preferred_element_type=jnp.float32)

        attn = out + bo[...]
        y_sc[...] = _layer_norm(x + attn, g1[...], be1[...])
        acc_sc[...] = jnp.zeros_like(acc_sc)

    # FFN chunk for the current d_ff tile (reduction axis): exact because ReLU
    # is elementwise per hidden unit and the second matmul sums over them.
    hidden = jnp.dot(y_sc[...].astype(jnp.bfloat16), w1[...],
                     preferred_element_type=jnp.float32) + b1[...]
    hidden = jnp.maximum(hidden, 0.0).astype(jnp.bfloat16)
    acc_sc[...] += jnp.dot(hidden, w2[...], preferred_element_type=jnp.float32)

    @pl.when(k_step == pl.num_programs(1) - 1)
    def _ffn_residual_and_norm2():
        z = y_sc[...] + acc_sc[...] + b2[...]
        z = _layer_norm(z, g2[...], be2[...])
        o_ref[...] = z.reshape(R, S, D).astype(o_ref.dtype)


def fc_kernel(x_ref, w_ref, b_ref, o_ref):
    o_ref[...] = (jnp.dot(x_ref[...].astype(jnp.bfloat16), w_ref[...],
                          preferred_element_type=jnp.float32)
                  + b_ref[...]).astype(o_ref.dtype)


# ----------------------------------------------------------------------------
# pallas_call wrappers
# ----------------------------------------------------------------------------
def encoder_layer(x, params, n_head, row_tile=128, dff_tile=2048):
    """x: (N, S, D) -> (N, S, D); grid = (row tiles, d_ff tiles)."""
    N, S, D = x.shape
    assert D % n_head == 0, f"d_model {D} not divisible by n_head {n_head}"
    d_ff = params["w1"].shape[1]
    R = _largest_divisor_tile(N, row_tile)
    tk = _dff_tile(d_ff, dff_tile)

    in_specs = [pl.BlockSpec((R, S, D), lambda r, k: (r, 0, 0))]
    for key in _LAYER_KEYS:
        if key == "w1":
            in_specs.append(pl.BlockSpec((D, tk), lambda r, k: (0, k)))
        elif key == "b1":
            in_specs.append(pl.BlockSpec((1, tk), lambda r, k: (0, k)))
        elif key == "w2":
            in_specs.append(pl.BlockSpec((tk, D), lambda r, k: (k, 0)))
        else:
            in_specs.append(pl.BlockSpec(params[key].shape, lambda r, k: (0, 0)))

    kernel = functools.partial(encoder_layer_kernel, n_head=n_head)
    return pl.pallas_call(
        kernel,
        out_shape=jax.ShapeDtypeStruct((N, S, D), x.dtype),
        grid=(N // R, d_ff // tk),
        in_specs=in_specs,
        out_specs=pl.BlockSpec((R, S, D), lambda r, k: (r, 0, 0)),
        scratch_shapes=[pltpu.VMEM((R * S, D), jnp.float32),   # y (post-norm1)
                        pltpu.VMEM((R * S, D), jnp.float32)],  # FFN accumulator
        compiler_params=pltpu.CompilerParams(
            dimension_semantics=("parallel", "arbitrary"),
            vmem_limit_bytes=VMEM_LIMIT),
    )(x, *(params[k] for k in _LAYER_KEYS))


def fc_linear(x2d, w, b, row_tile=256):
    """x2d: (N, F) @ (F, C) + b, with C padded to a multiple of 128."""
    N, F = x2d.shape
    C = w.shape[1]
    Cp = ((C + 127) // 128) * 128
    if Cp != C:
        w = jnp.pad(w, ((0, 0), (0, Cp - C)))
        b = jnp.pad(b, ((0, 0), (0, Cp - C)))
    R = _row_tile_2d(N, row_tile)
    out = pl.pallas_call(
        fc_kernel,
        out_shape=jax.ShapeDtypeStruct((N, Cp), x2d.dtype),
        grid=(N // R,),
        in_specs=[pl.BlockSpec((R, F), lambda r: (r, 0)),
                  pl.BlockSpec((F, Cp), lambda r: (0, 0)),
                  pl.BlockSpec((1, Cp), lambda r: (0, 0))],
        out_specs=pl.BlockSpec((R, Cp), lambda r: (r, 0)),
        compiler_params=pltpu.CompilerParams(
            dimension_semantics=("parallel",),
            vmem_limit_bytes=VMEM_LIMIT),
    )(x2d, w, b)
    return out[:, :C]


# ----------------------------------------------------------------------------
# Parameter init (deterministic, synthetic); matmul weights in bf16
# ----------------------------------------------------------------------------
def init_encoder_layer(key, d_model, d_ff):
    ks = jax.random.split(key, 6)
    w = lambda k, s: (jax.random.normal(k, s, jnp.float32) * 0.02).astype(jnp.bfloat16)
    z = lambda s: jnp.zeros(s, jnp.float32)
    o = lambda s: jnp.ones(s, jnp.float32)
    return dict(
        wq=w(ks[0], (d_model, d_model)), bq=z((1, d_model)),
        wk=w(ks[1], (d_model, d_model)), bk=z((1, d_model)),
        wv=w(ks[2], (d_model, d_model)), bv=z((1, d_model)),
        wo=w(ks[3], (d_model, d_model)), bo=z((1, d_model)),
        w1=w(ks[4], (d_model, d_ff)),    b1=z((1, d_ff)),
        w2=w(ks[5], (d_ff, d_model)),    b2=z((1, d_model)),
        g1=o((1, d_model)), be1=z((1, d_model)),
        g2=o((1, d_model)), be2=z((1, d_model)),
    )


def init_chordnet(key, n_freq, n_classes, n_group, f_layer, t_layer, d_layer,
                  ff_mult=4):
    gdim = n_freq // n_group
    keys = jax.random.split(key, f_layer + t_layer + d_layer + 1)
    ki = iter(keys)
    params = dict(
        f_layers=[init_encoder_layer(next(ki), gdim, ff_mult * gdim)
                  for _ in range(f_layer)],
        t_layers=[init_encoder_layer(next(ki), n_freq, ff_mult * n_freq)
                  for _ in range(t_layer)],
        d_layers=[init_encoder_layer(next(ki), n_freq, ff_mult * n_freq)
                  for _ in range(d_layer)],
    )
    kfc = next(ki)
    params["fc_w"] = (jax.random.normal(kfc, (n_freq, n_classes), jnp.float32)
                      * 0.02).astype(jnp.bfloat16)
    params["fc_b"] = jnp.zeros((1, n_classes), jnp.float32)
    return params


# ----------------------------------------------------------------------------
# ChordNet forward (Pallas)
# ----------------------------------------------------------------------------
def chordnet_forward(params, x, n_group, f_head, t_head, d_head, weight=None,
                     f_row_tile=128, dff_tile=2048):
    # TODO(synk): `weight` argument of BaseTransformer is unused (source not given).
    B, T, F = x.shape
    assert F % n_group == 0
    gdim = F // n_group

    # frequency-group self-attention stack: many (n_group, gdim) rows per step
    h = x.reshape(B * T, n_group, gdim)
    for p in params["f_layers"]:
        h = encoder_layer(h, p, f_head, row_tile=f_row_tile, dff_tile=dff_tile)
    h = h.reshape(B, T, F)

    # time self-attention stack: seq = T, d_model = F (one sequence per row tile)
    for p in params["t_layers"]:
        h = encoder_layer(h, p, t_head, row_tile=1, dff_tile=dff_tile)

    # decoder (self-attention) stack
    o = h
    for p in params["d_layers"]:
        o = encoder_layer(o, p, d_head, row_tile=1, dff_tile=dff_tile)

    # dropout: identity in eval mode; final classifier in Pallas
    logits = fc_linear(o.reshape(B * T, F), params["fc_w"], params["fc_b"])
    return logits.reshape(B, T, -1), o


# ----------------------------------------------------------------------------
# Pure-JAX f32 reference (for correctness checking)
# ----------------------------------------------------------------------------
def _ref_encoder_layer(x, p, n_head):
    N, S, D = x.shape
    dh = D // n_head
    f32 = lambda a: a.astype(jnp.float32)
    x2 = x.reshape(N * S, D)
    q = (x2 @ f32(p["wq"]) + p["bq"]).reshape(N, S, n_head, dh)
    k = (x2 @ f32(p["wk"]) + p["bk"]).reshape(N, S, n_head, dh)
    v = (x2 @ f32(p["wv"]) + p["bv"]).reshape(N, S, n_head, dh)
    s = jnp.einsum('nqhd,nkhd->nhqk', q, k) / (dh ** 0.5)
    pr = jax.nn.softmax(s, axis=-1)
    o = jnp.einsum('nhqk,nkhd->nqhd', pr, v).reshape(N * S, D)
    attn = o @ f32(p["wo"]) + p["bo"]
    y = _layer_norm(x2 + attn, p["g1"], p["be1"])
    ff = jnp.maximum(y @ f32(p["w1"]) + p["b1"], 0.0)
    ff = ff @ f32(p["w2"]) + p["b2"]
    z = _layer_norm(y + ff, p["g2"], p["be2"])
    return z.reshape(N, S, D)


def chordnet_ref(params, x, n_group, f_head, t_head, d_head):
    B, T, F = x.shape
    gdim = F // n_group
    h = x.reshape(B * T, n_group, gdim)
    for p in params["f_layers"]:
        h = _ref_encoder_layer(h, p, f_head)
    h = h.reshape(B, T, F)
    for p in params["t_layers"]:
        h = _ref_encoder_layer(h, p, t_head)
    o = h
    for p in params["d_layers"]:
        o = _ref_encoder_layer(o, p, d_head)
    logits = (o.reshape(B * T, F) @ params["fc_w"].astype(jnp.float32)
              + params["fc_b"])
    return logits.reshape(B, T, -1), o


# ----------------------------------------------------------------------------
if __name__ == "__main__":
    # Small shapes consistent with the module (scaled down from n_freq=2048,
    # n_group=32, 5 layers each, 8 heads, n_classes=122).  Tile sizes chosen so
    # the multi-row and multi-d_ff-tile grid paths are both exercised.
    B, T = 2, 8
    N_FREQ, N_GROUP, N_CLASSES = 128, 8, 16
    F_LAYER = T_LAYER = D_LAYER = 1
    F_HEAD = T_HEAD = D_HEAD = 2

    key = jax.random.PRNGKey(0)
    kx, kp = jax.random.split(key)
    x = jax.random.normal(kx, (B, T, N_FREQ), jnp.float32)
    params = init_chordnet(kp, N_FREQ, N_CLASSES, N_GROUP,
                           F_LAYER, T_LAYER, D_LAYER)

    fwd = jax.jit(functools.partial(
        chordnet_forward, n_group=N_GROUP,
        f_head=F_HEAD, t_head=T_HEAD, d_head=D_HEAD,
        f_row_tile=8, dff_tile=256))

    logits, o = fwd(params, x)
    jax.block_until_ready((logits, o))

    ref_logits, ref_o = chordnet_ref(params, x, N_GROUP, F_HEAD, T_HEAD, D_HEAD)

    assert logits.shape == (B, T, N_CLASSES), logits.shape
    assert o.shape == (B, T, N_FREQ), o.shape
    assert jnp.all(jnp.isfinite(logits)) and jnp.all(jnp.isfinite(o))
    assert float(jnp.max(jnp.abs(o - ref_o))) < 5e-2
    assert float(jnp.max(jnp.abs(logits - ref_logits))) < 5e-2
    print("KERNEL_OK")
</pallas_src>

<mosaic_0001>
module attributes {stable_mosaic.version = 11 : i64} {
  func.func @encoder_layer_kernel(%arg0: i32, %arg1: i32, %arg2: memref<8x8x16xf32, #tpu.memory_space<vmem>>, %arg3: memref<16x16xbf16, #tpu.memory_space<vmem>>, %arg4: memref<1x16xf32, #tpu.memory_space<vmem>>, %arg5: memref<16x16xbf16, #tpu.memory_space<vmem>>, %arg6: memref<1x16xf32, #tpu.memory_space<vmem>>, %arg7: memref<16x16xbf16, #tpu.memory_space<vmem>>, %arg8: memref<1x16xf32, #tpu.memory_space<vmem>>, %arg9: memref<16x16xbf16, #tpu.memory_space<vmem>>, %arg10: memref<1x16xf32, #tpu.memory_space<vmem>>, %arg11: memref<16x64xbf16, #tpu.memory_space<vmem>>, %arg12: memref<1x64xf32, #tpu.memory_space<vmem>>, %arg13: memref<64x16xbf16, #tpu.memory_space<vmem>>, %arg14: memref<1x16xf32, #tpu.memory_space<vmem>>, %arg15: memref<1x16xf32, #tpu.memory_space<vmem>>, %arg16: memref<1x16xf32, #tpu.memory_space<vmem>>, %arg17: memref<1x16xf32, #tpu.memory_space<vmem>>, %arg18: memref<1x16xf32, #tpu.memory_space<vmem>>, %arg19: memref<8x8x16xf32, #tpu.memory_space<vmem>>, %arg20: memref<64x16xf32, #tpu.memory_space<vmem>>, %arg21: memref<64x16xf32, #tpu.memory_space<vmem>>) attributes {dimension_semantics = [#tpu.dimension_semantics<parallel>, #tpu.dimension_semantics<arbitrary>], iteration_bounds = array<i64: 2, 1>, scalar_prefetch = 0 : i64, scratch_operands = 2 : i64, tpu.core_type = #tpu.core_type<tc>, window_params = [{transform_indices = @transform_0, window_bounds = array<i64: 8, 8, 16>}, {pipeline_mode = #tpu.pipeline_mode<synchronous>, transform_indices = @transform_1, window_bounds = array<i64: 16, 16>}, {pipeline_mode = #tpu.pipeline_mode<synchronous>, transform_indices = @transform_2, window_bounds = array<i64: 1, 16>}, {pipeline_mode = #tpu.pipeline_mode<synchronous>, transform_indices = @transform_3, window_bounds = array<i64: 16, 16>}, {pipeline_mode = #tpu.pipeline_mode<synchronous>, transform_indices = @transform_4, window_bounds = array<i64: 1, 16>}, {pipeline_mode = #tpu.pipeline_mode<synchronous>, transform_indices = @transform_5, window_bounds = array<i64: 16, 16>}, {pipeline_mode = #tpu.pipeline_mode<synchronous>, transform_indices = @transform_6, window_bounds = array<i64: 1, 16>}, {pipeline_mode = #tpu.pipeline_mode<synchronous>, transform_indices = @transform_7, window_bounds = array<i64: 16, 16>}, {pipeline_mode = #tpu.pipeline_mode<synchronous>, transform_indices = @transform_8, window_bounds = array<i64: 1, 16>}, {transform_indices = @transform_9, window_bounds = array<i64: 16, 64>}, {transform_indices = @transform_10, window_bounds = array<i64: 1, 64>}, {transform_indices = @transform_11, window_bounds = array<i64: 64, 16>}, {pipeline_mode = #tpu.pipeline_mode<synchronous>, transform_indices = @transform_12, window_bounds = array<i64: 1, 16>}, {pipeline_mode = #tpu.pipeline_mode<synchronous>, transform_indices = @transform_13, window_bounds = array<i64: 1, 16>}, {pipeline_mode = #tpu.pipeline_mode<synchronous>, transform_indices = @transform_14, window_bounds = array<i64: 1, 16>}, {pipeline_mode = #tpu.pipeline_mode<synchronous>, transform_indices = @transform_15, window_bounds = array<i64: 1, 16>}, {pipeline_mode = #tpu.pipeline_mode<synchronous>, transform_indices = @transform_16, window_bounds = array<i64: 1, 16>}, {transform_indices = @transform_17, window_bounds = array<i64: 8, 8, 16>}]} {
    %c0_i32 = arith.constant 0 : i32
    %0 = arith.cmpi eq, %arg1, %c0_i32 : i32
    %1 = arith.extui %0 : i1 to i32
    %c0_i32_0 = arith.constant 0 : i32
    %2 = arith.cmpi ne, %1, %c0_i32_0 : i32
    scf.if %2 {
      %c0_16 = arith.constant 0 : index
      %c0_17 = arith.constant 0 : index
      %c0_18 = arith.constant 0 : index
      %21 = vector.load %arg2[%c0_16, %c0_17, %c0_18] : memref<8x8x16xf32, #tpu.memory_space<vmem>>, vector<8x8x16xf32>
      %22 = vector.shape_cast %21 : vector<8x8x16xf32> to vector<64x16xf32>
      %23 = arith.truncf %22 : vector<64x16xf32> to vector<64x16xbf16>
      %c0_19 = arith.constant 0 : index
      %c0_20 = arith.constant 0 : index
      %24 = vector.load %arg3[%c0_19, %c0_20] : memref<16x16xbf16, #tpu.memory_space<vmem>>, vector<16x16xbf16>
      %cst_21 = arith.constant dense<0.000000e+00> : vector<64x16xf32>
      %25 = tpu.matmul %23, %24, %cst_21 {dimension_numbers = #tpu.dot_dimension_numbers<[1], [0], [0], [1], [0, 0, 1, 1], [], []>} : vector<64x16xbf16>, vector<16x16xbf16>, vector<64x16xf32> -> vector<64x16xf32>
      %c0_22 = arith.constant 0 : index
      %c0_23 = arith.constant 0 : index
      %26 = vector.load %arg4[%c0_22, %c0_23] : memref<1x16xf32, #tpu.memory_space<vmem>>, vector<1x16xf32>
      %27 = vector.broadcast %26 : vector<1x16xf32> to vector<64x16xf32>
      %28 = arith.addf %25, %27 : vector<64x16xf32>
      %c0_24 = arith.constant 0 : index
      %c0_25 = arith.constant 0 : index
      %29 = vector.load %arg5[%c0_24, %c0_25] : memref<16x16xbf16, #tpu.memory_space<vmem>>, vector<16x16xbf16>
      %cst_26 = arith.constant dense<0.000000e+00> : vector<64x16xf32>
      %30 = tpu.matmul %23, %29, %cst_26 {dimension_numbers = #tpu.dot_dimension_numbers<[1], [0], [0], [1], [0, 0, 1, 1], [], []>} : vector<64x16xbf16>, vector<16x16xbf16>, vector<64x16xf32> -> vector<64x16xf32>
      %c0_27 = arith.constant 0 : index
      %c0_28 = arith.constant 0 : index
      %31 = vector.load %arg6[%c0_27, %c0_28] : memref<1x16xf32, #tpu.memory_space<vmem>>, vector<1x16xf32>
      %32 = vector.broadcast %31 : vector<1x16xf32> to vector<64x16xf32>
      %33 = arith.addf %30, %32 : vector<64x16xf32>
      %c0_29 = arith.constant 0 : index
      %c0_30 = arith.constant 0 : index
      %34 = vector.load %arg7[%c0_29, %c0_30] : memref<16x16xbf16, #tpu.memory_space<vmem>>, vector<16x16xbf16>
      %cst_31 = arith.constant dense<0.000000e+00> : vector<64x16xf32>
      %35 = tpu.matmul %23, %34, %cst_31 {dimension_numbers = #tpu.dot_dimension_numbers<[1], [0], [0], [1], [0, 0, 1, 1], [], []>} : vector<64x16xbf16>, vector<16x16xbf16>, vector<64x16xf32> -> vector<64x16xf32>
      %c0_32 = arith.constant 0 : index
      %c0_33 = arith.constant 0 : index
      %36 = vector.load %arg8[%c0_32, %c0_33] : memref<1x16xf32, #tpu.memory_space<vmem>>, vector<1x16xf32>
      %37 = vector.broadcast %36 : vector<1x16xf32> to vector<64x16xf32>
      %38 = arith.addf %35, %37 : vector<64x16xf32>
      %39 = vector.shape_cast %28 : vector<64x16xf32> to vector<8x8x16xf32>
      %40 = arith.truncf %39 : vector<8x8x16xf32> to vector<8x8x16xbf16>
      %41 = vector.shape_cast %33 : vector<64x16xf32> to vector<8x8x16xf32>
      %42 = arith.truncf %41 : vector<8x8x16xf32> to vector<8x8x16xbf16>
      %43 = vector.shape_cast %38 : vector<64x16xf32> to vector<8x8x16xf32>
      %44 = arith.truncf %43 : vector<8x8x16xf32> to vector<8x8x16xbf16>
      %c0_34 = arith.constant 0 : index
      %c0_35 = arith.constant 0 : index
      %45 = vector.load %arg9[%c0_34, %c0_35] : memref<16x16xbf16, #tpu.memory_space<vmem>>, vector<16x16xbf16>
      %cst_36 = arith.constant 0.000000e+00 : f32
      %46 = vector.broadcast %cst_36 : f32 to vector<64x16xf32>
      %47 = vector.extract_strided_slice %40 {offsets = [0, 0, 0], sizes = [8, 8, 8], strides = [1, 1, 1]} : vector<8x8x16xbf16> to vector<8x8x8xbf16>
      %48 = vector.extract_strided_slice %42 {offsets = [0, 0, 0], sizes = [8, 8, 8], strides = [1, 1, 1]} : vector<8x8x16xbf16> to vector<8x8x8xbf16>
      "tpu.trace_start"() <{level = 10 : i32, message = "bqd,bkd->bqk"}> : () -> ()
      %cst_37 = arith.constant dense<0.000000e+00> : vector<8x8x8xf32>
      %49 = tpu.matmul %47, %48, %cst_37 {dimension_numbers = #tpu.dot_dimension_numbers<[2], [2], [1], [1], [0, 0, 0, 1, 1, 1], [0], [0]>} : vector<8x8x8xbf16>, vector<8x8x8xbf16>, vector<8x8x8xf32> -> vector<8x8x8xf32>
      "tpu.trace_stop"() : () -> ()
      %cst_38 = arith.constant 0.353553385 : f32
      %50 = vector.broadcast %cst_38 : f32 to vector<8x8x8xf32>
      %51 = arith.mulf %49, %50 : vector<8x8x8xf32>
      %cst_39 = arith.constant dense<0xFF800000> : vector<8x8xf32>
      %52 = vector.multi_reduction <maximumf>, %51, %cst_39 [2] : vector<8x8x8xf32> to vector<8x8xf32>
      %53 = vector.shape_cast %52 : vector<8x8xf32> to vector<8x8x1xf32>
      %54 = vector.broadcast %53 : vector<8x8x1xf32> to vector<8x8x8xf32>
      %55 = arith.subf %51, %54 : vector<8x8x8xf32>
      %56 = math.exp %55 : vector<8x8x8xf32>
      %cst_40 = arith.constant dense<0.000000e+00> : vector<8x8xf32>
      %57 = vector.multi_reduction <add>, %56, %cst_40 [2] : vector<8x8x8xf32> to vector<8x8xf32>
      %58 = vector.shape_cast %57 : vector<8x8xf32> to vector<8x8x1xf32>
      %59 = tpu.reciprocal %58 {approx = true} : vector<8x8x1xf32> -> vector<8x8x1xf32>
      %60 = vector.broadcast %59 : vector<8x8x1xf32> to vector<8x8x8xf32>
      %61 = arith.mulf %56, %60 : vector<8x8x8xf32>
      %62 = arith.truncf %61 : vector<8x8x8xf32> to vector<8x8x8xbf16>
      %63 = vector.extract_strided_slice %44 {offsets = [0, 0, 0], sizes = [8, 8, 8], strides = [1, 1, 1]} : vector<8x8x16xbf16> to vector<8x8x8xbf16>
      "tpu.trace_start"() <{level = 10 : i32, message = "bqk,bkd->bqd"}> : () -> ()
      %cst_41 = arith.constant dense<0.000000e+00> : vector<8x8x8xf32>
      %64 = tpu.matmul %62, %63, %cst_41 {dimension_numbers = #tpu.dot_dimension_numbers<[2], [1], [1], [2], [0, 0, 0, 1, 1, 2], [0], [0]>} : vector<8x8x8xbf16>, vector<8x8x8xbf16>, vector<8x8x8xf32> -> vector<8x8x8xf32>
      "tpu.trace_stop"() : () -> ()
      %65 = vector.shape_cast %64 : vector<8x8x8xf32> to vector<64x8xf32>
      %66 = arith.truncf %65 : vector<64x8xf32> to vector<64x8xbf16>
      %67 = vector.extract_strided_slice %45 {offsets = [0, 0], sizes = [8, 16], strides = [1, 1]} : vector<16x16xbf16> to vector<8x16xbf16>
      %cst_42 = arith.constant dense<0.000000e+00> : vector<64x16xf32>
      %68 = tpu.matmul %66, %67, %cst_42 {dimension_numbers = #tpu.dot_dimension_numbers<[1], [0], [0], [1], [0, 0, 1, 1], [], []>} : vector<64x8xbf16>, vector<8x16xbf16>, vector<64x16xf32> -> vector<64x16xf32>
      %69 = arith.addf %46, %68 : vector<64x16xf32>
      %70 = vector.extract_strided_slice %40 {offsets = [0, 0, 8], sizes = [8, 8, 8], strides = [1, 1, 1]} : vector<8x8x16xbf16> to vector<8x8x8xbf16>
      %71 = vector.extract_strided_slice %42 {offsets = [0, 0, 8], sizes = [8, 8, 8], strides = [1, 1, 1]} : vector<8x8x16xbf16> to vector<8x8x8xbf16>
      "tpu.trace_start"() <{level = 10 : i32, message = "bqd,bkd->bqk"}> : () -> ()
      %cst_43 = arith.constant dense<0.000000e+00> : vector<8x8x8xf32>
      %72 = tpu.matmul %70, %71, %cst_43 {dimension_numbers = #tpu.dot_dimension_numbers<[2], [2], [1], [1], [0, 0, 0, 1, 1, 1], [0], [0]>} : vector<8x8x8xbf16>, vector<8x8x8xbf16>, vector<8x8x8xf32> -> vector<8x8x8xf32>
      "tpu.trace_stop"() : () -> ()
      %cst_44 = arith.constant 0.353553385 : f32
      %73 = vector.broadcast %cst_44 : f32 to vector<8x8x8xf32>
      %74 = arith.mulf %72, %73 : vector<8x8x8xf32>
      %cst_45 = arith.constant dense<0xFF800000> : vector<8x8xf32>
      %75 = vector.multi_reduction <maximumf>, %74, %cst_45 [2] : vector<8x8x8xf32> to vector<8x8xf32>
      %76 = vector.shape_cast %75 : vector<8x8xf32> to vector<8x8x1xf32>
      %77 = vector.broadcast %76 : vector<8x8x1xf32> to vector<8x8x8xf32>
      %78 = arith.subf %74, %77 : vector<8x8x8xf32>
      %79 = math.exp %78 : vector<8x8x8xf32>
      %cst_46 = arith.constant dense<0.000000e+00> : vector<8x8xf32>
      %80 = vector.multi_reduction <add>, %79, %cst_46 [2] : vector<8x8x8xf32> to vector<8x8xf32>
      %81 = vector.shape_cast %80 : vector<8x8xf32> to vector<8x8x1xf32>
      %82 = tpu.reciprocal %81 {approx = true} : vector<8x8x1xf32> -> vector<8x8x1xf32>
      %83 = vector.broadcast %82 : vector<8x8x1xf32> to vector<8x8x8xf32>
      %84 = arith.mulf %79, %83 : vector<8x8x8xf32>
      %85 = arith.truncf %84 : vector<8x8x8xf32> to vector<8x8x8xbf16>
      %86 = vector.extract_strided_slice %44 {offsets = [0, 0, 8], sizes = [8, 8, 8], strides = [1, 1, 1]} : vector<8x8x16xbf16> to vector<8x8x8xbf16>
      "tpu.trace_start"() <{level = 10 : i32, message = "bqk,bkd->bqd"}> : () -> ()
      %cst_47 = arith.constant dense<0.000000e+00> : vector<8x8x8xf32>
      %87 = tpu.matmul %85, %86, %cst_47 {dimension_numbers = #tpu.dot_dimension_numbers<[2], [1], [1], [2], [0, 0, 0, 1, 1, 2], [0], [0]>} : vector<8x8x8xbf16>, vector<8x8x8xbf16>, vector<8x8x8xf32> -> vector<8x8x8xf32>
      "tpu.trace_stop"() : () -> ()
      %88 = vector.shape_cast %87 : vector<8x8x8xf32> to vector<64x8xf32>
      %89 = arith.truncf %88 : vector<64x8xf32> to vector<64x8xbf16>
      %90 = vector.extract_strided_slice %45 {offsets = [8, 0], sizes = [8, 16], strides = [1, 1]} : vector<16x16xbf16> to vector<8x16xbf16>
      %cst_48 = arith.constant dense<0.000000e+00> : vector<64x16xf32>
      %91 = tpu.matmul %89, %90, %cst_48 {dimension_numbers = #tpu.dot_dimension_numbers<[1], [0], [0], [1], [0, 0, 1, 1], [], []>} : vector<64x8xbf16>, vector<8x16xbf16>, vector<64x16xf32> -> vector<64x16xf32>
      %92 = arith.addf %69, %91 : vector<64x16xf32>
      %c0_49 = arith.constant 0 : index
      %c0_50 = arith.constant 0 : index
      %93 = vector.load %arg10[%c0_49, %c0_50] : memref<1x16xf32, #tpu.memory_space<vmem>>, vector<1x16xf32>
      %94 = vector.broadcast %93 : vector<1x16xf32> to vector<64x16xf32>
      %95 = arith.addf %92, %94 : vector<64x16xf32>
      %96 = arith.addf %22, %95 : vector<64x16xf32>
      %c0_51 = arith.constant 0 : index
      %c0_52 = arith.constant 0 : index
      %97 = vector.load %arg15[%c0_51, %c0_52] : memref<1x16xf32, #tpu.memory_space<vmem>>, vector<1x16xf32>
      %c0_53 = arith.constant 0 : index
      %c0_54 = arith.constant 0 : index
      %98 = vector.load %arg16[%c0_53, %c0_54] : memref<1x16xf32, #tpu.memory_space<vmem>>, vector<1x16xf32>
      %cst_55 = arith.constant dense<0.000000e+00> : vector<64xf32>
      %99 = vector.multi_reduction <add>, %96, %cst_55 [1] : vector<64x16xf32> to vector<64xf32>
      %100 = vector.shape_cast %99 : vector<64xf32> to vector<64x1xf32>
      %cst_56 = arith.constant 1.600000e+01 : f32
      %101 = vector.broadcast %cst_56 : f32 to vector<64x1xf32>
      %102 = arith.divf %100, %101 : vector<64x1xf32>
      %103 = vector.broadcast %102 : vector<64x1xf32> to vector<64x16xf32>
      %104 = arith.subf %96, %103 : vector<64x16xf32>
      %105 = arith.mulf %104, %104 : vector<64x16xf32>
      %cst_57 = arith.constant dense<0.000000e+00> : vector<64xf32>
      %106 = vector.multi_reduction <add>, %105, %cst_57 [1] : vector<64x16xf32> to vector<64xf32>
      %107 = vector.shape_cast %106 : vector<64xf32> to vector<64x1xf32>
      %cst_58 = arith.constant 1.600000e+01 : f32
      %108 = vector.broadcast %cst_58 : f32 to vector<64x1xf32>
      %109 = arith.divf %107, %108 : vector<64x1xf32>
      %cst_59 = arith.constant 9.99999974E-6 : f32
      %110 = vector.broadcast %cst_59 : f32 to vector<64x1xf32>
      %111 = arith.addf %109, %110 : vector<64x1xf32>
      %112 = math.rsqrt %111 : vector<64x1xf32>
      %113 = vector.broadcast %112 : vector<64x1xf32> to vector<64x16xf32>
      %114 = arith.mulf %104, %113 : vector<64x16xf32>
      %115 = vector.broadcast %97 : vector<1x16xf32> to vector<64x16xf32>
      %116 = arith.mulf %114, %115 : vector<64x16xf32>
      %117 = vector.broadcast %98 : vector<1x16xf32> to vector<64x16xf32>
      %118 = arith.addf %116, %117 : vector<64x16xf32>
      %c0_60 = arith.constant 0 : index
      %c0_61 = arith.constant 0 : index
      %119 = vector.load %arg20[%c0_60, %c0_61] : memref<64x16xf32, #tpu.memory_space<vmem>>, vector<64x16xf32>
      tpu.vector_store %arg20[%c0_60, %c0_61], %118 {strides = array<i32>} : memref<64x16xf32, #tpu.memory_space<vmem>>, vector<64x16xf32>,
      %cst_62 = arith.constant 0.000000e+00 : f32
      %120 = vector.broadcast %cst_62 : f32 to vector<64x16xf32>
      %c0_63 = arith.constant 0 : index
      %c0_64 = arith.constant 0 : index
      %121 = vector.load %arg21[%c0_63, %c0_64] : memref<64x16xf32, #tpu.memory_space<vmem>>, vector<64x16xf32>
      tpu.vector_store %arg21[%c0_63, %c0_64], %120 {strides = array<i32>} : memref<64x16xf32, #tpu.memory_space<vmem>>, vector<64x16xf32>,
    } else {
    }
    %c0 = arith.constant 0 : index
    %c0_1 = arith.constant 0 : index
    %3 = vector.load %arg20[%c0, %c0_1] : memref<64x16xf32, #tpu.memory_space<vmem>>, vector<64x16xf32>
    %4 = arith.truncf %3 : vector<64x16xf32> to vector<64x16xbf16>
    %c0_2 = arith.constant 0 : index
    %c0_3 = arith.constant 0 : index
    %5 = vector.load %arg11[%c0_2, %c0_3] : memref<16x64xbf16, #tpu.memory_space<vmem>>, vector<16x64xbf16>
    %cst = arith.constant dense<0.000000e+00> : vector<64x64xf32>
    %6 = tpu.matmul %4, %5, %cst {dimension_numbers = #tpu.dot_dimension_numbers<[1], [0], [0], [1], [0, 0, 1, 1], [], []>} : vector<64x16xbf16>, vector<16x64xbf16>, vector<64x64xf32> -> vector<64x64xf32>
    %c0_4 = arith.constant 0 : index
    %c0_5 = arith.constant 0 : index
    %7 = vector.load %arg12[%c0_4, %c0_5] : memref<1x64xf32, #tpu.memory_space<vmem>>, vector<1x64xf32>
    %8 = vector.broadcast %7 : vector<1x64xf32> to vector<64x64xf32>
    %9 = arith.addf %6, %8 : vector<64x64xf32>
    %cst_6 = arith.constant 0.000000e+00 : f32
    %10 = vector.broadcast %cst_6 : f32 to vector<64x64xf32>
    %11 = arith.maximumf %9, %10 : vector<64x64xf32>
    %12 = arith.truncf %11 : vector<64x64xf32> to vector<64x64xbf16>
    %c0_7 = arith.constant 0 : index
    %c0_8 = arith.constant 0 : index
    %13 = vector.load %arg21[%c0_7, %c0_8] : memref<64x16xf32, #tpu.memory_space<vmem>>, vector<64x16xf32>
    %c0_9 = arith.constant 0 : index
    %c0_10 = arith.constant 0 : index
    %14 = vector.load %arg13[%c0_9, %c0_10] : memref<64x16xbf16, #tpu.memory_space<vmem>>, vector<64x16xbf16>
    %cst_11 = arith.constant dense<0.000000e+00> : vector<64x16xf32>
    %15 = tpu.matmul %12, %14, %cst_11 {dimension_numbers = #tpu.dot_dimension_numbers<[1], [0], [0], [1], [0, 0, 1, 1], [], []>} : vector<64x64xbf16>, vector<64x16xbf16>, vector<64x16xf32> -> vector<64x16xf32>
    %16 = arith.addf %13, %15 : vector<64x16xf32>
    %c0_12 = arith.constant 0 : index
    %c0_13 = arith.constant 0 : index
    %17 = vector.load %arg21[%c0_12, %c0_13] : memref<64x16xf32, #tpu.memory_space<vmem>>, vector<64x16xf32>
    tpu.vector_store %arg21[%c0_12, %c0_13], %16 {strides = array<i32>} : memref<64x16xf32, #tpu.memory_space<vmem>>, vector<64x16xf32>,
    %c0_i32_14 = arith.constant 0 : i32
    %18 = arith.cmpi eq, %arg1, %c0_i32_14 : i32
    %19 = arith.extui %18 : i1 to i32
    %c0_i32_15 = arith.constant 0 : i32
    %20 = arith.cmpi ne, %19, %c0_i32_15 : i32
    scf.if %20 {
      %c0_16 = arith.constant 0 : index
      %c0_17 = arith.constant 0 : index
      %21 = vector.load %arg20[%c0_16, %c0_17] : memref<64x16xf32, #tpu.memory_space<vmem>>, vector<64x16xf32>
      %c0_18 = arith.constant 0 : index
      %c0_19 = arith.constant 0 : index
      %22 = vector.load %arg21[%c0_18, %c0_19] : memref<64x16xf32, #tpu.memory_space<vmem>>, vector<64x16xf32>
      %23 = arith.addf %21, %22 : vector<64x16xf32>
      %c0_20 = arith.constant 0 : index
      %c0_21 = arith.constant 0 : index
      %24 = vector.load %arg14[%c0_20, %c0_21] : memref<1x16xf32, #tpu.memory_space<vmem>>, vector<1x16xf32>
      %25 = vector.broadcast %24 : vector<1x16xf32> to vector<64x16xf32>
      %26 = arith.addf %23, %25 : vector<64x16xf32>
      %c0_22 = arith.constant 0 : index
      %c0_23 = arith.constant 0 : index
      %27 = vector.load %arg17[%c0_22, %c0_23] : memref<1x16xf32, #tpu.memory_space<vmem>>, vector<1x16xf32>
      %c0_24 = arith.constant 0 : index
      %c0_25 = arith.constant 0 : index
      %28 = vector.load %arg18[%c0_24, %c0_25] : memref<1x16xf32, #tpu.memory_space<vmem>>, vector<1x16xf32>
      %cst_26 = arith.constant dense<0.000000e+00> : vector<64xf32>
      %29 = vector.multi_reduction <add>, %26, %cst_26 [1] : vector<64x16xf32> to vector<64xf32>
      %30 = vector.shape_cast %29 : vector<64xf32> to vector<64x1xf32>
      %cst_27 = arith.constant 1.600000e+01 : f32
      %31 = vector.broadcast %cst_27 : f32 to vector<64x1xf32>
      %32 = arith.divf %30, %31 : vector<64x1xf32>
      %33 = vector.broadcast %32 : vector<64x1xf32> to vector<64x16xf32>
      %34 = arith.subf %26, %33 : vector<64x16xf32>
      %35 = arith.mulf %34, %34 : vector<64x16xf32>
      %cst_28 = arith.constant dense<0.000000e+00> : vector<64xf32>
      %36 = vector.multi_reduction <add>, %35, %cst_28 [1] : vector<64x16xf32> to vector<64xf32>
      %37 = vector.shape_cast %36 : vector<64xf32> to vector<64x1xf32>
      %cst_29 = arith.constant 1.600000e+01 : f32
      %38 = vector.broadcast %cst_29 : f32 to vector<64x1xf32>
      %39 = arith.divf %37, %38 : vector<64x1xf32>
      %cst_30 = arith.constant 9.99999974E-6 : f32
      %40 = vector.broadcast %cst_30 : f32 to vector<64x1xf32>
      %41 = arith.addf %39, %40 : vector<64x1xf32>
      %42 = math.rsqrt %41 : vector<64x1xf32>
      %43 = vector.broadcast %42 : vector<64x1xf32> to vector<64x16xf32>
      %44 = arith.mulf %34, %43 : vector<64x16xf32>
      %45 = vector.broadcast %27 : vector<1x16xf32> to vector<64x16xf32>
      %46 = arith.mulf %44, %45 : vector<64x16xf32>
      %47 = vector.broadcast %28 : vector<1x16xf32> to vector<64x16xf32>
      %48 = arith.addf %46, %47 : vector<64x16xf32>
      %49 = vector.shape_cast %48 : vector<64x16xf32> to vector<8x8x16xf32>
      %c0_31 = arith.constant 0 : index
      %c0_32 = arith.constant 0 : index
      %c0_33 = arith.constant 0 : index
      %50 = vector.load %arg19[%c0_31, %c0_32, %c0_33] : memref<8x8x16xf32, #tpu.memory_space<vmem>>, vector<8x8x16xf32>
      tpu.vector_store %arg19[%c0_31, %c0_32, %c0_33], %49 {strides = array<i32>} : memref<8x8x16xf32, #tpu.memory_space<vmem>>, vector<8x8x16xf32>,
    } else {
    }
    return
  }
  func.func @transform_0(%arg0: i32, %arg1: i32) -> (i32, i32, i32) {
    %c0_i32 = arith.constant 0 : i32
    %c0_i32_0 = arith.constant 0 : i32
    %c0_i32_1 = arith.constant 0 : i32
    return %arg0, %c0_i32, %c0_i32_0 : i32, i32, i32
  }
  func.func @transform_1(%arg0: i32, %arg1: i32) -> (i32, i32) {
    %c0_i32 = arith.constant 0 : i32
    %c0_i32_0 = arith.constant 0 : i32
    %c0_i32_1 = arith.constant 0 : i32
    return %c0_i32, %c0_i32_0 : i32, i32
  }
  func.func @transform_2(%arg0: i32, %arg1: i32) -> (i32, i32) {
    %c0_i32 = arith.constant 0 : i32
    %c0_i32_0 = arith.constant 0 : i32
    %c0_i32_1 = arith.constant 0 : i32
    return %c0_i32, %c0_i32_0 : i32, i32
  }
  func.func @transform_3(%arg0: i32, %arg1: i32) -> (i32, i32) {
    %c0_i32 = arith.constant 0 : i32
    %c0_i32_0 = arith.constant 0 : i32
    %c0_i32_1 = arith.constant 0 : i32
    return %c0_i32, %c0_i32_0 : i32, i32
  }
  func.func @transform_4(%arg0: i32, %arg1: i32) -> (i32, i32) {
    %c0_i32 = arith.constant 0 : i32
    %c0_i32_0 = arith.constant 0 : i32
    %c0_i32_1 = arith.constant 0 : i32
    return %c0_i32, %c0_i32_0 : i32, i32
  }
  func.func @transform_5(%arg0: i32, %arg1: i32) -> (i32, i32) {
    %c0_i32 = arith.constant 0 : i32
    %c0_i32_0 = arith.constant 0 : i32
    %c0_i32_1 = arith.constant 0 : i32
    return %c0_i32, %c0_i32_0 : i32, i32
  }
  func.func @transform_6(%arg0: i32, %arg1: i32) -> (i32, i32) {
    %c0_i32 = arith.constant 0 : i32
    %c0_i32_0 = arith.constant 0 : i32
    %c0_i32_1 = arith.constant 0 : i32
    return %c0_i32, %c0_i32_0 : i32, i32
  }
  func.func @transform_7(%arg0: i32, %arg1: i32) -> (i32, i32) {
    %c0_i32 = arith.constant 0 : i32
    %c0_i32_0 = arith.constant 0 : i32
    %c0_i32_1 = arith.constant 0 : i32
    return %c0_i32, %c0_i32_0 : i32, i32
  }
  func.func @transform_8(%arg0: i32, %arg1: i32) -> (i32, i32) {
    %c0_i32 = arith.constant 0 : i32
    %c0_i32_0 = arith.constant 0 : i32
    %c0_i32_1 = arith.constant 0 : i32
    return %c0_i32, %c0_i32_0 : i32, i32
  }
  func.func @transform_9(%arg0: i32, %arg1: i32) -> (i32, i32) {
    %c0_i32 = arith.constant 0 : i32
    %c0_i32_0 = arith.constant 0 : i32
    return %c0_i32, %arg1 : i32, i32
  }
  func.func @transform_10(%arg0: i32, %arg1: i32) -> (i32, i32) {
    %c0_i32 = arith.constant 0 : i32
    %c0_i32_0 = arith.constant 0 : i32
    return %c0_i32, %arg1 : i32, i32
  }
  func.func @transform_11(%arg0: i32, %arg1: i32) -> (i32, i32) {
    %c0_i32 = arith.constant 0 : i32
    %c0_i32_0 = arith.constant 0 : i32
    return %arg1, %c0_i32 : i32, i32
  }
  func.func @transform_12(%arg0: i32, %arg1: i32) -> (i32, i32) {
    %c0_i32 = arith.constant 0 : i32
    %c0_i32_0 = arith.constant 0 : i32
    %c0_i32_1 = arith.constant 0 : i32
    return %c0_i32, %c0_i32_0 : i32, i32
  }
  func.func @transform_13(%arg0: i32, %arg1: i32) -> (i32, i32) {
    %c0_i32 = arith.constant 0 : i32
    %c0_i32_0 = arith.constant 0 : i32
    %c0_i32_1 = arith.constant 0 : i32
    return %c0_i32, %c0_i32_0 : i32, i32
  }
  func.func @transform_14(%arg0: i32, %arg1: i32) -> (i32, i32) {
    %c0_i32 = arith.constant 0 : i32
    %c0_i32_0 = arith.constant 0 : i32
    %c0_i32_1 = arith.constant 0 : i32
    return %c0_i32, %c0_i32_0 : i32, i32
  }
  func.func @transform_15(%arg0: i32, %arg1: i32) -> (i32, i32) {
    %c0_i32 = arith.constant 0 : i32
    %c0_i32_0 = arith.constant 0 : i32
    %c0_i32_1 = arith.constant 0 : i32
    return %c0_i32, %c0_i32_0 : i32, i32
  }
  func.func @transform_16(%arg0: i32, %arg1: i32) -> (i32, i32) {
    %c0_i32 = arith.constant 0 : i32
    %c0_i32_0 = arith.constant 0 : i32
    %c0_i32_1 = arith.constant 0 : i32
    return %c0_i32, %c0_i32_0 : i32, i32
  }
  func.func @transform_17(%arg0: i32, %arg1: i32) -> (i32, i32, i32) {
    %c0_i32 = arith.constant 0 : i32
    %c0_i32_0 = arith.constant 0 : i32
    %c0_i32_1 = arith.constant 0 : i32
    return %arg0, %c0_i32, %c0_i32_0 : i32, i32, i32
  }
}

module attributes {stable_mosaic.version = 11 : i64} {
  func.func @encoder_layer_kernel(%arg0: i32, %arg1: i32, %arg2: memref<1x8x128xf32, #tpu.memory_space<vmem>>, %arg3: memref<128x128xbf16, #tpu.memory_space<vmem>>, %arg4: memref<1x128xf32, #tpu.memory_space<vmem>>, %arg5: memref<128x128xbf16, #tpu.memory_space<vmem>>, %arg6: memref<1x128xf32, #tpu.memory_space<vmem>>, %arg7: memref<128x128xbf16, #tpu.memory_space<vmem>>, %arg8: memref<1x128xf32, #tpu.memory_space<vmem>>, %arg9: memref<128x128xbf16, #tpu.memory_space<vmem>>, %arg10: memref<1x128xf32, #tpu.memory_space<vmem>>, %arg11: memref<128x256xbf16, #tpu.memory_space<vmem>>, %arg12: memref<1x256xf32, #tpu.memory_space<vmem>>, %arg13: memref<256x128xbf16, #tpu.memory_space<vmem>>, %arg14: memref<1x128xf32, #tpu.memory_space<vmem>>, %arg15: memref<1x128xf32, #tpu.memory_space<vmem>>, %arg16: memref<1x128xf32, #tpu.memory_space<vmem>>, %arg17: memref<1x128xf32, #tpu.memory_space<vmem>>, %arg18: memref<1x128xf32, #tpu.memory_space<vmem>>, %arg19: memref<1x8x128xf32, #tpu.memory_space<vmem>>, %arg20: memref<8x128xf32, #tpu.memory_space<vmem>>, %arg21: memref<8x128xf32, #tpu.memory_space<vmem>>) attributes {dimension_semantics = [#tpu.dimension_semantics<parallel>, #tpu.dimension_semantics<arbitrary>], iteration_bounds = array<i64: 2, 2>, scalar_prefetch = 0 : i64, scratch_operands = 2 : i64, tpu.core_type = #tpu.core_type<tc>, window_params = [{transform_indices = @transform_0, window_bounds = array<i64: 1, 8, 128>}, {pipeline_mode = #tpu.pipeline_mode<synchronous>, transform_indices = @transform_1, window_bounds = array<i64: 128, 128>}, {pipeline_mode = #tpu.pipeline_mode<synchronous>, transform_indices = @transform_2, window_bounds = array<i64: 1, 128>}, {pipeline_mode = #tpu.pipeline_mode<synchronous>, transform_indices = @transform_3, window_bounds = array<i64: 128, 128>}, {pipeline_mode = #tpu.pipeline_mode<synchronous>, transform_indices = @transform_4, window_bounds = array<i64: 1, 128>}, {pipeline_mode = #tpu.pipeline_mode<synchronous>, transform_indices = @transform_5, window_bounds = array<i64: 128, 128>}, {pipeline_mode = #tpu.pipeline_mode<synchronous>, transform_indices = @transform_6, window_bounds = array<i64: 1, 128>}, {pipeline_mode = #tpu.pipeline_mode<synchronous>, transform_indices = @transform_7, window_bounds = array<i64: 128, 128>}, {pipeline_mode = #tpu.pipeline_mode<synchronous>, transform_indices = @transform_8, window_bounds = array<i64: 1, 128>}, {transform_indices = @transform_9, window_bounds = array<i64: 128, 256>}, {transform_indices = @transform_10, window_bounds = array<i64: 1, 256>}, {transform_indices = @transform_11, window_bounds = array<i64: 256, 128>}, {pipeline_mode = #tpu.pipeline_mode<synchronous>, transform_indices = @transform_12, window_bounds = array<i64: 1, 128>}, {pipeline_mode = #tpu.pipeline_mode<synchronous>, transform_indices = @transform_13, window_bounds = array<i64: 1, 128>}, {pipeline_mode = #tpu.pipeline_mode<synchronous>, transform_indices = @transform_14, window_bounds = array<i64: 1, 128>}, {pipeline_mode = #tpu.pipeline_mode<synchronous>, transform_indices = @transform_15, window_bounds = array<i64: 1, 128>}, {pipeline_mode = #tpu.pipeline_mode<synchronous>, transform_indices = @transform_16, window_bounds = array<i64: 1, 128>}, {transform_indices = @transform_17, window_bounds = array<i64: 1, 8, 128>}]} {
    %c0_i32 = arith.constant 0 : i32
    %0 = arith.cmpi eq, %arg1, %c0_i32 : i32
    %1 = arith.extui %0 : i1 to i32
    %c0_i32_0 = arith.constant 0 : i32
    %2 = arith.cmpi ne, %1, %c0_i32_0 : i32
    scf.if %2 {
      %c0_15 = arith.constant 0 : index
      %c0_16 = arith.constant 0 : index
      %c0_17 = arith.constant 0 : index
      %21 = vector.load %arg2[%c0_15, %c0_16, %c0_17] : memref<1x8x128xf32, #tpu.memory_space<vmem>>, vector<1x8x128xf32>
      %22 = vector.shape_cast %21 : vector<1x8x128xf32> to vector<8x128xf32>
      %23 = arith.truncf %22 : vector<8x128xf32> to vector<8x128xbf16>
      %c0_18 = arith.constant 0 : index
      %c0_19 = arith.constant 0 : index
      %24 = vector.load %arg3[%c0_18, %c0_19] : memref<128x128xbf16, #tpu.memory_space<vmem>>, vector<128x128xbf16>
      %cst_20 = arith.constant dense<0.000000e+00> : vector<8x128xf32>
      %25 = tpu.matmul %23, %24, %cst_20 {dimension_numbers = #tpu.dot_dimension_numbers<[1], [0], [0], [1], [0, 0, 1, 1], [], []>} : vector<8x128xbf16>, vector<128x128xbf16>, vector<8x128xf32> -> vector<8x128xf32>
      %c0_21 = arith.constant 0 : index
      %c0_22 = arith.constant 0 : index
      %26 = vector.load %arg4[%c0_21, %c0_22] : memref<1x128xf32, #tpu.memory_space<vmem>>, vector<1x128xf32>
      %27 = vector.broadcast %26 : vector<1x128xf32> to vector<8x128xf32>
      %28 = arith.addf %25, %27 : vector<8x128xf32>
      %c0_23 = arith.constant 0 : index
      %c0_24 = arith.constant 0 : index
      %29 = vector.load %arg5[%c0_23, %c0_24] : memref<128x128xbf16, #tpu.memory_space<vmem>>, vector<128x128xbf16>
      %cst_25 = arith.constant dense<0.000000e+00> : vector<8x128xf32>
      %30 = tpu.matmul %23, %29, %cst_25 {dimension_numbers = #tpu.dot_dimension_numbers<[1], [0], [0], [1], [0, 0, 1, 1], [], []>} : vector<8x128xbf16>, vector<128x128xbf16>, vector<8x128xf32> -> vector<8x128xf32>
      %c0_26 = arith.constant 0 : index
      %c0_27 = arith.constant 0 : index
      %31 = vector.load %arg6[%c0_26, %c0_27] : memref<1x128xf32, #tpu.memory_space<vmem>>, vector<1x128xf32>
      %32 = vector.broadcast %31 : vector<1x128xf32> to vector<8x128xf32>
      %33 = arith.addf %30, %32 : vector<8x128xf32>
      %c0_28 = arith.constant 0 : index
      %c0_29 = arith.constant 0 : index
      %34 = vector.load %arg7[%c0_28, %c0_29] : memref<128x128xbf16, #tpu.memory_space<vmem>>, vector<128x128xbf16>
      %cst_30 = arith.constant dense<0.000000e+00> : vector<8x128xf32>
      %35 = tpu.matmul %23, %34, %cst_30 {dimension_numbers = #tpu.dot_dimension_numbers<[1], [0], [0], [1], [0, 0, 1, 1], [], []>} : vector<8x128xbf16>, vector<128x128xbf16>, vector<8x128xf32> -> vector<8x128xf32>
      %c0_31 = arith.constant 0 : index
      %c0_32 = arith.constant 0 : index
      %36 = vector.load %arg8[%c0_31, %c0_32] : memref<1x128xf32, #tpu.memory_space<vmem>>, vector<1x128xf32>
      %37 = vector.broadcast %36 : vector<1x128xf32> to vector<8x128xf32>
      %38 = arith.addf %35, %37 : vector<8x128xf32>
      %39 = vector.shape_cast %28 : vector<8x128xf32> to vector<1x8x128xf32>
      %40 = arith.truncf %39 : vector<1x8x128xf32> to vector<1x8x128xbf16>
      %41 = vector.shape_cast %33 : vector<8x128xf32> to vector<1x8x128xf32>
      %42 = arith.truncf %41 : vector<1x8x128xf32> to vector<1x8x128xbf16>
      %43 = vector.shape_cast %38 : vector<8x128xf32> to vector<1x8x128xf32>
      %44 = arith.truncf %43 : vector<1x8x128xf32> to vector<1x8x128xbf16>
      %c0_33 = arith.constant 0 : index
      %c0_34 = arith.constant 0 : index
      %45 = vector.load %arg9[%c0_33, %c0_34] : memref<128x128xbf16, #tpu.memory_space<vmem>>, vector<128x128xbf16>
      %cst_35 = arith.constant 0.000000e+00 : f32
      %46 = vector.broadcast %cst_35 : f32 to vector<8x128xf32>
      %47 = vector.extract_strided_slice %40 {offsets = [0, 0, 0], sizes = [1, 8, 64], strides = [1, 1, 1]} : vector<1x8x128xbf16> to vector<1x8x64xbf16>
      %48 = vector.extract_strided_slice %42 {offsets = [0, 0, 0], sizes = [1, 8, 64], strides = [1, 1, 1]} : vector<1x8x128xbf16> to vector<1x8x64xbf16>
      "tpu.trace_start"() <{level = 10 : i32, message = "bqd,bkd->bqk"}> : () -> ()
      %cst_36 = arith.constant dense<0.000000e+00> : vector<1x8x8xf32>
      %49 = tpu.matmul %47, %48, %cst_36 {dimension_numbers = #tpu.dot_dimension_numbers<[2], [2], [1], [1], [0, 0, 0, 1, 1, 1], [0], [0]>} : vector<1x8x64xbf16>, vector<1x8x64xbf16>, vector<1x8x8xf32> -> vector<1x8x8xf32>
      "tpu.trace_stop"() : () -> ()
      %cst_37 = arith.constant 1.250000e-01 : f32
      %50 = vector.broadcast %cst_37 : f32 to vector<1x8x8xf32>
      %51 = arith.mulf %49, %50 : vector<1x8x8xf32>
      %cst_38 = arith.constant dense<0xFF800000> : vector<1x8xf32>
      %52 = vector.multi_reduction <maximumf>, %51, %cst_38 [2] : vector<1x8x8xf32> to vector<1x8xf32>
      %53 = vector.shape_cast %52 : vector<1x8xf32> to vector<1x8x1xf32>
      %54 = vector.broadcast %53 : vector<1x8x1xf32> to vector<1x8x8xf32>
      %55 = arith.subf %51, %54 : vector<1x8x8xf32>
      %56 = math.exp %55 : vector<1x8x8xf32>
      %cst_39 = arith.constant dense<0.000000e+00> : vector<1x8xf32>
      %57 = vector.multi_reduction <add>, %56, %cst_39 [2] : vector<1x8x8xf32> to vector<1x8xf32>
      %58 = vector.shape_cast %57 : vector<1x8xf32> to vector<1x8x1xf32>
      %59 = tpu.reciprocal %58 {approx = true} : vector<1x8x1xf32> -> vector<1x8x1xf32>
      %60 = vector.broadcast %59 : vector<1x8x1xf32> to vector<1x8x8xf32>
      %61 = arith.mulf %56, %60 : vector<1x8x8xf32>
      %62 = arith.truncf %61 : vector<1x8x8xf32> to vector<1x8x8xbf16>
      %63 = vector.extract_strided_slice %44 {offsets = [0, 0, 0], sizes = [1, 8, 64], strides = [1, 1, 1]} : vector<1x8x128xbf16> to vector<1x8x64xbf16>
      "tpu.trace_start"() <{level = 10 : i32, message = "bqk,bkd->bqd"}> : () -> ()
      %cst_40 = arith.constant dense<0.000000e+00> : vector<1x8x64xf32>
      %64 = tpu.matmul %62, %63, %cst_40 {dimension_numbers = #tpu.dot_dimension_numbers<[2], [1], [1], [2], [0, 0, 0, 1, 1, 2], [0], [0]>} : vector<1x8x8xbf16>, vector<1x8x64xbf16>, vector<1x8x64xf32> -> vector<1x8x64xf32>
      "tpu.trace_stop"() : () -> ()
      %65 = vector.shape_cast %64 : vector<1x8x64xf32> to vector<8x64xf32>
      %66 = arith.truncf %65 : vector<8x64xf32> to vector<8x64xbf16>
      %67 = vector.extract_strided_slice %45 {offsets = [0, 0], sizes = [64, 128], strides = [1, 1]} : vector<128x128xbf16> to vector<64x128xbf16>
      %cst_41 = arith.constant dense<0.000000e+00> : vector<8x128xf32>
      %68 = tpu.matmul %66, %67, %cst_41 {dimension_numbers = #tpu.dot_dimension_numbers<[1], [0], [0], [1], [0, 0, 1, 1], [], []>} : vector<8x64xbf16>, vector<64x128xbf16>, vector<8x128xf32> -> vector<8x128xf32>
      %69 = arith.addf %46, %68 : vector<8x128xf32>
      %70 = vector.extract_strided_slice %40 {offsets = [0, 0, 64], sizes = [1, 8, 64], strides = [1, 1, 1]} : vector<1x8x128xbf16> to vector<1x8x64xbf16>
      %71 = vector.extract_strided_slice %42 {offsets = [0, 0, 64], sizes = [1, 8, 64], strides = [1, 1, 1]} : vector<1x8x128xbf16> to vector<1x8x64xbf16>
      "tpu.trace_start"() <{level = 10 : i32, message = "bqd,bkd->bqk"}> : () -> ()
      %cst_42 = arith.constant dense<0.000000e+00> : vector<1x8x8xf32>
      %72 = tpu.matmul %70, %71, %cst_42 {dimension_numbers = #tpu.dot_dimension_numbers<[2], [2], [1], [1], [0, 0, 0, 1, 1, 1], [0], [0]>} : vector<1x8x64xbf16>, vector<1x8x64xbf16>, vector<1x8x8xf32> -> vector<1x8x8xf32>
      "tpu.trace_stop"() : () -> ()
      %cst_43 = arith.constant 1.250000e-01 : f32
      %73 = vector.broadcast %cst_43 : f32 to vector<1x8x8xf32>
      %74 = arith.mulf %72, %73 : vector<1x8x8xf32>
      %cst_44 = arith.constant dense<0xFF800000> : vector<1x8xf32>
      %75 = vector.multi_reduction <maximumf>, %74, %cst_44 [2] : vector<1x8x8xf32> to vector<1x8xf32>
      %76 = vector.shape_cast %75 : vector<1x8xf32> to vector<1x8x1xf32>
      %77 = vector.broadcast %76 : vector<1x8x1xf32> to vector<1x8x8xf32>
      %78 = arith.subf %74, %77 : vector<1x8x8xf32>
      %79 = math.exp %78 : vector<1x8x8xf32>
      %cst_45 = arith.constant dense<0.000000e+00> : vector<1x8xf32>
      %80 = vector.multi_reduction <add>, %79, %cst_45 [2] : vector<1x8x8xf32> to vector<1x8xf32>
      %81 = vector.shape_cast %80 : vector<1x8xf32> to vector<1x8x1xf32>
      %82 = tpu.reciprocal %81 {approx = true} : vector<1x8x1xf32> -> vector<1x8x1xf32>
      %83 = vector.broadcast %82 : vector<1x8x1xf32> to vector<1x8x8xf32>
      %84 = arith.mulf %79, %83 : vector<1x8x8xf32>
      %85 = arith.truncf %84 : vector<1x8x8xf32> to vector<1x8x8xbf16>
      %86 = vector.extract_strided_slice %44 {offsets = [0, 0, 64], sizes = [1, 8, 64], strides = [1, 1, 1]} : vector<1x8x128xbf16> to vector<1x8x64xbf16>
      "tpu.trace_start"() <{level = 10 : i32, message = "bqk,bkd->bqd"}> : () -> ()
      %cst_46 = arith.constant dense<0.000000e+00> : vector<1x8x64xf32>
      %87 = tpu.matmul %85, %86, %cst_46 {dimension_numbers = #tpu.dot_dimension_numbers<[2], [1], [1], [2], [0, 0, 0, 1, 1, 2], [0], [0]>} : vector<1x8x8xbf16>, vector<1x8x64xbf16>, vector<1x8x64xf32> -> vector<1x8x64xf32>
      "tpu.trace_stop"() : () -> ()
      %88 = vector.shape_cast %87 : vector<1x8x64xf32> to vector<8x64xf32>
      %89 = arith.truncf %88 : vector<8x64xf32> to vector<8x64xbf16>
      %90 = vector.extract_strided_slice %45 {offsets = [64, 0], sizes = [64, 128], strides = [1, 1]} : vector<128x128xbf16> to vector<64x128xbf16>
      %cst_47 = arith.constant dense<0.000000e+00> : vector<8x128xf32>
      %91 = tpu.matmul %89, %90, %cst_47 {dimension_numbers = #tpu.dot_dimension_numbers<[1], [0], [0], [1], [0, 0, 1, 1], [], []>} : vector<8x64xbf16>, vector<64x128xbf16>, vector<8x128xf32> -> vector<8x128xf32>
      %92 = arith.addf %69, %91 : vector<8x128xf32>
      %c0_48 = arith.constant 0 : index
      %c0_49 = arith.constant 0 : index
      %93 = vector.load %arg10[%c0_48, %c0_49] : memref<1x128xf32, #tpu.memory_space<vmem>>, vector<1x128xf32>
      %94 = vector.broadcast %93 : vector<1x128xf32> to vector<8x128xf32>
      %95 = arith.addf %92, %94 : vector<8x128xf32>
      %96 = arith.addf %22, %95 : vector<8x128xf32>
      %c0_50 = arith.constant 0 : index
      %c0_51 = arith.constant 0 : index
      %97 = vector.load %arg15[%c0_50, %c0_51] : memref<1x128xf32, #tpu.memory_space<vmem>>, vector<1x128xf32>
      %c0_52 = arith.constant 0 : index
      %c0_53 = arith.constant 0 : index
      %98 = vector.load %arg16[%c0_52, %c0_53] : memref<1x128xf32, #tpu.memory_space<vmem>>, vector<1x128xf32>
      %cst_54 = arith.constant dense<0.000000e+00> : vector<8xf32>
      %99 = vector.multi_reduction <add>, %96, %cst_54 [1] : vector<8x128xf32> to vector<8xf32>
      %100 = vector.shape_cast %99 : vector<8xf32> to vector<8x1xf32>
      %cst_55 = arith.constant 1.280000e+02 : f32
      %101 = vector.broadcast %cst_55 : f32 to vector<8x1xf32>
      %102 = arith.divf %100, %101 : vector<8x1xf32>
      %103 = vector.broadcast %102 : vector<8x1xf32> to vector<8x128xf32>
      %104 = arith.subf %96, %103 : vector<8x128xf32>
      %105 = arith.mulf %104, %104 : vector<8x128xf32>
      %cst_56 = arith.constant dense<0.000000e+00> : vector<8xf32>
      %106 = vector.multi_reduction <add>, %105, %cst_56 [1] : vector<8x128xf32> to vector<8xf32>
      %107 = vector.shape_cast %106 : vector<8xf32> to vector<8x1xf32>
      %cst_57 = arith.constant 1.280000e+02 : f32
      %108 = vector.broadcast %cst_57 : f32 to vector<8x1xf32>
      %109 = arith.divf %107, %108 : vector<8x1xf32>
      %cst_58 = arith.constant 9.99999974E-6 : f32
      %110 = vector.broadcast %cst_58 : f32 to vector<8x1xf32>
      %111 = arith.addf %109, %110 : vector<8x1xf32>
      %112 = math.rsqrt %111 : vector<8x1xf32>
      %113 = vector.broadcast %112 : vector<8x1xf32> to vector<8x128xf32>
      %114 = arith.mulf %104, %113 : vector<8x128xf32>
      %115 = vector.broadcast %97 : vector<1x128xf32> to vector<8x128xf32>
      %116 = arith.mulf %114, %115 : vector<8x128xf32>
      %117 = vector.broadcast %98 : vector<1x128xf32> to vector<8x128xf32>
      %118 = arith.addf %116, %117 : vector<8x128xf32>
      %c0_59 = arith.constant 0 : index
      %c0_60 = arith.constant 0 : index
      %119 = vector.load %arg20[%c0_59, %c0_60] : memref<8x128xf32, #tpu.memory_space<vmem>>, vector<8x128xf32>
      tpu.vector_store %arg20[%c0_59, %c0_60], %118 {strides = array<i32>} : memref<8x128xf32, #tpu.memory_space<vmem>>, vector<8x128xf32>,
      %cst_61 = arith.constant 0.000000e+00 : f32
      %120 = vector.broadcast %cst_61 : f32 to vector<8x128xf32>
      %c0_62 = arith.constant 0 : index
      %c0_63 = arith.constant 0 : index
      %121 = vector.load %arg21[%c0_62, %c0_63] : memref<8x128xf32, #tpu.memory_space<vmem>>, vector<8x128xf32>
      tpu.vector_store %arg21[%c0_62, %c0_63], %120 {strides = array<i32>} : memref<8x128xf32, #tpu.memory_space<vmem>>, vector<8x128xf32>,
    } else {
    }
    %c0 = arith.constant 0 : index
    %c0_1 = arith.constant 0 : index
    %3 = vector.load %arg20[%c0, %c0_1] : memref<8x128xf32, #tpu.memory_space<vmem>>, vector<8x128xf32>
    %4 = arith.truncf %3 : vector<8x128xf32> to vector<8x128xbf16>
    %c0_2 = arith.constant 0 : index
    %c0_3 = arith.constant 0 : index
    %5 = vector.load %arg11[%c0_2, %c0_3] : memref<128x256xbf16, #tpu.memory_space<vmem>>, vector<128x256xbf16>
    %cst = arith.constant dense<0.000000e+00> : vector<8x256xf32>
    %6 = tpu.matmul %4, %5, %cst {dimension_numbers = #tpu.dot_dimension_numbers<[1], [0], [0], [1], [0, 0, 1, 1], [], []>} : vector<8x128xbf16>, vector<128x256xbf16>, vector<8x256xf32> -> vector<8x256xf32>
    %c0_4 = arith.constant 0 : index
    %c0_5 = arith.constant 0 : index
    %7 = vector.load %arg12[%c0_4, %c0_5] : memref<1x256xf32, #tpu.memory_space<vmem>>, vector<1x256xf32>
    %8 = vector.broadcast %7 : vector<1x256xf32> to vector<8x256xf32>
    %9 = arith.addf %6, %8 : vector<8x256xf32>
    %cst_6 = arith.constant 0.000000e+00 : f32
    %10 = vector.broadcast %cst_6 : f32 to vector<8x256xf32>
    %11 = arith.maximumf %9, %10 : vector<8x256xf32>
    %12 = arith.truncf %11 : vector<8x256xf32> to vector<8x256xbf16>
    %c0_7 = arith.constant 0 : index
    %c0_8 = arith.constant 0 : index
    %13 = vector.load %arg21[%c0_7, %c0_8] : memref<8x128xf32, #tpu.memory_space<vmem>>, vector<8x128xf32>
    %c0_9 = arith.constant 0 : index
    %c0_10 = arith.constant 0 : index
    %14 = vector.load %arg13[%c0_9, %c0_10] : memref<256x128xbf16, #tpu.memory_space<vmem>>, vector<256x128xbf16>
    %cst_11 = arith.constant dense<0.000000e+00> : vector<8x128xf32>
    %15 = tpu.matmul %12, %14, %cst_11 {dimension_numbers = #tpu.dot_dimension_numbers<[1], [0], [0], [1], [0, 0, 1, 1], [], []>} : vector<8x256xbf16>, vector<256x128xbf16>, vector<8x128xf32> -> vector<8x128xf32>
    %16 = arith.addf %13, %15 : vector<8x128xf32>
    %c0_12 = arith.constant 0 : index
    %c0_13 = arith.constant 0 : index
    %17 = vector.load %arg21[%c0_12, %c0_13] : memref<8x128xf32, #tpu.memory_space<vmem>>, vector<8x128xf32>
    tpu.vector_store %arg21[%c0_12, %c0_13], %16 {strides = array<i32>} : memref<8x128xf32, #tpu.memory_space<vmem>>, vector<8x128xf32>,
    %c1_i32 = arith.constant 1 : i32
    %18 = arith.cmpi eq, %arg1, %c1_i32 : i32
    %19 = arith.extui %18 : i1 to i32
    %c0_i32_14 = arith.constant 0 : i32
    %20 = arith.cmpi ne, %19, %c0_i32_14 : i32
    scf.if %20 {
      %c0_15 = arith.constant 0 : index
      %c0_16 = arith.constant 0 : index
      %21 = vector.load %arg20[%c0_15, %c0_16] : memref<8x128xf32, #tpu.memory_space<vmem>>, vector<8x128xf32>
      %c0_17 = arith.constant 0 : index
      %c0_18 = arith.constant 0 : index
      %22 = vector.load %arg21[%c0_17, %c0_18] : memref<8x128xf32, #tpu.memory_space<vmem>>, vector<8x128xf32>
      %23 = arith.addf %21, %22 : vector<8x128xf32>
      %c0_19 = arith.constant 0 : index
      %c0_20 = arith.constant 0 : index
      %24 = vector.load %arg14[%c0_19, %c0_20] : memref<1x128xf32, #tpu.memory_space<vmem>>, vector<1x128xf32>
      %25 = vector.broadcast %24 : vector<1x128xf32> to vector<8x128xf32>
      %26 = arith.addf %23, %25 : vector<8x128xf32>
      %c0_21 = arith.constant 0 : index
      %c0_22 = arith.constant 0 : index
      %27 = vector.load %arg17[%c0_21, %c0_22] : memref<1x128xf32, #tpu.memory_space<vmem>>, vector<1x128xf32>
      %c0_23 = arith.constant 0 : index
      %c0_24 = arith.constant 0 : index
      %28 = vector.load %arg18[%c0_23, %c0_24] : memref<1x128xf32, #tpu.memory_space<vmem>>, vector<1x128xf32>
      %cst_25 = arith.constant dense<0.000000e+00> : vector<8xf32>
      %29 = vector.multi_reduction <add>, %26, %cst_25 [1] : vector<8x128xf32> to vector<8xf32>
      %30 = vector.shape_cast %29 : vector<8xf32> to vector<8x1xf32>
      %cst_26 = arith.constant 1.280000e+02 : f32
      %31 = vector.broadcast %cst_26 : f32 to vector<8x1xf32>
      %32 = arith.divf %30, %31 : vector<8x1xf32>
      %33 = vector.broadcast %32 : vector<8x1xf32> to vector<8x128xf32>
      %34 = arith.subf %26, %33 : vector<8x128xf32>
      %35 = arith.mulf %34, %34 : vector<8x128xf32>
      %cst_27 = arith.constant dense<0.000000e+00> : vector<8xf32>
      %36 = vector.multi_reduction <add>, %35, %cst_27 [1] : vector<8x128xf32> to vector<8xf32>
      %37 = vector.shape_cast %36 : vector<8xf32> to vector<8x1xf32>
      %cst_28 = arith.constant 1.280000e+02 : f32
      %38 = vector.broadcast %cst_28 : f32 to vector<8x1xf32>
      %39 = arith.divf %37, %38 : vector<8x1xf32>
      %cst_29 = arith.constant 9.99999974E-6 : f32
      %40 = vector.broadcast %cst_29 : f32 to vector<8x1xf32>
      %41 = arith.addf %39, %40 : vector<8x1xf32>
      %42 = math.rsqrt %41 : vector<8x1xf32>
      %43 = vector.broadcast %42 : vector<8x1xf32> to vector<8x128xf32>
      %44 = arith.mulf %34, %43 : vector<8x128xf32>
      %45 = vector.broadcast %27 : vector<1x128xf32> to vector<8x128xf32>
      %46 = arith.mulf %44, %45 : vector<8x128xf32>
      %47 = vector.broadcast %28 : vector<1x128xf32> to vector<8x128xf32>
      %48 = arith.addf %46, %47 : vector<8x128xf32>
      %49 = vector.shape_cast %48 : vector<8x128xf32> to vector<1x8x128xf32>
      %c0_30 = arith.constant 0 : index
      %c0_31 = arith.constant 0 : index
      %c0_32 = arith.constant 0 : index
      %50 = vector.load %arg19[%c0_30, %c0_31, %c0_32] : memref<1x8x128xf32, #tpu.memory_space<vmem>>, vector<1x8x128xf32>
      tpu.vector_store %arg19[%c0_30, %c0_31, %c0_32], %49 {strides = array<i32>} : memref<1x8x128xf32, #tpu.memory_space<vmem>>, vector<1x8x128xf32>,
    } else {
    }
    return
  }
  func.func @transform_0(%arg0: i32, %arg1: i32) -> (i32, i32, i32) {
    %c0_i32 = arith.constant 0 : i32
    %c0_i32_0 = arith.constant 0 : i32
    %c0_i32_1 = arith.constant 0 : i32
    return %arg0, %c0_i32, %c0_i32_0 : i32, i32, i32
  }
  func.func @transform_1(%arg0: i32, %arg1: i32) -> (i32, i32) {
    %c0_i32 = arith.constant 0 : i32
    %c0_i32_0 = arith.constant 0 : i32
    %c0_i32_1 = arith.constant 0 : i32
    return %c0_i32, %c0_i32_0 : i32, i32
  }
  func.func @transform_2(%arg0: i32, %arg1: i32) -> (i32, i32) {
    %c0_i32 = arith.constant 0 : i32
    %c0_i32_0 = arith.constant 0 : i32
    %c0_i32_1 = arith.constant 0 : i32
    return %c0_i32, %c0_i32_0 : i32, i32
  }
  func.func @transform_3(%arg0: i32, %arg1: i32) -> (i32, i32) {
    %c0_i32 = arith.constant 0 : i32
    %c0_i32_0 = arith.constant 0 : i32
    %c0_i32_1 = arith.constant 0 : i32
    return %c0_i32, %c0_i32_0 : i32, i32
  }
  func.func @transform_4(%arg0: i32, %arg1: i32) -> (i32, i32) {
    %c0_i32 = arith.constant 0 : i32
    %c0_i32_0 = arith.constant 0 : i32
    %c0_i32_1 = arith.constant 0 : i32
    return %c0_i32, %c0_i32_0 : i32, i32
  }
  func.func @transform_5(%arg0: i32, %arg1: i32) -> (i32, i32) {
    %c0_i32 = arith.constant 0 : i32
    %c0_i32_0 = arith.constant 0 : i32
    %c0_i32_1 = arith.constant 0 : i32
    return %c0_i32, %c0_i32_0 : i32, i32
  }
  func.func @transform_6(%arg0: i32, %arg1: i32) -> (i32, i32) {
    %c0_i32 = arith.constant 0 : i32
    %c0_i32_0 = arith.constant 0 : i32
    %c0_i32_1 = arith.constant 0 : i32
    return %c0_i32, %c0_i32_0 : i32, i32
  }
  func.func @transform_7(%arg0: i32, %arg1: i32) -> (i32, i32) {
    %c0_i32 = arith.constant 0 : i32
    %c0_i32_0 = arith.constant 0 : i32
    %c0_i32_1 = arith.constant 0 : i32
    return %c0_i32, %c0_i32_0 : i32, i32
  }
  func.func @transform_8(%arg0: i32, %arg1: i32) -> (i32, i32) {
    %c0_i32 = arith.constant 0 : i32
    %c0_i32_0 = arith.constant 0 : i32
    %c0_i32_1 = arith.constant 0 : i32
    return %c0_i32, %c0_i32_0 : i32, i32
  }
  func.func @transform_9(%arg0: i32, %arg1: i32) -> (i32, i32) {
    %c0_i32 = arith.constant 0 : i32
    %c0_i32_0 = arith.constant 0 : i32
    return %c0_i32, %arg1 : i32, i32
  }
  func.func @transform_10(%arg0: i32, %arg1: i32) -> (i32, i32) {
    %c0_i32 = arith.constant 0 : i32
    %c0_i32_0 = arith.constant 0 : i32
    return %c0_i32, %arg1 : i32, i32
  }
  func.func @transform_11(%arg0: i32, %arg1: i32) -> (i32, i32) {
    %c0_i32 = arith.constant 0 : i32
    %c0_i32_0 = arith.constant 0 : i32
    return %arg1, %c0_i32 : i32, i32
  }
  func.func @transform_12(%arg0: i32, %arg1: i32) -> (i32, i32) {
    %c0_i32 = arith.constant 0 : i32
    %c0_i32_0 = arith.constant 0 : i32
    %c0_i32_1 = arith.constant 0 : i32
    return %c0_i32, %c0_i32_0 : i32, i32
  }
  func.func @transform_13(%arg0: i32, %arg1: i32) -> (i32, i32) {
    %c0_i32 = arith.constant 0 : i32
    %c0_i32_0 = arith.constant 0 : i32
    %c0_i32_1 = arith.constant 0 : i32
    return %c0_i32, %c0_i32_0 : i32, i32
  }
  func.func @transform_14(%arg0: i32, %arg1: i32) -> (i32, i32) {
    %c0_i32 = arith.constant 0 : i32
    %c0_i32_0 = arith.constant 0 : i32
    %c0_i32_1 = arith.constant 0 : i32
    return %c0_i32, %c0_i32_0 : i32, i32
  }
  func.func @transform_15(%arg0: i32, %arg1: i32) -> (i32, i32) {
    %c0_i32 = arith.constant 0 : i32
    %c0_i32_0 = arith.constant 0 : i32
    %c0_i32_1 = arith.constant 0 : i32
    return %c0_i32, %c0_i32_0 : i32, i32
  }
  func.func @transform_16(%arg0: i32, %arg1: i32) -> (i32, i32) {
    %c0_i32 = arith.constant 0 : i32
    %c0_i32_0 = arith.constant 0 : i32
    %c0_i32_1 = arith.constant 0 : i32
    return %c0_i32, %c0_i32_0 : i32, i32
  }
  func.func @transform_17(%arg0: i32, %arg1: i32) -> (i32, i32, i32) {
    %c0_i32 = arith.constant 0 : i32
    %c0_i32_0 = arith.constant 0 : i32
    %c0_i32_1 = arith.constant 0 : i32
    return %arg0, %c0_i32, %c0_i32_0 : i32, i32, i32
  }
}

module attributes {stable_mosaic.version = 11 : i64} {
  func.func @fc_kernel(%arg0: i32, %arg1: memref<16x128xf32, #tpu.memory_space<vmem>>, %arg2: memref<128x128xbf16, #tpu.memory_space<vmem>>, %arg3: memref<1x128xf32, #tpu.memory_space<vmem>>, %arg4: memref<16x128xf32, #tpu.memory_space<vmem>>) attributes {dimension_semantics = [#tpu.dimension_semantics<parallel>], iteration_bounds = array<i64: 1>, scalar_prefetch = 0 : i64, scratch_operands = 0 : i64, tpu.core_type = #tpu.core_type<tc>, window_params = [{transform_indices = @transform_0, window_bounds = array<i64: 16, 128>}, {pipeline_mode = #tpu.pipeline_mode<synchronous>, transform_indices = @transform_1, window_bounds = array<i64: 128, 128>}, {pipeline_mode = #tpu.pipeline_mode<synchronous>, transform_indices = @transform_2, window_bounds = array<i64: 1, 128>}, {transform_indices = @transform_3, window_bounds = array<i64: 16, 128>}]} {
    %c0 = arith.constant 0 : index
    %c0_0 = arith.constant 0 : index
    %0 = vector.load %arg1[%c0, %c0_0] : memref<16x128xf32, #tpu.memory_space<vmem>>, vector<16x128xf32>
    %1 = arith.truncf %0 : vector<16x128xf32> to vector<16x128xbf16>
    %c0_1 = arith.constant 0 : index
    %c0_2 = arith.constant 0 : index
    %2 = vector.load %arg2[%c0_1, %c0_2] : memref<128x128xbf16, #tpu.memory_space<vmem>>, vector<128x128xbf16>
    %cst = arith.constant dense<0.000000e+00> : vector<16x128xf32>
    %3 = tpu.matmul %1, %2, %cst {dimension_numbers = #tpu.dot_dimension_numbers<[1], [0], [0], [1], [0, 0, 1, 1], [], []>} : vector<16x128xbf16>, vector<128x128xbf16>, vector<16x128xf32> -> vector<16x128xf32>
    %c0_3 = arith.constant 0 : index
    %c0_4 = arith.constant 0 : index
    %4 = vector.load %arg3[%c0_3, %c0_4] : memref<1x128xf32, #tpu.memory_space<vmem>>, vector<1x128xf32>
    %5 = vector.broadcast %4 : vector<1x128xf32> to vector<16x128xf32>
    %6 = arith.addf %3, %5 : vector<16x128xf32>
    %c0_5 = arith.constant 0 : index
    %c0_6 = arith.constant 0 : index
    %7 = vector.load %arg4[%c0_5, %c0_6] : memref<16x128xf32, #tpu.memory_space<vmem>>, vector<16x128xf32>
    tpu.vector_store %arg4[%c0_5, %c0_6], %6 {strides = array<i32>} : memref<16x128xf32, #tpu.memory_space<vmem>>, vector<16x128xf32>,
    return
  }
  func.func @transform_0(%arg0: i32) -> (i32, i32) {
    %c0_i32 = arith.constant 0 : i32
    %c0_i32_0 = arith.constant 0 : i32
    return %arg0, %c0_i32 : i32, i32
  }
  func.func @transform_1(%arg0: i32) -> (i32, i32) {
    %c0_i32 = arith.constant 0 : i32
    %c0_i32_0 = arith.constant 0 : i32
    %c0_i32_1 = arith.constant 0 : i32
    return %c0_i32, %c0_i32_0 : i32, i32
  }
  func.func @transform_2(%arg0: i32) -> (i32, i32) {
    %c0_i32 = arith.constant 0 : i32
    %c0_i32_0 = arith.constant 0 : i32
    %c0_i32_1 = arith.constant 0 : i32
    return %c0_i32, %c0_i32_0 : i32, i32
  }
  func.func @transform_3(%arg0: i32) -> (i32, i32) {
    %c0_i32 = arith.constant 0 : i32
    %c0_i32_0 = arith.constant 0 : i32
    return %arg0, %c0_i32 : i32, i32
  }
}

</mosaic_0001>

<bundles_post_ra>
// kernel: chordnet_forward.7
= control target key start
LH: loop header
LB: loop body
LE: loop exit
PB: predicated region body
PF: predicated region fallthrough
CT: control target
= control target key end

     0   :  { %8 = vsyncpa [#allocation3], 0  ;;  %s424_s0 = inlined_call_operand.hbm [shape: f32[16,128], index: 0, kind: input, shape index: {}]   ;;  %s425_s1 = inlined_call_operand.hbm [shape: bf16[128,128], index: 1, kind: input, shape index: {}]   ;;  %s426_s2 = inlined_call_operand.hbm [shape: f32[1,128], index: 2, kind: input, shape index: {}]   ;;  %s427_s3 = inlined_call_operand.hbm [shape: f32[16,128], index: 3, kind: output, shape index: {}]  }
   0x1   :  { %9 = vsyncpa [#allocation6], 0 }
   0x2   :  { %10 = vsyncpa [#allocation4], 0  ;;  %s340_s12 = smov [#allocation5]   ;;  %s246_s16 = scalar_lea.hbm %s425_s1, 1024 }
   0x3   :  { %s28_s13 = sshll.u32 %s340_s12, 4  ;;  %p247_p0 = scmp.ne.s32.totalorder %s425_s1, %s246_s16  ;;  %s29_s13 = int_to_ptr.vmem [resolvable:$true] %s28_s13 }
   0x4   :  { %p250_p1 = scmp.lt.u32.totalorder %s246_s16, %s425_s1 }
   0x6   :  { %p252_p2 = pnand %p250_p1, %p247_p0 }
   0x8   :  { %255 = shalt.err (!%p252_p2)
}
   0x9   :  { %s256_s21 = scalar_lea.vmem %s29_s13, 1024  ;;  %p261_p4 = scmp.lt.s32.totalorder %s29_s13, %s29_s13 }
   0xa   :  { %p257_p3 = scmp.ne.s32.totalorder %s29_s13, %s256_s21  ;;  %p262_p5 = scmp.lt.s32.totalorder %s256_s21, %s256_s21 }
   0xc   :  { %p263_p6 = por %p262_p5, %p261_p4 }
   0xe   :  { %p264_p7 = pnand %p263_p6, %p257_p3 }
  0x10   :  { %267 = shalt.err (!%p264_p7)
}
  0x11   :  { %s341_s22 = smov 64   ;;  %s342_s23 = smov 4  }
  0x12   :  { %34 = dma.hbm_to_vmem [thread:$0]  %s425_s1, 1024, %s29_s13, [#allocation6], %s341_s22, %s341_s22, %s342_s23  }
  0x13   :  { %s343_s26 = smov [#allocation2]   ;;  %s268_s30 = scalar_lea.hbm %s424_s0, 256 }
  0x14   :  { %s16_s27 = sshll.u32 %s343_s26, 4  ;;  %p269_p8 = scmp.ne.s32.totalorder %s424_s0, %s268_s30  ;;  %s17_s27 = int_to_ptr.vmem [resolvable:$true] %s16_s27 }
  0x15   :  { %p272_p9 = scmp.lt.u32.totalorder %s268_s30, %s424_s0 }
  0x17   :  { %p274_p10 = pnand %p272_p9, %p269_p8 }
  0x19   :  { %277 = shalt.err (!%p274_p10)
}
  0x1a   :  { %s278_s8 = scalar_lea.vmem %s17_s27, 256  ;;  %p283_p12 = scmp.lt.s32.totalorder %s17_s27, %s17_s27 }
  0x1b   :  { %p279_p11 = scmp.ne.s32.totalorder %s17_s27, %s278_s8  ;;  %p284_p13 = scmp.lt.s32.totalorder %s278_s8, %s278_s8 }
  0x1d   :  { %p285_p0 = por %p284_p13, %p283_p12 }
  0x1f   :  { %p286_p1 = pnand %p285_p0, %p279_p11 }
  0x21   :  { %289 = shalt.err (!%p286_p1)
}
  0x22   :  { %s344_s1 = smov 128   ;;  %s345_s9 = smov 8  }
  0x23   :  { %22 = dma.hbm_to_vmem [thread:$0]  %s424_s0, 256, %s17_s27, [#allocation3], %s344_s1, %s344_s1, %s345_s9  }
  0x24   :  { %s346_s12 = smov [#allocation7]   ;;  %s290_s16 = scalar_lea.hbm %s426_s2, 16 }
  0x25   :  { %s41_s13 = sshll.u32 %s346_s12, 4  ;;  %p291_p2 = scmp.ne.s32.totalorder %s426_s2, %s290_s16  ;;  %s42_s13 = int_to_ptr.vmem [resolvable:$true] %s41_s13 }
  0x26   :  { %p294_p3 = scmp.lt.u32.totalorder %s290_s16, %s426_s2 }
  0x28   :  { %p296_p4 = pnand %p294_p3, %p291_p2 }
  0x2a   :  { %299 = shalt.err (!%p296_p4)
}
  0x2b   :  { %s300_s21 = scalar_lea.vmem %s42_s13, 16  ;;  %s304_s0 = scalar_lea.vmem %s42_s13, 32 }
  0x2c   :  { %p301_p5 = scmp.ne.s32.totalorder %s42_s13, %s300_s21  ;;  %p305_p6 = scmp.lt.s32.totalorder %s42_s13, %s42_s13 }
  0x2d   :  { %p306_p7 = scmp.lt.s32.totalorder %s304_s0, %s300_s21 }
  0x2f   :  { %p307_p8 = por %p306_p7, %p305_p6 }
  0x31   :  { %p308_p9 = pnand %p307_p8, %p301_p5 }
  0x33   :  { %311 = shalt.err (!%p308_p9)
}
  0x34   :  { %44 = dma.hbm_to_vmem [thread:$0]  %s426_s2, 16, %s42_s13, [#allocation6]  }
  0x35   :  { %334 = dma.done.wait [#allocation3], 256  }
  0x36   :  { %335 = vsyncadd [#allocation3], 4294967040 }
  0x37   :  { %336 = dma.done.wait [#allocation6], 1040  }
  0x38   :  { %337 = vsyncadd [#allocation6], 4294966256  ;;  %v347_v0 = vmov 0.0   ;;  %vm348_vm0 = vmmov 0   ;;  %v238_v1 = vld [vmem:[#allocation5] sm:$0xff]   ;;  %v239_v2 = vld [vmem:[#allocation5 + $0x8] sm:$0xff]  }
  0x39   :  { %208 = vmatprep.subr.bf16.mxu0 %v347_v0  ;;  %224 = vmatprep.mubr.msk.bf16.mxu0 %vm348_vm0, %v347_v0  ;;  %v240_v3 = vld [vmem:[#allocation5 + $0x10] sm:$0xff]   ;;  %v241_v4 = vld [vmem:[#allocation5 + $0x18] sm:$0xff]   ;;  %v242_v5 = vld [vmem:[#allocation5 + $0x20] sm:$0xff]   ;;  %s349_s2 = smov [#allocation8]  }
  0x3a   :  { %209 = vmatpush3.bf16.msra.mxu0 %v238_v1  ;;  %v243_v6 = vld [vmem:[#allocation5 + $0x28] sm:$0xff]   ;;  %v244_v7 = vld [vmem:[#allocation5 + $0x30] sm:$0xff]   ;;  %v245_v8 = vld [vmem:[#allocation5 + $0x38] sm:$0xff]   ;;  %s177_s24 = sshll.u32 %s349_s2, 4  ;;  %s178_s24 = int_to_ptr.vmem [resolvable:$true] %s177_s24 }
  0x3b   :  { %210 = vmatprep.subr.bf16.mxu0 %v347_v0  ;;  %v55_v9 = vld [vmem:[#allocation2] sm:$0xff]  ;;  %v56_v10 = vld [vmem:[#allocation2 + $0x8] sm:$0xff]  ;;  %v190_v12 = vld [vmem:[#allocation7] ss:$0 sm:$0xff]  ;;  %s312_s25 = scalar_lea.vmem %s178_s24, 256  ;;  %p317_p11 = scmp.lt.s32.totalorder %s178_s24, %s178_s24 }
  0x3c   :  { %v57_v11 = vpack.c.bf16 %v56_v10, %v55_v9  ;;  %p313_p10 = scmp.ne.s32.totalorder %s178_s24, %s312_s25  ;;  %p318_p12 = scmp.lt.s32.totalorder %s312_s25, %s312_s25 }
  0x3e   :  { %211 = vmatpush3.bf16.msra.mxu0 %v239_v2  ;;  %p319_p13 = por %p318_p12, %p317_p11 }
  0x3f   :  { %212 = vmatprep.subr.bf16.mxu0 %v347_v0 }
  0x40   :  { %p320_p0 = pnand %p319_p13, %p313_p10 }
  0x42   :  { %213 = vmatpush3.bf16.msra.mxu0 %v240_v3 }
  0x43   :  { %214 = vmatprep.subr.bf16.mxu0 %v347_v0 }
  0x46   :  { %215 = vmatpush3.bf16.msra.mxu0 %v241_v4 }
  0x47   :  { %216 = vmatprep.subr.bf16.mxu0 %v347_v0 }
  0x4a   :  { %217 = vmatpush3.bf16.msra.mxu0 %v242_v5 }
  0x4b   :  { %218 = vmatprep.subr.bf16.mxu0 %v347_v0 }
  0x4e   :  { %219 = vmatpush3.bf16.msra.mxu0 %v243_v6 }
  0x4f   :  { %220 = vmatprep.subr.bf16.mxu0 %v347_v0 }
  0x52   :  { %221 = vmatpush3.bf16.msra.mxu0 %v244_v7 }
  0x53   :  { %222 = vmatprep.subr.bf16.mxu0 %v347_v0 }
  0x56   :  { %223 = vmatpush3.bf16.msra.mxu0 %v245_v8 }
  0x59   :  { %225 = vmatmul.mubr.bf16.vlgmr.msra.gmra.mrb[0].mxu0 %v57_v11 }
 0x12c   :  { %v163_v13 = vpop.f32.mrb[0].mxu0 }
 0x12d   :  { %v164_v14 = vadd.f32 %v190_v12, %v163_v13  ;;  %v226_v15 = vpop.f32.mrb[1].mxu0 }
 0x12e   :  { %v166_v16 = vpop.f32.mrb[2].mxu0 }
 0x12f   :  { %170 = vst [vmem:[#allocation8] sm:$0xff] %v164_v14  ;;  %v167_v17 = vadd.f32 %v190_v12, %v166_v16  ;;  %v227_v18 = vpop.f32.mrb[3].mxu0 }
 0x131   :  { %171 = vst [vmem:[#allocation8 + $0x8] sm:$0xff] %v167_v17 }
 0x132   :  { %323 = shalt.err (!%p320_p0)
}
 0x133   :  { %s324_s28 = scalar_lea.hbm %s427_s3, 256 }
 0x134   :  { %p325_p1 = scmp.ne.s32.totalorder %s427_s3, %s324_s28  ;;  %p328_p2 = scmp.lt.u32.totalorder %s324_s28, %s427_s3 }
 0x136   :  { %p330_p3 = pnand %p328_p2, %p325_p1 }
 0x138   :  { %333 = shalt.err (!%p330_p3)
}
 0x139   :  { %183 = dma.vmem_to_hbm [thread:$0]  %s178_s24, 256, %s427_s3, [#allocation4], %s344_s1, %s344_s1, %s345_s9  }
 0x13a   :  { %338 = dma.done.wait [#allocation4], 256  }
 0x13b   :  { %339 = vsyncadd [#allocation4], 4294967040 }
 0x13c   :  { %187 = vsyncpa [#allocation3], 1 }
 0x13d   :  { %188 = vsyncpa [#allocation6], 1 }
 0x13e   :  { %189 = vsyncpa [#allocation4], 1 }

// kernel: chordnet_forward.5
= control target key start
LH: loop header
LB: loop body
LE: loop exit
PB: predicated region body
PF: predicated region fallthrough
CT: control target
= control target key end

     0   :  { %s4521_s0 = inlined_call_operand.hbm [shape: f32[2,8,128], index: 0, kind: input, shape index: {}]   ;;  %s4522_s1 = inlined_call_operand.hbm [shape: bf16[128,128], index: 1, kind: input, shape index: {}]   ;;  %s4523_s2 = inlined_call_operand.hbm [shape: f32[1,128], index: 2, kind: input, shape index: {}]   ;;  %s4524_s3 = inlined_call_operand.hbm [shape: bf16[128,128], index: 3, kind: input, shape index: {}]   ;;  %s4525_s4 = inlined_call_operand.hbm [shape: f32[1,128], index: 4, kind: input, shape index: {}]   ;;  %s4526_s5 = inlined_call_operand.hbm [shape: bf16[128,128], index: 5, kind: input, shape index: {}]   ;;  %s4527_s6 = inlined_call_operand.hbm [shape: f32[1,128], index: 6, kind: input, shape index: {}]   ;;  %s4528_s7 = inlined_call_operand.hbm [shape: bf16[128,128], index: 7, kind: input, shape index: {}]   ;;  %s4529_s8 = inlined_call_operand.hbm [shape: f32[1,128], index: 8, kind: input, shape index: {}]   ;;  %s4530_s9 = inlined_call_operand.hbm [shape: bf16[128,512], index: 9, kind: input, shape index: {}]   ;;  %s4531_s10 = inlined_call_operand.hbm [shape: f32[1,512], index: 10, kind: input, shape index: {}]   ;;  %s4532_s11 = inlined_call_operand.hbm [shape: bf16[512,128], index: 11, kind: input, shape index: {}]   ;;  %s4533_s12 = inlined_call_operand.hbm [shape: f32[1,128], index: 12, kind: input, shape index: {}]   ;;  %s4534_s13 = inlined_call_operand.hbm [shape: f32[1,128], index: 13, kind: input, shape index: {}]   ;;  %s4535_s14 = inlined_call_operand.hbm [shape: f32[1,128], index: 14, kind: input, shape index: {}]   ;;  %s4536_s15 = inlined_call_operand.hbm [shape: f32[1,128], index: 15, kind: input, shape index: {}]   ;;  %s4537_s16 = inlined_call_operand.hbm [shape: f32[1,128], index: 16, kind: input, shape index: {}]   ;;  %s4538_s17 = inlined_call_operand.hbm [shape: f32[2,8,128], index: 17, kind: output, shape index: {}]  }
   0x1   :  { %4582 = sst [smem:[#allocation53_spill]] %s4521_s0 }
   0x2   :  { %4583 = sst [smem:[#allocation54_spill]] %s4522_s1 }
   0x3   :  { %4584 = sst [smem:[#allocation55_spill]] %s4523_s2 }
   0x4   :  { %4585 = sst [smem:[#allocation56_spill]] %s4524_s3 }
   0x5   :  { %4586 = sst [smem:[#allocation57_spill]] %s4525_s4 }
   0x6   :  { %4587 = sst [smem:[#allocation58_spill]] %s4526_s5 }
   0x7   :  { %4588 = sst [smem:[#allocation59_spill]] %s4527_s6 }
   0x8   :  { %4589 = sst [smem:[#allocation60_spill]] %s4528_s7 }
   0x9   :  { %4590 = sst [smem:[#allocation61_spill]] %s4529_s8 }
   0xa   :  { %4591 = sst [smem:[#allocation62_spill]] %s4530_s9 }
   0xb   :  { %4592 = sst [smem:[#allocation63_spill]] %s4531_s10 }
   0xc   :  { %4593 = sst [smem:[#allocation64_spill]] %s4532_s11 }
   0xd   :  { %4594 = sst [smem:[#allocation65_spill]] %s4533_s12 }
   0xe   :  { %4595 = sst [smem:[#allocation66_spill]] %s4534_s13 }
   0xf   :  { %4596 = sst [smem:[#allocation67_spill]] %s4535_s14 }
  0x10   :  { %4597 = sst [smem:[#allocation68_spill]] %s4536_s15 }
  0x11   :  { %4598 = sst [smem:[#allocation69_spill]] %s4537_s16 }
  0x12   :  { %4599 = sst [smem:[#allocation70_spill]] %s4538_s17 }
  0x13   :  { %22 = vsyncpa [#allocation5], 0 }
  0x14   :  { %24 = vsyncpa [#allocation5 + $0x1], 0 }
  0x15   :  { %25 = vsyncpa [#allocation8], 0 }
  0x16   :  { %26 = vsyncpa [#allocation11], 0 }
  0x17   :  { %27 = vsyncpa [#allocation14], 0 }
  0x18   :  { %28 = vsyncpa [#allocation17], 0 }
  0x19   :  { %29 = vsyncpa [#allocation20], 0 }
  0x1a   :  { %31 = vsyncpa [#allocation20 + $0x1], 0 }
  0x1b   :  { %32 = vsyncpa [#allocation23], 0 }
  0x1c   :  { %34 = vsyncpa [#allocation23 + $0x1], 0 }
  0x1d   :  { %35 = vsyncpa [#allocation26], 0 }
  0x1e   :  { %36 = vsyncpa [#allocation29], 0 }
  0x1f   :  { %37 = vsyncpa [#allocation6], 0 }
  0x20   :  { %39 = vsyncpa [#allocation6 + $0x1], 0  ;;  %s3686_s24 = smov 0   ;;  %s3688_s25 = smov 0  }
  0x21   :  { %s3690_s26 = smov 0   ;;  %s3692_s27 = smov 0  }
  0x22   :  { %s3694_s28 = smov 0   ;;  %s3696_s29 = smov 0  }
  0x23   :  { %s3698_s0 = smov 0   ;;  %s3700_s30 = smov 0  }
  0x24   :  { %s3702_s18 = smov 0   ;;  %s3704_s19 = smov 0  }
  0x25   :  { %s3706_s1 = smov 0  }
  0x26 LB: > { %4600 = sst [smem:[#allocation43_spill]] %s3539_s27  ;;  %s3742_s20 = sadd.s32 4294967295, %s3567_s1   ;;  %s3567_s1 = sphi %s3706_s1, %s45_s1   ;;  %s3563_s19 = sphi %s3704_s19, %s4688_s19   ;;  %s3559_s18 = sphi %s3702_s18, %s4693_s18   ;;  %s3555_s30 = sphi %s3700_s30, %s4686_s30   ;;  %s3551_s0 = sphi %s3698_s0, %s4692_s0   ;;  %s3547_s29 = sphi %s3696_s29, %s4685_s29   ;;  %s3543_s28 = sphi %s3694_s28, %s4684_s28   ;;  %s3539_s27 = sphi %s3692_s27, %s4683_s27   ;;  %s3535_s26 = sphi %s3690_s26, %s4691_s26   ;;  %s3531_s25 = sphi %s3688_s25, %s4690_s25   ;;  %s3527_s24 = sphi %s3686_s24, %s4689_s24  }
  0x27   : > { %4601 = sst [smem:[#allocation44_spill]] %s3543_s28  ;;  %p2276_p0 = scmp.ge.s32.totalorder %s3567_s1, 1 }
  0x28   : > { %4602 = sst [smem:[#allocation45_spill]] %s3547_s29  ;;  %p4554_p1 = scmp.eq.s32.totalorder %s3742_s20, 0 }
  0x29   : > { %4603 = sst [smem:[#allocation46_spill]] %s3551_s0  ;;  %p465_p2 = scmp.lt.s32.totalorder %s3567_s1, 5 }
  0x2a   : > { %4604 = sst [smem:[#allocation47_spill]] %s3555_s30  ;;  %s3569_s22 = smov [#allocation7]  }
  0x2b   : > { %4605 = sst [smem:[#allocation48_spill]] %s3563_s19  ;;  %p3747_p3 = pnand %p2276_p0, %p465_p2 }
  0x2c   : > { %s477_s23 = sshll.u32 %s3569_s22, 4  ;;  %s3570_s30 = smov [#allocation10]   ;;  %s3751_s23 = int_to_ptr.vmem [resolvable:$true] %s477_s23 }
  0x2d   : > { %s4606_s21 = scalar_select %p3747_p3, 1, 0 }
  0x2e   : > { %p2646_p4 = pneg %p3747_p3  ;;  %s501_s0 = sshll.u32 %s3570_s30, 4  ;;  %s3761_s0 = int_to_ptr.vmem [resolvable:$true] %s501_s0 }
  0x2f   : > { %4607 = sst [smem:[#allocation49_spill]] %s4606_s21  ;;  %s3571_s11 = smov [#allocation13]  }
  0x30   : > { %p3757_p5 = pnand %p2646_p4, %p4554_p1  ;;  %s3763_s10 = sshll.u32 %s3571_s11, 4  ;;  %s526_s10 = int_to_ptr.vmem [resolvable:$true] %s3763_s10 }
  0x31   : > { %s4609_s22 = sld [smem:[#allocation54_spill]] }
  0x32   : > { %s4608_s17 = scalar_select %p3757_p5, 1, 0 }
  0x33   : > { %p3773_p7 = pneg %p3757_p5 }
  0x35   : > { %s4610_s16 = scalar_select %p3773_p7, 1, 0 }
  0x37   : > { %s2925_s29 = scalar_lea.hbm %s4609_s22, 1024 }
  0x38   : > { %p2926_p6 = scmp.ne.s32.totalorder %s4609_s22, %s2925_s29  ;;  %p2932_p10 = scmp.lt.u32.totalorder %s2925_s29, %s4609_s22 }
  0x3a   : > { %p2928_p8 = pnand %p3773_p7, %p2926_p6 }
  0x3c   : > { %p2929_p9 = pneg %p2928_p8 }
  0x3e   : > { %p2934_p11 = pnand %p2932_p10, %p2929_p9 }
  0x40   : > { %2937 = shalt.err (!%p2934_p11)
}
  0x41   : > { %s2938_s27 = scalar_lea.vmem %s3751_s23, 1024  ;;  %p2946_p2 = scmp.lt.s32.totalorder %s3751_s23, %s3751_s23 }
  0x42   : > { %p2939_p12 = scmp.ne.s32.totalorder %s3751_s23, %s2938_s27  ;;  %p2947_p4 = scmp.lt.s32.totalorder %s2938_s27, %s2938_s27 }
  0x44   : > { %p2941_p13 = pnand %p2939_p12, %p3773_p7  ;;  %p2948_p6 = por %p2947_p4, %p2946_p2 }
  0x46   : > { %p2942_p0 = pneg %p2941_p13 }
  0x48   : > { %p2949_p8 = pnand %p2948_p6, %p2942_p0 }
  0x4a   : > { %2952 = shalt.err (!%p2949_p8)
}
  0x4b   : > { %s4556_s28 = smov 64   ;;  %s4557_s29 = smov 4  }
  0x4c   : > { %2649 = dma.hbm_to_vmem [thread:$0]  (!%p3757_p5), %s4609_s22, 1024, %s3751_s23, [#allocation8], %s4556_s28, %s4556_s28, %s4557_s29  }
  0x4d   : > { %s4611_s3 = sld [smem:[#allocation56_spill]] }
  0x53   : > { %s2953_s27 = scalar_lea.hbm %s4611_s3, 1024 }
  0x54   : > { %p2954_p9 = scmp.ne.s32.totalorder %s4611_s3, %s2953_s27  ;;  %p2960_p12 = scmp.lt.u32.totalorder %s2953_s27, %s4611_s3 }
  0x56   : > { %p2956_p10 = pnand %p2954_p9, %p3773_p7 }
  0x58   : > { %p2957_p11 = pneg %p2956_p10 }
  0x5a   : > { %p2962_p13 = pnand %p2960_p12, %p2957_p11 }
  0x5c   : > { %2965 = shalt.err (!%p2962_p13)
}
  0x5d   : > { %s2966_s23 = scalar_lea.vmem %s3761_s0, 1024  ;;  %p2974_p6 = scmp.lt.s32.totalorder %s3761_s0, %s3761_s0 }
  0x5e   : > { %p2967_p0 = scmp.ne.s32.totalorder %s3761_s0, %s2966_s23  ;;  %p2975_p8 = scmp.lt.s32.totalorder %s2966_s23, %s2966_s23 }
  0x60   : > { %p2969_p2 = pnand %p2967_p0, %p3773_p7  ;;  %p2976_p9 = por %p2975_p8, %p2974_p6 }
  0x62   : > { %p2970_p4 = pneg %p2969_p2 }
  0x64   : > { %p2977_p10 = pnand %p2976_p9, %p2970_p4 }
  0x66   : > { %2980 = shalt.err (!%p2977_p10)
}
  0x67   : > { %2655 = dma.hbm_to_vmem [thread:$0]  (!%p3757_p5), %s4611_s3, 1024, %s3761_s0, [#allocation11], %s4556_s28, %s4556_s28, %s4557_s29  }
  0x68   : > { %s4612_s5 = sld [smem:[#allocation58_spill]] }
  0x6e   : > { %s2981_s19 = scalar_lea.hbm %s4612_s5, 1024 }
  0x6f   : > { %p2982_p11 = scmp.ne.s32.totalorder %s4612_s5, %s2981_s19  ;;  %p2988_p0 = scmp.lt.u32.totalorder %s2981_s19, %s4612_s5 }
  0x71   : > { %p2984_p12 = pnand %p2982_p11, %p3773_p7 }
  0x73   : > { %p2985_p13 = pneg %p2984_p12 }
  0x75   : > { %p2990_p2 = pnand %p2988_p0, %p2985_p13 }
  0x77   : > { %2993 = shalt.err (!%p2990_p2)
}
  0x78   : > { %s2994_s23 = scalar_lea.vmem %s526_s10, 1024  ;;  %p3002_p9 = scmp.lt.s32.totalorder %s526_s10, %s526_s10 }
  0x79   : > { %p2995_p4 = scmp.ne.s32.totalorder %s526_s10, %s2994_s23  ;;  %p3003_p10 = scmp.lt.s32.totalorder %s2994_s23, %s2994_s23 }
  0x7b   : > { %p2997_p6 = pnand %p2995_p4, %p3773_p7  ;;  %p3004_p1 = por %p3003_p10, %p3002_p9 }
  0x7d   : > { %p2998_p8 = pneg %p2997_p6 }
  0x7f   : > { %p3005_p3 = pnand %p3004_p1, %p2998_p8 }
  0x81   : > { %3008 = shalt.err (!%p3005_p3)
}
  0x82   : > { %2661 = dma.hbm_to_vmem [thread:$0]  (!%p3757_p5), %s4612_s5, 1024, %s526_s10, [#allocation14], %s4556_s28, %s4556_s28, %s4557_s29  }
  0x83   : > { %s3574_s6 = smov [#allocation16]   ;;  %s3575_s14 = smov [#allocation24]  }
  0x84   : > { %s549_s8 = sshll.u32 %s3574_s6, 4  ;;  %s574_s19 = sshll.u32 %s3575_s14, 4  ;;  %s550_s8 = int_to_ptr.vmem [resolvable:$true] %s549_s8  ;;  %s575_s19 = int_to_ptr.vmem [resolvable:$true] %s574_s19 }
  0x85   : > { %s4613_s7 = sld [smem:[#allocation60_spill]] }
  0x8b   : > { %s3009_s11 = scalar_lea.hbm %s4613_s7, 1024 }
  0x8c   : > { %p3010_p1 = scmp.ne.s32.totalorder %s4613_s7, %s3009_s11  ;;  %p3016_p12 = scmp.lt.u32.totalorder %s3009_s11, %s4613_s7 }
  0x8e   : > { %p3012_p3 = pnand %p3010_p1, %p3773_p7 }
  0x90   : > { %p3013_p11 = pneg %p3012_p3 }
  0x92   : > { %p3018_p13 = pnand %p3016_p12, %p3013_p11 }
  0x94   : > { %3021 = shalt.err (!%p3018_p13)
}
  0x95   : > { %s3022_s10 = scalar_lea.vmem %s550_s8, 1024  ;;  %p3030_p6 = scmp.lt.s32.totalorder %s550_s8, %s550_s8 }
  0x96   : > { %p3023_p0 = scmp.ne.s32.totalorder %s550_s8, %s3022_s10  ;;  %p3031_p8 = scmp.lt.s32.totalorder %s3022_s10, %s3022_s10 }
  0x98   : > { %p3025_p2 = pnand %p3023_p0, %p3773_p7  ;;  %p3032_p9 = por %p3031_p8, %p3030_p6 }
  0x9a   : > { %p3026_p4 = pneg %p3025_p2 }
  0x9c   : > { %p3033_p10 = pnand %p3032_p9, %p3026_p4 }
  0x9e   : > { %3036 = shalt.err (!%p3033_p10)
}
  0x9f   : > { %2667 = dma.hbm_to_vmem [thread:$0]  (!%p3757_p5), %s4613_s7, 1024, %s550_s8, [#allocation17], %s4556_s28, %s4556_s28, %s4557_s29  }
  0xa0   : > { %s4614_s12 = sld [smem:[#allocation65_spill]] }
  0xa6   : > { %s3037_s21 = scalar_lea.hbm %s4614_s12, 16 }
  0xa7   : > { %p3038_p1 = scmp.ne.s32.totalorder %s4614_s12, %s3037_s21  ;;  %p3044_p12 = scmp.lt.u32.totalorder %s3037_s21, %s4614_s12 }
  0xa9   : > { %p3040_p3 = pnand %p3038_p1, %p3773_p7 }
  0xab   : > { %p3041_p11 = pneg %p3040_p3 }
  0xad   : > { %p3046_p13 = pnand %p3044_p12, %p3041_p11 }
  0xaf   : > { %3049 = shalt.err (!%p3046_p13)
}
  0xb0   : > { %s3050_s0 = scalar_lea.vmem %s575_s19, 16  ;;  %s3057_s8 = scalar_lea.vmem %s575_s19, 32 }
  0xb1   : > { %p3051_p0 = scmp.ne.s32.totalorder %s575_s19, %s3050_s0  ;;  %p3058_p6 = scmp.lt.s32.totalorder %s575_s19, %s575_s19 }
  0xb2   : > { %p3059_p8 = scmp.lt.s32.totalorder %s3057_s8, %s3050_s0 }
  0xb3   : > { %p3053_p2 = pnand %p3051_p0, %p3773_p7 }
  0xb4   : > { %p3060_p9 = por %p3059_p8, %p3058_p6 }
  0xb5   : > { %p3054_p4 = pneg %p3053_p2 }
  0xb7   : > { %p3061_p10 = pnand %p3060_p9, %p3054_p4 }
  0xb9   : > { %3064 = shalt.err (!%p3061_p10)
}
  0xba   : > { %2673 = dma.hbm_to_vmem [thread:$0]  (!%p3757_p5), %s4614_s12, 16, %s575_s19, [#allocation23]  }
  0xbb   : > { %s3576_s4 = smov [#allocation25]   ;;  %s3577_s14 = smov [#allocation28]  }
  0xbc   : > { %s585_s6 = sshll.u32 %s3576_s4, 4  ;;  %s607_s21 = sshll.u32 %s3577_s14, 4  ;;  %s586_s6 = int_to_ptr.vmem [resolvable:$true] %s585_s6  ;;  %s608_s21 = int_to_ptr.vmem [resolvable:$true] %s607_s21 }
  0xbd   : > { %s4615_s13 = sld [smem:[#allocation66_spill]] }
  0xc3   : > { %s3065_s27 = scalar_lea.hbm %s4615_s13, 16 }
  0xc4   : > { %p3066_p1 = scmp.ne.s32.totalorder %s4615_s13, %s3065_s27  ;;  %p3072_p12 = scmp.lt.u32.totalorder %s3065_s27, %s4615_s13 }
  0xc6   : > { %p3068_p3 = pnand %p3066_p1, %p3773_p7 }
  0xc8   : > { %p3069_p11 = pneg %p3068_p3 }
  0xca   : > { %p3074_p13 = pnand %p3072_p12, %p3069_p11 }
  0xcc   : > { %3077 = shalt.err (!%p3074_p13)
}
  0xcd   : > { %s3078_s19 = scalar_lea.vmem %s586_s6, 16  ;;  %s3085_s3 = scalar_lea.vmem %s586_s6, 32 }
  0xce   : > { %p3079_p0 = scmp.ne.s32.totalorder %s586_s6, %s3078_s19  ;;  %p3086_p6 = scmp.lt.s32.totalorder %s586_s6, %s586_s6 }
  0xcf   : > { %p3087_p8 = scmp.lt.s32.totalorder %s3085_s3, %s3078_s19 }
  0xd0   : > { %p3081_p2 = pnand %p3079_p0, %p3773_p7 }
  0xd1   : > { %p3088_p9 = por %p3087_p8, %p3086_p6 }
  0xd2   : > { %p3082_p4 = pneg %p3081_p2 }
  0xd4   : > { %p3089_p10 = pnand %p3088_p9, %p3082_p4 }
  0xd6   : > { %3092 = shalt.err (!%p3089_p10)
}
  0xd7   : > { %2676 = dma.hbm_to_vmem [thread:$0]  (!%p3757_p5), %s4615_s13, 16, %s586_s6, [#allocation26]  }
  0xd8   : > { %s4616_s15 = sld [smem:[#allocation68_spill]] }
  0xde   : > { %s3093_s27 = scalar_lea.hbm %s4616_s15, 16 }
  0xdf   : > { %p3094_p1 = scmp.ne.s32.totalorder %s4616_s15, %s3093_s27  ;;  %p3100_p12 = scmp.lt.u32.totalorder %s3093_s27, %s4616_s15 }
  0xe1   : > { %p3096_p3 = pnand %p3094_p1, %p3773_p7 }
  0xe3   : > { %p3097_p11 = pneg %p3096_p3 }
  0xe5   : > { %p3102_p13 = pnand %p3100_p12, %p3097_p11 }
  0xe7   : > { %3105 = shalt.err (!%p3102_p13)
}
  0xe8   : > { %s3106_s19 = scalar_lea.vmem %s608_s21, 16  ;;  %s3113_s6 = scalar_lea.vmem %s608_s21, 32 }
  0xe9   : > { %p3107_p0 = scmp.ne.s32.totalorder %s608_s21, %s3106_s19  ;;  %p3114_p6 = scmp.lt.s32.totalorder %s608_s21, %s608_s21 }
  0xea   : > { %p3115_p8 = scmp.lt.s32.totalorder %s3113_s6, %s3106_s19 }
  0xeb   : > { %p3109_p2 = pnand %p3107_p0, %p3773_p7 }
  0xec   : > { %p3116_p9 = por %p3115_p8, %p3114_p6 }
  0xed   : > { %p3110_p4 = pneg %p3109_p2 }
  0xef   : > { %p3117_p10 = pnand %p3116_p9, %p3110_p4 }
  0xf1   : > { %3120 = shalt.err (!%p3117_p10)
}
  0xf2   : > { %2682 = dma.hbm_to_vmem [thread:$0]  (!%p3757_p5), %s4616_s15, 16, %s608_s21, [#allocation29]  }
  0xf3   : > { %p4559_p1 = scmp.eq.s32.totalorder %s3567_s1, 0  ;;  %p265_p3 = scmp.ne.s32.totalorder %s3535_s26, %s3531_s25 }
  0xf4   : > { %p271_p11 = scmp.ne.s32.totalorder %s3531_s25, %s3527_s24  ;;  %p4558_p12 = scmp.lt.s32.totalorder %s3567_s1, 4 }
  0xf5   : > { %p267_p13 = por %p265_p3, %p4559_p1  ;;  %s4560_s30 = sand.u32 1, %s3567_s1  }
  0xf6   : > { %p4617_p0 = scmp.eq.s32.totalorder %s3742_s20, 0  ;;  %s4566_s27 = sand.u32 1, %s3535_s26  }
  0xf7   : > { %s2406_s23 = sshll.u32 %s3559_s18, 7  ;;  %s3940_s0 = sshll.u32 %s4566_s27, 7 }
  0xf8   : > { %p3932_p2 = por %p271_p11, %p4617_p0  ;;  %s4619_s9 = sld [smem:[#allocation62_spill]] }
  0xf9   : > { %p3949_p4 = pnand %p4558_p12, %p267_p13  ;;  %s651_s19 = scalar_lea.vmem [#allocation19], %s3940_s0 }
  0xfa   : > { %s4618_s11 = scalar_select %p3932_p2, 1, 0 }
  0xfb   : > { %s4620_s24 = scalar_select %p3949_p4, 1, 0 }
  0xfc   : > { %s658_s6 = sshll.u32 %s651_s19, 4  ;;  %s3958_s3 = scalar_lea.sflag [#allocation20], %s4560_s30  ;;  %s3954_s6 = int_to_ptr.vmem [resolvable:$true] %s658_s6 }
  0xfd   : > { %p3964_p8 = pneg %p3949_p4 }
  0xfe   : > { %s3945_s10 = scalar_lea.hbm %s4619_s9, %s2406_s23  ;;  %s3126_s19 = scalar_lea.hbm %s4619_s9, 4096 }
  0xff   : > { %s3121_s4 = scalar_lea.hbm %s3945_s10, 2048  ;;  %p3127_p3 = scmp.lt.u32.totalorder %s3945_s10, %s4619_s9 }
 0x100   : > { %p3122_p6 = scmp.ne.s32.totalorder %s3945_s10, %s3121_s4  ;;  %p3128_p11 = scmp.lt.u32.totalorder %s3126_s19, %s3121_s4 }
 0x101   : > { %s4621_s23 = scalar_select %p3964_p8, 1, 0 }
 0x102   : > { %p3124_p9 = pnand %p3964_p8, %p3122_p6  ;;  %p3129_p13 = por %p3128_p11, %p3127_p3 }
 0x103   : > { %p3130_p0 = scmp.lt.u32.totalorder %s3121_s4, %s3945_s10 }
 0x104   : > { %p3125_p10 = pneg %p3124_p9 }
 0x105   : > { %p3131_p12 = por %p3130_p0, %p3129_p13 }
 0x107   : > { %p3132_p1 = pnand %p3131_p12, %p3125_p10 }
 0x109   : > { %3135 = shalt.err (!%p3132_p1)
}
 0x10a   : > { %s3136_s30 = scalar_lea.vmem %s3954_s6, 2048  ;;  %s3578_s21 = smov [#allocation19]  }
 0x10b   : > { %p3137_p6 = scmp.ne.s32.totalorder %s3954_s6, %s3136_s30  ;;  %s3141_s8 = sshll.u32 %s3578_s21, 4  ;;  %s3142_s8 = int_to_ptr.vmem [resolvable:$false] %s3141_s8 }
 0x10c   : > { %s3143_s28 = scalar_lea.vmem %s3142_s8, 4096  ;;  %p3144_p5 = scmp.lt.s32.totalorder %s3954_s6, %s3142_s8 }
 0x10d   : > { %p3139_p9 = pnand %p3137_p6, %p3964_p8  ;;  %p3145_p7 = scmp.lt.s32.totalorder %s3143_s28, %s3136_s30 }
 0x10f   : > { %p3140_p2 = pneg %p3139_p9  ;;  %p3146_p3 = por %p3145_p7, %p3144_p5 }
 0x111   : > { %p3147_p11 = pnand %p3146_p3, %p3140_p2 }
 0x113   : > { %3150 = shalt.err (!%p3147_p11)
}
 0x114   : > { %s3579_s29 = smov 256   ;;  %s3580_s4 = smov 128  }
 0x115   : > { %s3581_s19 = smov 8   ;;  %s3582_s27 = smov [#allocation9]  }
 0x116   : > { %2692 = dma.hbm_to_vmem [thread:$0]  (!%p3949_p4), %s3945_s10, 2048, %s3954_s6, %s3958_s3, %s3579_s29, %s3580_s4, %s3581_s19  }
 0x117   : > { %s491_s14 = sshll.u32 %s3582_s27, 4  ;;  %s3583_s21 = smov [#allocation12]   ;;  %s492_s14 = int_to_ptr.vmem [resolvable:$true] %s491_s14 }
 0x118   : > { %s515_s5 = sshll.u32 %s3583_s21, 4  ;;  %s4622_s2 = sld [smem:[#allocation55_spill]]  ;;  %s3988_s5 = int_to_ptr.vmem [resolvable:$true] %s515_s5 }
 0x119   : > { %p4623_p7 = scmp.ne.s32.totalorder %s4610_s16, 0 }
 0x11e   : > { %s3151_s28 = scalar_lea.hbm %s4622_s2, 16 }
 0x11f   : > { %p3152_p5 = scmp.ne.s32.totalorder %s4622_s2, %s3151_s28  ;;  %p3158_p2 = scmp.lt.u32.totalorder %s3151_s28, %s4622_s2 }
 0x121   : > { %p3154_p1 = pnand %p3152_p5, %p4623_p7 }
 0x123   : > { %p3155_p12 = pneg %p3154_p1 }
 0x125   : > { %p3160_p10 = pnand %p3158_p2, %p3155_p12 }
 0x127   : > { %3163 = shalt.err (!%p3160_p10)
}
 0x128   : > { %s3164_s27 = scalar_lea.vmem %s492_s14, 16  ;;  %s3171_s6 = scalar_lea.vmem %s492_s14, 32 }
 0x129   : > { %p3165_p13 = scmp.ne.s32.totalorder %s492_s14, %s3164_s27  ;;  %p3172_p9 = scmp.lt.s32.totalorder %s492_s14, %s492_s14 }
 0x12a   : > { %p3173_p3 = scmp.lt.s32.totalorder %s3171_s6, %s3164_s27 }
 0x12b   : > { %p3167_p0 = pnand %p3165_p13, %p4623_p7 }
 0x12c   : > { %p3174_p11 = por %p3173_p3, %p3172_p9 }
 0x12d   : > { %p3168_p6 = pneg %p3167_p0 }
 0x12f   : > { %p3175_p4 = pnand %p3174_p11, %p3168_p6 }
 0x131   : > { %3178 = shalt.err (!%p3175_p4)
}
 0x132   : > { %p4624_p5 = scmp.ne.s32.totalorder %s4608_s17, 0  ;;  %s4625_s4 = sld [smem:[#allocation57_spill]] }
 0x134   : > { %2652 = dma.hbm_to_vmem [thread:$0]  (!%p4624_p5), %s4622_s2, 16, %s492_s14, [#allocation8]  }
 0x138   : > { %s3179_s19 = scalar_lea.hbm %s4625_s4, 16 }
 0x139   : > { %p3180_p1 = scmp.ne.s32.totalorder %s4625_s4, %s3179_s19  ;;  %p3186_p4 = scmp.lt.u32.totalorder %s3179_s19, %s4625_s4 }
 0x13b   : > { %p3182_p12 = pnand %p3180_p1, %p4623_p7 }
 0x13d   : > { %p3183_p2 = pneg %p3182_p12 }
 0x13f   : > { %p3188_p10 = pnand %p3186_p4, %p3183_p2 }
 0x141   : > { %3191 = shalt.err (!%p3188_p10)
}
 0x142   : > { %s3192_s14 = scalar_lea.vmem %s3988_s5, 16  ;;  %s3199_s10 = scalar_lea.vmem %s3988_s5, 32 }
 0x143   : > { %p3193_p13 = scmp.ne.s32.totalorder %s3988_s5, %s3192_s14  ;;  %p3200_p9 = scmp.lt.s32.totalorder %s3988_s5, %s3988_s5 }
 0x144   : > { %p3201_p3 = scmp.lt.s32.totalorder %s3199_s10, %s3192_s14 }
 0x145   : > { %p3195_p0 = pnand %p3193_p13, %p4623_p7 }
 0x146   : > { %p3202_p11 = por %p3201_p3, %p3200_p9 }
 0x147   : > { %p3196_p6 = pneg %p3195_p0 }
 0x149   : > { %p3203_p1 = pnand %p3202_p11, %p3196_p6 }
 0x14b   : > { %3206 = shalt.err (!%p3203_p1)
}
 0x14c   : > { %2658 = dma.hbm_to_vmem [thread:$0]  (!%p4624_p5), %s4625_s4, 16, %s3988_s5, [#allocation11]  }
 0x14d   : > { %s3584_s7 = smov [#allocation15]   ;;  %s3585_s12 = smov [#allocation18]  }
 0x14e   : > { %s539_s9 = sshll.u32 %s3584_s7, 4  ;;  %s563_s29 = sshll.u32 %s3585_s12, 4  ;;  %s540_s9 = int_to_ptr.vmem [resolvable:$true] %s539_s9  ;;  %s4032_s29 = int_to_ptr.vmem [resolvable:$true] %s563_s29 }
 0x14f   : > { %s4626_s30 = sld [smem:[#allocation59_spill]] }
 0x155   : > { %s4627_s8 = smov %s4626_s30  ;;  %s3207_s28 = scalar_lea.hbm %s4626_s30, 16 }
 0x156   : > { %p3208_p12 = scmp.ne.s32.totalorder %s4627_s8, %s3207_s28  ;;  %p3214_p10 = scmp.lt.u32.totalorder %s3207_s28, %s4627_s8 }
 0x158   : > { %p3210_p2 = pnand %p3208_p12, %p4623_p7 }
 0x15a   : > { %p3211_p4 = pneg %p3210_p2 }
 0x15c   : > { %p3216_p13 = pnand %p3214_p10, %p3211_p4 }
 0x15e   : > { %3219 = shalt.err (!%p3216_p13)
}
 0x15f   : > { %s3220_s6 = scalar_lea.vmem %s540_s9, 16  ;;  %s3227_s7 = scalar_lea.vmem %s540_s9, 32 }
 0x160   : > { %p3221_p0 = scmp.ne.s32.totalorder %s540_s9, %s3220_s6  ;;  %p3228_p3 = scmp.lt.s32.totalorder %s540_s9, %s540_s9 }
 0x161   : > { %p3229_p11 = scmp.lt.s32.totalorder %s3227_s7, %s3220_s6 }
 0x162   : > { %p3223_p6 = pnand %p3221_p0, %p4623_p7 }
 0x163   : > { %p3230_p1 = por %p3229_p11, %p3228_p3 }
 0x164   : > { %p3224_p9 = pneg %p3223_p6 }
 0x166   : > { %p3231_p8 = pnand %p3230_p1, %p3224_p9 }
 0x168   : > { %3234 = shalt.err (!%p3231_p8)
}
 0x169   : > { %2664 = dma.hbm_to_vmem [thread:$0]  (!%p4624_p5), %s4627_s8, 16, %s540_s9, [#allocation14]  }
 0x16a   : > { %s4628_s28 = sld [smem:[#allocation61_spill]] }
 0x170   : > { %s4629_s14 = smov %s4628_s28  ;;  %s3235_s10 = scalar_lea.hbm %s4628_s28, 16 }
 0x171   : > { %p3236_p12 = scmp.ne.s32.totalorder %s4629_s14, %s3235_s10  ;;  %p3242_p8 = scmp.lt.u32.totalorder %s3235_s10, %s4629_s14 }
 0x173   : > { %p3238_p2 = pnand %p3236_p12, %p4623_p7 }
 0x175   : > { %p3239_p4 = pneg %p3238_p2 }
 0x177   : > { %p3244_p10 = pnand %p3242_p8, %p3239_p4 }
 0x179   : > { %3247 = shalt.err (!%p3244_p10)
}
 0x17a   : > { %s3248_s9 = scalar_lea.vmem %s4032_s29, 16  ;;  %s3255_s12 = scalar_lea.vmem %s4032_s29, 32 }
 0x17b   : > { %p3249_p13 = scmp.ne.s32.totalorder %s4032_s29, %s3248_s9  ;;  %p3256_p9 = scmp.lt.s32.totalorder %s4032_s29, %s4032_s29 }
 0x17c   : > { %p3257_p3 = scmp.lt.s32.totalorder %s3255_s12, %s3248_s9 }
 0x17d   : > { %p3251_p0 = pnand %p3249_p13, %p4623_p7 }
 0x17e   : > { %p3258_p11 = por %p3257_p3, %p3256_p9 }
 0x17f   : > { %p3252_p6 = pneg %p3251_p0 }
 0x181   : > { %p3259_p1 = pnand %p3258_p11, %p3252_p6 }
 0x183   : > { %3262 = shalt.err (!%p3259_p1)
}
 0x184   : > { %2670 = dma.hbm_to_vmem [thread:$0]  (!%p4624_p5), %s4629_s14, 16, %s4032_s29, [#allocation17]  }
 0x185   : > { %s3586_s30 = smov [#allocation27]   ;;  %s3587_s10 = smov [#allocation30]  }
 0x186   : > { %s596_s28 = sshll.u32 %s3586_s30, 4  ;;  %s618_s27 = sshll.u32 %s3587_s10, 4  ;;  %s597_s28 = int_to_ptr.vmem [resolvable:$true] %s596_s28  ;;  %s4076_s27 = int_to_ptr.vmem [resolvable:$true] %s618_s27 }
 0x187   : > { %s4630_s7 = sld [smem:[#allocation67_spill]] }
 0x18d   : > { %s3263_s9 = scalar_lea.hbm %s4630_s7, 16 }
 0x18e   : > { %p3264_p12 = scmp.ne.s32.totalorder %s4630_s7, %s3263_s9  ;;  %p3270_p8 = scmp.lt.u32.totalorder %s3263_s9, %s4630_s7 }
 0x190   : > { %p3266_p2 = pnand %p3264_p12, %p4623_p7 }
 0x192   : > { %p3267_p4 = pneg %p3266_p2 }
 0x194   : > { %p3272_p10 = pnand %p3270_p8, %p3267_p4 }
 0x196   : > { %3275 = shalt.err (!%p3272_p10)
}
 0x197   : > { %s3276_s21 = scalar_lea.vmem %s597_s28, 16  ;;  %s3283_s30 = scalar_lea.vmem %s597_s28, 32 }
 0x198   : > { %p3277_p13 = scmp.ne.s32.totalorder %s597_s28, %s3276_s21  ;;  %p3284_p9 = scmp.lt.s32.totalorder %s597_s28, %s597_s28 }
 0x199   : > { %p3285_p3 = scmp.lt.s32.totalorder %s3283_s30, %s3276_s21 }
 0x19a   : > { %p3279_p0 = pnand %p3277_p13, %p4623_p7 }
 0x19b   : > { %p3286_p11 = por %p3285_p3, %p3284_p9 }
 0x19c   : > { %p3280_p6 = pneg %p3279_p0 }
 0x19e   : > { %p3287_p1 = pnand %p3286_p11, %p3280_p6 }
 0x1a0   : > { %3290 = shalt.err (!%p3287_p1)
}
 0x1a1   : > { %2679 = dma.hbm_to_vmem [thread:$0]  (!%p4624_p5), %s4630_s7, 16, %s597_s28, [#allocation26]  }
 0x1a2   : > { %s4631_s9 = sld [smem:[#allocation69_spill]] }
 0x1a8   : > { %s3291_s12 = scalar_lea.hbm %s4631_s9, 16 }
 0x1a9   : > { %p3292_p12 = scmp.ne.s32.totalorder %s4631_s9, %s3291_s12  ;;  %p3298_p8 = scmp.lt.u32.totalorder %s3291_s12, %s4631_s9 }
 0x1ab   : > { %p3294_p2 = pnand %p3292_p12, %p4623_p7 }
 0x1ad   : > { %p3295_p4 = pneg %p3294_p2 }
 0x1af   : > { %p3300_p10 = pnand %p3298_p8, %p3295_p4 }
 0x1b1   : > { %3303 = shalt.err (!%p3300_p10)
}
 0x1b2   : > { %s3304_s28 = scalar_lea.vmem %s4076_s27, 16  ;;  %s3311_s2 = scalar_lea.vmem %s4076_s27, 32 }
 0x1b3   : > { %p3305_p13 = scmp.ne.s32.totalorder %s4076_s27, %s3304_s28  ;;  %p3312_p9 = scmp.lt.s32.totalorder %s4076_s27, %s4076_s27 }
 0x1b4   : > { %p3313_p3 = scmp.lt.s32.totalorder %s3311_s2, %s3304_s28 }
 0x1b5   : > { %p3307_p0 = pnand %p3305_p13, %p4623_p7 }
 0x1b6   : > { %p3314_p11 = por %p3313_p3, %p3312_p9 }
 0x1b7   : > { %p3308_p6 = pneg %p3307_p0 }
 0x1b9   : > { %p3315_p1 = pnand %p3314_p11, %p3308_p6 }
 0x1bb   : > { %3318 = shalt.err (!%p3315_p1)
}
 0x1bc   : > { %s4632_s6 = sld [smem:[#allocation48_spill]]  ;;  %s4633_s12 = sld [smem:[#allocation45_spill]] }
 0x1bd   : > { %s4634_s16 = sld [smem:[#allocation44_spill]]  ;;  %s4635_s19 = sld [smem:[#allocation43_spill]] }
 0x1be   : > { %2685 = dma.hbm_to_vmem [thread:$0]  (!%p4624_p5), %s4631_s9, 16, %s4076_s27, [#allocation29]  }
 0x1bf   : > { %s2275_s17 = sadd.s32 4294967294, %s3567_s1   ;;  %s54_s29 = sadd.s32 1, %s3559_s18 }
 0x1c0   : > { %p55_p7 = scmp.ge.s32.totalorder %s54_s29, 2  ;;  %p4637_p5 = scmp.eq.s32.totalorder %s3567_s1, 0 }
 0x1c1   : > { %p4639_p10 = scmp.eq.s32.totalorder %s3742_s20, 0  ;;  %s4642_s10 = sadd.s32 1, %s3535_s26 }
 0x1c2   : > { %s57_s21 = sadd.s32 1, %s4632_s6  ;;  %s64_s30 = sadd.s32 1, %s4633_s12 }
 0x1c3   : > { %p71_p12 = scmp.ne.s32.totalorder %s4633_s12, %s4634_s16  ;;  %s4695_s29 = smov (%p55_p7, %s54_s29), 0 }
 0x1c4   : > { %4636 = sst [smem:[#allocation50_spill]] %s4695_s29  ;;  %s4697_s21 = smov (!%p55_p7, %s57_s21), %s4632_s6 }
 0x1c5   : > { %p4134_p2 = por %p4637_p5, %p71_p12  ;;  %p77_p4 = scmp.ne.s32.totalorder %s4634_s16, %s4635_s19 }
 0x1c6   : > { %p59_p8 = scmp.ge.s32.totalorder %s4697_s21, 2  ;;  %s255_s28 = ssub.s32 %s3559_s18, %s4695_s29 }
 0x1c7   : > { %p4147_p13 = por %p4639_p10, %p77_p4  ;;  %p256_p0 = scmp.eq.s32.totalorder %s255_s28, 0 }
 0x1c8   : > { %s4699_s21 = smov (%p59_p8, %s4697_s21), 0  ;;  %p452_p6 = scmp.eq.s32.totalorder %s3742_s20, 3 }
 0x1c9   : > { %s4640_s2 = scalar_select %p4147_p13, 1, 0 }
 0x1ca   : > { %4641 = sst [smem:[#allocation51_spill]] %s4699_s21  ;;  %s61_s4 = ssub.s32 %s4632_s6, %s4699_s21 }
 0x1cb   : > { %s4156_s5 = scalar_select %p256_p0, %s3535_s26, %s4642_s10  }
 0x1cc   : > { %p62_p9 = scmp.eq.s32.totalorder %s61_s4, 0  ;;  %p458_p3 = scmp.eq.s32.totalorder %s2275_s17, 3 }
 0x1cd   : > { %p4164_p11 = por %p452_p6, %p71_p12  ;;  %s629_s8 = sand.u32 1, %s4633_s12  }
 0x1ce   : > { %s4701_s12 = smov (!%p62_p9, %s4633_s12), %s64_s30  ;;  %p4175_p1 = por %p458_p3, %p77_p4 }
 0x1cf   : > { %s4643_s7 = scalar_select %p4164_p11, 1, 0 }
 0x1d0   : > { %4644 = sst [smem:[#allocation52_spill]] %s4701_s12  ;;  %s2291_s10 = sshll.u32 %s629_s8, 3 }
 0x1d1   : > { %s4645_s28 = scalar_select %p4175_p1, 1, 0 }
 0x1d2   : > { %s2292_s9 = sshll.u32 %s4632_s6, 7  ;;  %s4646_s15 = sld [smem:[#allocation53_spill]] }
 0x1d3   : > { %s633_s17 = scalar_lea.vmem [#allocation4], %s2291_s10  ;;  %p4647_p7 = scmp.lt.s32.totalorder %s3567_s1, 4 }
 0x1d4   : > { %s640_s22 = sshll.u32 %s633_s17, 4  ;;  %s4649_s6 = sand.u32 1, %s3535_s26   ;;  %s4193_s22 = int_to_ptr.vmem [resolvable:$true] %s640_s22 }
 0x1d5   : > { %p4189_p12 = pnand %p4647_p7, %p4134_p2  ;;  %s4197_s13 = sshll.u32 %s4649_s6, 1 }
 0x1d6   : > { %s630_s14 = scalar_lea.sflag [#allocation5], %s629_s8 }
 0x1d7   : > { %p3321_p4 = pneg %p4189_p12 }
 0x1d8   : > { %s4183_s4 = scalar_lea.hbm %s4646_s15, %s2292_s9  ;;  %s3324_s27 = scalar_lea.hbm %s4646_s15, 256 }
 0x1d9   : > { %s3319_s9 = scalar_lea.hbm %s4183_s4, 128  ;;  %p3325_p2 = scmp.lt.u32.totalorder %s4183_s4, %s4646_s15 }
 0x1da   : > { %p3320_p5 = scmp.ne.s32.totalorder %s4183_s4, %s3319_s9  ;;  %p3326_p0 = scmp.lt.u32.totalorder %s3324_s27, %s3319_s9 }
 0x1db   : > { %p3328_p9 = scmp.lt.u32.totalorder %s3319_s9, %s4183_s4 }
 0x1dc   : > { %p3322_p8 = pnand %p3321_p4, %p3320_p5  ;;  %p3327_p6 = por %p3326_p0, %p3325_p2 }
 0x1de   : > { %p3323_p10 = pneg %p3322_p8  ;;  %p3329_p3 = por %p3328_p9, %p3327_p6 }
 0x1e0   : > { %p3330_p7 = pnand %p3329_p3, %p3323_p10 }
 0x1e2   : > { %3333 = shalt.err (!%p3330_p7)
}
 0x1e3   : > { %s3334_s8 = scalar_lea.vmem %s4193_s22, 128  ;;  %s3588_s6 = smov [#allocation4]  }
 0x1e4   : > { %p3335_p5 = scmp.ne.s32.totalorder %s4193_s22, %s3334_s8  ;;  %s3339_s19 = sshll.u32 %s3588_s6, 4  ;;  %s3340_s19 = int_to_ptr.vmem [resolvable:$false] %s3339_s19 }
 0x1e5   : > { %s3341_s30 = scalar_lea.vmem %s3340_s19, 256  ;;  %p3342_p11 = scmp.lt.s32.totalorder %s4193_s22, %s3340_s19 }
 0x1e6   : > { %p3337_p8 = pnand %p3335_p5, %p3321_p4  ;;  %p3343_p2 = scmp.lt.s32.totalorder %s3341_s30, %s3334_s8 }
 0x1e8   : > { %p3338_p1 = pneg %p3337_p8  ;;  %p3344_p0 = por %p3343_p2, %p3342_p11 }
 0x1ea   : > { %p3345_p6 = pnand %p3344_p0, %p3338_p1 }
 0x1ec   : > { %3348 = shalt.err (!%p3345_p6)
}
 0x1ed   : > { %2689 = dma.hbm_to_vmem [thread:$0]  (!%p4189_p12), %s4183_s4, 128, %s4193_s22, %s630_s14  }
 0x1ee   : > { %s2407_s9 = sshll.u32 %s3559_s18, 5  ;;  %s672_s27 = scalar_lea.vmem [#allocation21], %s4197_s13 }
 0x1ef   : > { %s680_s10 = sshll.u32 %s672_s27, 4  ;;  %s4650_s15 = sld [smem:[#allocation63_spill]]  ;;  %s681_s10 = int_to_ptr.vmem [resolvable:$true] %s680_s10 }
 0x1f0   : > { %p4651_p1 = scmp.ne.s32.totalorder %s4621_s23, 0 }
 0x1f5   : > { %s678_s21 = scalar_lea.hbm %s4650_s15, %s2407_s9  ;;  %s3354_s30 = scalar_lea.hbm %s4650_s15, 64 }
 0x1f6   : > { %s3349_s8 = scalar_lea.hbm %s678_s21, 32  ;;  %p3355_p12 = scmp.lt.u32.totalorder %s678_s21, %s4650_s15 }
 0x1f7   : > { %p3350_p11 = scmp.ne.s32.totalorder %s678_s21, %s3349_s8  ;;  %p3356_p9 = scmp.lt.u32.totalorder %s3354_s30, %s3349_s8 }
 0x1f8   : > { %p3358_p7 = scmp.lt.u32.totalorder %s3349_s8, %s678_s21 }
 0x1f9   : > { %p3352_p4 = pnand %p3350_p11, %p4651_p1  ;;  %p3357_p3 = por %p3356_p9, %p3355_p12 }
 0x1fb   : > { %p3353_p10 = pneg %p3352_p4  ;;  %p3359_p5 = por %p3358_p7, %p3357_p3 }
 0x1fd   : > { %p3360_p8 = pnand %p3359_p5, %p3353_p10 }
 0x1ff   : > { %3363 = shalt.err (!%p3360_p8)
}
 0x200   : > { %s3364_s22 = scalar_lea.vmem %s681_s10, 32  ;;  %s3589_s4 = smov [#allocation21]  }
 0x201   : > { %p3365_p2 = scmp.ne.s32.totalorder %s681_s10, %s3364_s22  ;;  %s3369_s13 = sshll.u32 %s3589_s4, 4  ;;  %s3370_s13 = int_to_ptr.vmem [resolvable:$false] %s3369_s13 }
 0x202   : > { %s3371_s14 = scalar_lea.vmem %s3370_s13, 64  ;;  %p3372_p11 = scmp.lt.s32.totalorder %s681_s10, %s3370_s13 }
 0x203   : > { %p3367_p0 = pnand %p3365_p2, %p4651_p1  ;;  %p3373_p4 = scmp.lt.s32.totalorder %s3371_s14, %s3364_s22 }
 0x205   : > { %p3368_p6 = pneg %p3367_p0  ;;  %p3374_p13 = por %p3373_p4, %p3372_p11 }
 0x207   : > { %p3375_p9 = pnand %p3374_p13, %p3368_p6 }
 0x209   : > { %3378 = shalt.err (!%p3375_p9)
}
 0x20a   : > { %p4652_p12 = scmp.ne.s32.totalorder %s4620_s24, 0  ;;  %s2408_s12 = sshll.u32 %s3559_s18, 11 }
 0x20b   : > { %s691_s29 = scalar_lea.vmem [#allocation22], %s3940_s0  ;;  %s4653_s6 = sld [smem:[#allocation64_spill]] }
 0x20c   : > { %2695 = dma.hbm_to_vmem [thread:$0]  (!%p4652_p12), %s678_s21, 32, %s681_s10, %s3958_s3  }
 0x20d   : > { %s698_s9 = sshll.u32 %s691_s29, 4  ;;  %s4654_s16 = sand.u32 1, %s3567_s1   ;;  %s4249_s9 = int_to_ptr.vmem [resolvable:$true] %s698_s9 }
 0x20e   : > { %s4253_s19 = scalar_lea.sflag [#allocation23], %s4654_s16 }
 0x211   : > { %s4247_s8 = scalar_lea.hbm %s4653_s6, %s2408_s12  ;;  %s3384_s21 = scalar_lea.hbm %s4653_s6, 4096 }
 0x212   : > { %s3379_s30 = scalar_lea.hbm %s4247_s8, 2048  ;;  %p3385_p7 = scmp.lt.u32.totalorder %s4247_s8, %s4653_s6 }
 0x213   : > { %p3380_p13 = scmp.ne.s32.totalorder %s4247_s8, %s3379_s30  ;;  %p3386_p5 = scmp.lt.u32.totalorder %s3384_s21, %s3379_s30 }
 0x214   : > { %p3388_p2 = scmp.lt.u32.totalorder %s3379_s30, %s4247_s8 }
 0x215   : > { %p3382_p10 = pnand %p3380_p13, %p4651_p1  ;;  %p3387_p8 = por %p3386_p5, %p3385_p7 }
 0x217   : > { %p3383_p3 = pneg %p3382_p10  ;;  %p3389_p0 = por %p3388_p2, %p3387_p8 }
 0x219   : > { %p3390_p6 = pnand %p3389_p0, %p3383_p3 }
 0x21b   : > { %3393 = shalt.err (!%p3390_p6)
}
 0x21c   : > { %s3394_s4 = scalar_lea.vmem %s4249_s9, 2048  ;;  %s3590_s13 = smov [#allocation22]  }
 0x21d   : > { %p3395_p11 = scmp.ne.s32.totalorder %s4249_s9, %s3394_s4  ;;  %s3399_s14 = sshll.u32 %s3590_s13, 4  ;;  %s3400_s14 = int_to_ptr.vmem [resolvable:$false] %s3399_s14 }
 0x21e   : > { %s3401_s12 = scalar_lea.vmem %s3400_s14, 4096  ;;  %p3402_p13 = scmp.lt.s32.totalorder %s4249_s9, %s3400_s14 }
 0x21f   : > { %p3397_p4 = pnand %p3395_p11, %p4651_p1  ;;  %p3403_p10 = scmp.lt.s32.totalorder %s3401_s12, %s3394_s4 }
 0x221   : > { %p3398_p9 = pneg %p3397_p4  ;;  %p3404_p7 = por %p3403_p10, %p3402_p13 }
 0x223   : > { %p3405_p5 = pnand %p3404_p7, %p3398_p9 }
 0x225   : > { %3408 = shalt.err (!%p3405_p5)
}
 0x226   : > { %s4655_s29 = smov 4   ;;  %s4656_s27 = smov 64  }
 0x227   : > { %2698 = dma.hbm_to_vmem [thread:$0]  (!%p4652_p12), %s4247_s8, 2048, %s4249_s9, %s4253_s19, %s4656_s27, %s4656_s27, %s4655_s29  }
 0x228   : > { %s4657_s23 = sld [smem:[#allocation49_spill]] }
 0x22e   : > { %p4658_p1 = scmp.ne.s32.totalorder %s4657_s23, 0 }
 0x22f   : > { %s4659_s17 = sld [smem:[#allocation44_spill]] (!%p4658_p1)  ;;  %p4660_p3 = scmp.ne.s32.totalorder (!%p4658_p1), %s4640_s2, 0 }
 0x230   : > { %710 = sbr.rel (%p4658_p1) target bundleno = 3497 (0xda9), region = 88 }
 0x235   : > { %s4283_s16 = sand.u32 (!%p4658_p1), 1, %s4659_s17  }
 0x236   : > { %s2303_s30 = sshll.u32 (!%p4658_p1), %s4283_s16, 3  ;;  %s713_s0 = scalar_lea.sflag (!%p4658_p1), [#allocation5], %s4283_s16 }
 0x237   : > { %s4289_s24 = scalar_lea.vmem [#allocation4], %s2303_s30 }
 0x238   : > { %3482 = dma.done.wait (%p4660_p3), %s713_s0, 128  }
 0x239   : > { %3484 = vsyncadd (%p4660_p3), %s713_s0, 4294967168  ;;  %p4661_p12 = scmp.eq.s32.totalorder %s3742_s20, 0 }
 0x23b   : > { %3486 = dma.done.wait (%p4661_p12), [#allocation8], 1040   ;;  %p4662_p8 = pmov %p4661_p12 }
 0x23d   : > { %3488 = vsyncadd (%p4662_p8), [#allocation8], 4294966256  ;;  %p4663_p2 = pmov %p4662_p8 }
 0x23f   : > { %3490 = dma.done.wait (%p4663_p2), [#allocation11], 1040   ;;  %p4664_p0 = pmov %p4663_p2 }
 0x241   : > { %3492 = vsyncadd (%p4664_p0), [#allocation11], 4294966256  ;;  %p4665_p6 = pmov %p4664_p0 }
 0x242   : > { %p4666_p11 = pmov %p4664_p0 }
 0x243   : > { %3494 = dma.done.wait (%p4665_p6), [#allocation14], 1040  }
 0x244   : > { %3496 = vsyncadd (%p4666_p11), [#allocation14], 4294966256  ;;  %p4667_p4 = pmov %p4664_p0 }
 0x245   : > { %p4668_p9 = pmov %p4664_p0 }
 0x246   : > { %3498 = dma.done.wait (%p4667_p4), [#allocation17], 1040  }
 0x247   : > { %3500 = vsyncadd (%p4668_p9), [#allocation17], 4294966256  ;;  %s753_s2 = sand.u32 1, %s3742_s20   ;;  %s755_s9 = sand.u32 1, %s3531_s25  }
 0x248   : > { %s2312_s8 = sshll.u32 %s755_s9, 7  ;;  %s754_s19 = scalar_lea.sflag [#allocation20], %s753_s2 }
 0x249   : > { %s4313_s3 = scalar_lea.vmem [#allocation19], %s2312_s8  ;;  %p4669_p13 = scmp.ne.s32.totalorder %s4618_s11, 0 }
 0x24b   : > { %3502 = dma.done.wait (%p4669_p13), %s754_s19, 2080  }
 0x24c   : > { %3504 = vsyncadd (%p4669_p13), %s754_s19, 4294965216  ;;  %s4319_s21 = sshll.u32 %s755_s9, 1  ;;  %s772_s22 = scalar_lea.sflag [#allocation23], %s753_s2 }
 0x24d   : > { %s766_s10 = scalar_lea.vmem [#allocation21], %s4319_s21  ;;  %s4322_s4 = scalar_lea.vmem [#allocation22], %s2312_s8 }
 0x24e   : > { %3506 = dma.done.wait (%p4669_p13), %s772_s22, 2048  }
 0x24f   : > { %3508 = vsyncadd (%p4669_p13), %s772_s22, 4294965248  ;;  %p4670_p10 = pmov %p4664_p0 }
 0x250   : > { %p4671_p7 = pmov %p4664_p0 }
 0x251   : > { %3510 = dma.done.wait (%p4670_p10), [#allocation23], 16  }
 0x252   : > { %3512 = vsyncadd (%p4671_p7), [#allocation23], 4294967280  ;;  %p4672_p5 = pmov %p4664_p0 }
 0x253   : > { %p4673_p1 = pmov %p4664_p0 }
 0x254   : > { %3514 = dma.done.wait (%p4672_p5), [#allocation26], 32  }
 0x255   : > { %3516 = vsyncadd (%p4673_p1), [#allocation26], 4294967264  ;;  %p4674_p3 = pmov %p4664_p0 }
 0x256   : > { %p4675_p12 = pmov %p4664_p0 }
 0x257   : > { %3518 = dma.done.wait (%p4674_p3), [#allocation29], 32  }
 0x258   : > { %3520 = vsyncadd (%p4675_p12), [#allocation29], 4294967264  ;;  %s4342_s11 = scalar_lea.vmem [#allocation31], %s2303_s30  ;;  %s4676_s13 = sld [smem:[#allocation46_spill]] }
 0x25e   : > { %p2321_p8 = scmp.ne.s32.totalorder %s4676_s13, 0 }
 0x25f   : > { %v2841_v0 = vld [vmem:[#allocation10] sm:$0xff] (!%p2321_p8)   ;;  %v3591_v1 = vmov (!%p2321_p8), 0.0   ;;  %v2842_v2 = vld [vmem:[#allocation10 + $0x8] sm:$0xff] (!%p2321_p8)   ;;  %vm3592_vm0 = vmmov (!%p2321_p8), 0   ;;  %v2844_v5 = vld [vmem:[#allocation10 + $0x10] sm:$0xff] (!%p2321_p8)   ;;  %vm1223_vm1 = vcmask (!%p2321_p8), 523264  }
 0x260   : > { %868 = sbr.rel (%p2321_p8) target bundleno = 2676 (0xa74), region = 160  ;;  %2496 = vmatprep.subr.bf16.mxu1 (!%p2321_p8), %v3591_v1  ;;  %1619 = vst [vmem:[#allocation3] sm:$0xff] (!%p2321_p8), %v3591_v1  ;;  %2476 = vmatprep.subr.bf16.mxu0 (!%p2321_p8), %v3591_v1  ;;  %v2843_v3 = vld [vmem:[#allocation7] sm:$0xff] (!%p2321_p8)   ;;  %v2845_v4 = vld [vmem:[#allocation7 + $0x8] sm:$0xff] (!%p2321_p8)   ;;  %v2847_v6 = vld [vmem:[#allocation7 + $0x10] sm:$0xff] (!%p2321_p8)   ;;  %s3593_s20 = smov (!%p2321_p8), 64  }
 0x261   : > { %2497 = vmatpush3.bf16.msra.mxu1 (!%p2321_p8), %v2841_v0  ;;  %2512 = vmatprep.mubr.msk.bf16.mxu1 (!%p2321_p8), %vm3592_vm0, %v3591_v1  ;;  %v2846_v7 = vld [vmem:[#allocation10 + $0x18] sm:$0xff] (!%p2321_p8)   ;;  %v2848_v9 = vld [vmem:[#allocation10 + $0x20] sm:$0xff] (!%p2321_p8)   ;;  %v2850_v10 = vld [vmem:[#allocation10 + $0x28] sm:$0xff] (!%p2321_p8)   ;;  %vm1271_vm2 = vcmask (!%p2321_p8), 64512   ;;  %vm1287_vm3 = vcmask (!%p2321_p8), 1043456  }
 0x262   : > { %2498 = vmatprep.subr.bf16.mxu1 (!%p2321_p8), %v3591_v1  ;;  %2492 = vmatprep.mubr.msk.bf16.mxu0 (!%p2321_p8), %vm3592_vm0, %v3591_v1  ;;  %v2849_v8 = vld [vmem:[#allocation7 + $0x18] sm:$0xff] (!%p2321_p8)   ;;  %v2851_v11 = vld [vmem:[#allocation7 + $0x20] sm:$0xff] (!%p2321_p8)   ;;  %v2853_v12 = vld [vmem:[#allocation7 + $0x28] sm:$0xff] (!%p2321_p8)  }
 0x263   : > { %2477 = vmatpush3.bf16.msra.mxu0 (!%p2321_p8), %v2843_v3  ;;  %v2852_v13 = vld [vmem:[#allocation10 + $0x30] sm:$0xff] (!%p2321_p8)   ;;  %v2854_v15 = vld [vmem:[#allocation10 + $0x38] sm:$0xff] (!%p2321_p8)   ;;  %v2331_v19 = vld [vmem:[#allocation12] ss:$0 sm:$0xff] (!%p2321_p8) }
 0x264   : > { %2478 = vmatprep.subr.bf16.mxu0 (!%p2321_p8), %v3591_v1  ;;  %v2855_v14 = vld [vmem:[#allocation7 + $0x30] sm:$0xff] (!%p2321_p8)   ;;  %v2856_v17 = vld [vmem:[#allocation7 + $0x38] sm:$0xff] (!%p2321_p8)   ;;  %v2322_v21 = vld [vmem:[#allocation9] ss:$0 sm:$0xff] (!%p2321_p8) }
 0x265   : > { %2499 = vmatpush3.bf16.msra.mxu1 (!%p2321_p8), %v2842_v2  ;;  %v4364_v16 = vld [vmem:[%s4289_s24] sm:$0xff] (!%p2321_p8)  ;;  %v2857_v34 = vld [vmem:[#allocation13] sm:$0xff] (!%p2321_p8)  }
 0x266   : > { %2500 = vmatprep.subr.bf16.mxu1 (!%p2321_p8), %v3591_v1  ;;  %v870_v18 = vpack.c.bf16 (!%p2321_p8), %v4364_v16, %v4364_v16  ;;  %v2858_v35 = vld [vmem:[#allocation13 + $0x8] sm:$0xff] (!%p2321_p8)   ;;  %v2859_v36 = vld [vmem:[#allocation13 + $0x10] sm:$0xff] (!%p2321_p8)   ;;  %v2860_v37 = vld [vmem:[#allocation13 + $0x18] sm:$0xff] (!%p2321_p8)  }
 0x267   : > { %2479 = vmatpush3.bf16.msra.mxu0 %v2845_v4  ;;  %v2861_v38 = vld [vmem:[#allocation13 + $0x20] sm:$0xff]   ;;  %v2862_v39 = vld [vmem:[#allocation13 + $0x28] sm:$0xff]   ;;  %v2863_v40 = vld [vmem:[#allocation13 + $0x30] sm:$0xff]  }
 0x268   : > { %2480 = vmatprep.subr.bf16.mxu0 %v3591_v1  ;;  %v2864_v41 = vld [vmem:[#allocation13 + $0x38] sm:$0xff]   ;;  %v2340_v48 = vld [vmem:[#allocation15] ss:$0 sm:$0xff] }
 0x269   : > { %2501 = vmatpush3.bf16.msra.mxu1 %v2844_v5 }
 0x26a   : > { %2502 = vmatprep.subr.bf16.mxu1 %v3591_v1 }
 0x26b   : > { %2481 = vmatpush3.bf16.msra.mxu0 %v2847_v6 }
 0x26c   : > { %2482 = vmatprep.subr.bf16.mxu0 %v3591_v1 }
 0x26d   : > { %2503 = vmatpush3.bf16.msra.mxu1 %v2846_v7 }
 0x26e   : > { %2504 = vmatprep.subr.bf16.mxu1 %v3591_v1 }
 0x26f   : > { %2483 = vmatpush3.bf16.msra.mxu0 %v2849_v8 }
 0x270   : > { %2484 = vmatprep.subr.bf16.mxu0 %v3591_v1 }
 0x271   : > { %2505 = vmatpush3.bf16.msra.mxu1 %v2848_v9 }
 0x272   : > { %2506 = vmatprep.subr.bf16.mxu1 %v3591_v1 }
 0x273   : > { %2485 = vmatpush3.bf16.msra.mxu0 %v2851_v11 }
 0x274   : > { %2486 = vmatprep.subr.bf16.mxu0 %v3591_v1 }
 0x275   : > { %2507 = vmatpush3.bf16.msra.mxu1 %v2850_v10 }
 0x276   : > { %2508 = vmatprep.subr.bf16.mxu1 %v3591_v1 }
 0x277   : > { %2487 = vmatpush3.bf16.msra.mxu0 %v2853_v12 }
 0x278   : > { %2488 = vmatprep.subr.bf16.mxu0 %v3591_v1 }
 0x279   : > { %2509 = vmatpush3.bf16.msra.mxu1 %v2852_v13 }
 0x27a   : > { %2510 = vmatprep.subr.bf16.mxu1 %v3591_v1 }
 0x27b   : > { %2489 = vmatpush3.bf16.msra.mxu0 %v2855_v14 }
 0x27c   : > { %2490 = vmatprep.subr.bf16.mxu0 %v3591_v1 }
 0x27d   : > { %2511 = vmatpush3.bf16.msra.mxu1 %v2854_v15 }
 0x27e   : > { %2536 = vmatprep.subr.bf16.mxu1 %v3591_v1 }
 0x27f   : > { %2491 = vmatpush3.bf16.msra.mxu0 %v2856_v17 }
 0x280   : > { %2513 = vmatmul.mubr.bf16.vlgmr.msra.gmra.mrb[0].mxu1 %v870_v18  ;;  %2516 = vmatprep.subr.bf16.mxu0 %v3591_v1 }
 0x281   : > { %2538 = vmatprep.mubr.msk.bf16.mxu1 %vm3592_vm0, %v3591_v1 }
 0x282   : > { %2493 = vmatmul.mubr.bf16.vlgmr.msra.gmra.mrb[0].mxu0 %v870_v18 }
 0x283   : > { %2532 = vmatprep.mubr.msk.bf16.mxu0 %vm3592_vm0, %v3591_v1  ;;  %2517 = vmatpush3.bf16.msra.mxu0 %v2857_v34 }
 0x284   : > { %2518 = vmatprep.subr.bf16.mxu0 %v3591_v1 }
 0x287   : > { %2519 = vmatpush3.bf16.msra.mxu0 %v2858_v35  ;;  %v2872_v35 = vld [vmem:[#allocation16 + $0x38] sm:$0xff]  }
 0x288   : > { %2520 = vmatprep.subr.bf16.mxu0 %v3591_v1 }
 0x28b   : > { %2521 = vmatpush3.bf16.msra.mxu0 %v2859_v36 }
 0x28c   : > { %2522 = vmatprep.subr.bf16.mxu0 %v3591_v1 }
 0x28f   : > { %2523 = vmatpush3.bf16.msra.mxu0 %v2860_v37 }
 0x290   : > { %2524 = vmatprep.subr.bf16.mxu0 %v3591_v1 }
 0x293   : > { %2525 = vmatpush3.bf16.msra.mxu0 %v2861_v38 }
 0x294   : > { %2526 = vmatprep.subr.bf16.mxu0 %v3591_v1 }
 0x297   : > { %2527 = vmatpush3.bf16.msra.mxu0 %v2862_v39 }
 0x298   : > { %2528 = vmatprep.subr.bf16.mxu0 %v3591_v1 }
 0x29b   : > { %2529 = vmatpush3.bf16.msra.mxu0 %v2863_v40 }
 0x29c   : > { %2530 = vmatprep.subr.bf16.mxu0 %v3591_v1 }
 0x29f   : > { %2531 = vmatpush3.bf16.msra.mxu0 %v2864_v41 }
 0x2a0   : > { %2560 = vmatprep.subr.bf16.mxu0 %v3591_v1 }
 0x2a2   : > { %2533 = vmatmul.mubr.bf16.vlgmr.msra.gmra.mrb[4].mxu0 %v870_v18 }
 0x2a3   : > { %2568 = vmatprep.mubr.msk.bf16.mxu0 %vm3592_vm0, %v3591_v1 }
 0x353   : > { %v1087_v20 = vpop.f32.mrb[0].mxu1 }
 0x354   : > { %v1088_v22 = vadd.f32 %v2331_v19, %v1087_v20  ;;  %v2514_v23 = vpop.f32.mrb[1].mxu1 }
 0x355   : > { %v1090_v24 = vpop.f32.mrb[2].mxu1  ;;  %v976_v25 = vpop.f32.mrb[0].mxu0  ;;  %v2869_v23 = vld [vmem:[#allocation16 + $0x20] sm:$0xff]  }
 0x356   : > { %v1205_v26 = vpack.c.bf16 %v1088_v22, %v1088_v22  ;;  %v2515_v27 = vpop.f32.mrb[3].mxu1  ;;  %v977_v28 = vadd.f32 %v2322_v21, %v976_v25  ;;  %v2494_v29 = vpop.f32.mrb[1].mxu0  ;;  %2561 = vmatpush3.bf16.msra.mxu0 %v2869_v23  ;;  %v2870_v24 = vld [vmem:[#allocation16 + $0x28] sm:$0xff]   ;;  %v2871_v25 = vld [vmem:[#allocation16 + $0x30] sm:$0xff]  }
 0x357   : > { %v979_v30 = vpop.f32.mrb[2].mxu0  ;;  %2562 = vmatprep.subr.bf16.mxu0 %v3591_v1  ;;  %v2865_v29 = vld [vmem:[#allocation16] sm:$0xff]  }
 0x358   : > { %v1228_v31 = vsel %vm1223_vm1, %v1205_v26, 0  ;;  %1336 = vrot.lane.b32.xlu1 %v1205_v26, %s3593_s20  ;;  %v1204_v32 = vpack.c.bf16 %v977_v28, %v977_v28  ;;  %v2495_v33 = vpop.f32.mrb[3].mxu0 }
 0x359   : > { %2537 = vmatpush3.bf16.xpose.msra.mxu1 %v1228_v31  ;;  %v2866_v31 = vld [vmem:[#allocation16 + $0x8] sm:$0xff]   ;;  %v2868_v33 = vld [vmem:[#allocation16 + $0x18] sm:$0xff]  }
 0x35a   : > { %2542 = vmatprep.subr.bf16.mxu1 %v3591_v1  ;;  %2563 = vmatpush3.bf16.msra.mxu0 %v2870_v24 }
 0x35b   : > { %2564 = vmatprep.subr.bf16.mxu0 %v3591_v1 }
 0x35c   : > { %1333 = vrot.lane.b32.xlu1 %v1204_v32, %s3593_s20 }
 0x35e   : > { %2565 = vmatpush3.bf16.msra.mxu0 %v2871_v25 }
 0x35f   : > { %2566 = vmatprep.subr.bf16.mxu0 %v3591_v1 }
 0x360   : > { %2539 = vmatmul.mubr.msk.bf16.vlgmr.msra.gmra.mrb[4].mxu1 %vm1223_vm1, %v1204_v32  ;;  %v2867_v32 = vld [vmem:[#allocation16 + $0x10] sm:$0xff]  }
 0x361   : > { %2544 = vmatprep.mubr.msk.bf16.mxu1 %vm3592_vm0, %v3591_v1 }
 0x362   : > { %2567 = vmatpush3.bf16.msra.mxu0 %v2872_v35 }
 0x375   : > { %v1198_v49 = vpop.f32.mrb[4].mxu0 }
 0x376   : > { %v1199_v50 = vadd.f32 %v2340_v48, %v1198_v49  ;;  %v2534_v51 = vpop.f32.mrb[5].mxu0 }
 0x377   : > { %v1201_v52 = vpop.f32.mrb[6].mxu0 }
 0x378   : > { %v1206_v53 = vpack.c.bf16 %v1199_v50, %v1199_v50  ;;  %v2535_v54 = vpop.f32.mrb[7].mxu0 }
 0x37a   : > { %v1289_v55 = vsel %vm1287_vm3, %v1206_v53, 0 }
 0x37b   : > { %2543 = vmatpush3.bf16.msra.mxu1 %v1289_v55 }
 0x37c   : > { %2548 = vmatprep.subr.bf16.mxu1 %v3591_v1 }
 0x3ca   : > { %v1337_v0 = vpop.permute.xlu1 %1336 }
 0x3cb   : > { %v1342_v3 = vsel %vm1223_vm1, %v1337_v0, 0 }
 0x3ce   : > { %v1334_v4 = vpop.permute.xlu1 %1333 }
 0x433   : > { %v1264_v42 = vpop.f32.mrb[4].mxu1 }
 0x434   : > { %v1270_v43 = vmul.f32 0.125, %v1264_v42  ;;  %v2540_v44 = vpop.f32.mrb[5].mxu1 }
 0x435   : > { %v1267_v45 = vpop.f32.mrb[6].mxu1 }
 0x436   : > { %v2541_v46 = vpop.f32.mrb[7].mxu1  ;;  %v1272_v47 = vsel %vm1271_vm2, %v1270_v43, -inf }
 0x437   : > { %1273 = vmax.xlane.f32.xlu0 %v1272_v47  ;;  %v2363_v46 = vld [vmem:[#allocation18] ss:$0 sm:$0xff] }
 0x4c4   : > { %v1274_v56 = vpop.xlane.xlu0 %1273 }
 0x4c5   : > { %v1275_v57 = vsub.f32 %v1270_v43, %v1274_v56 }
 0x4c7   : > { %v1276_v58 = vmul.f32 1.442695, %v1275_v57 }
 0x4c9   : > { %2873 = vpow2.f32 %v1276_v58 }
 0x4d3   : > { %v2874_v59 = vpop.eup %2873 }
 0x4d4   : > { %v1278_v60 = vsel %vm1271_vm2, %v2874_v59, 0.0 }
 0x4d5   : > { %1279 = vadd.xlane.f32.xlu0 %v1278_v60  ;;  %v2364_v60 = vld [vmem:[#allocation25] ss:$0 sm:$0xff] }
 0x562   : > { %v1280_v61 = vpop.xlane.xlu0 %1279 }
 0x563   : > { %2875 = vrcp.f32 %v1280_v61 }
 0x56d   : > { %v2876_v62 = vpop.eup %2875 }
 0x56e   : > { %v1282_v63 = vmul.f32 %v2876_v62, %v2874_v59  ;;  %v2365_v62 = vld [vmem:[#allocation27] ss:$0 sm:$0xff] }
 0x570   : > { %v1283_v2 = vpack.c.bf16 %v1282_v63, %v1282_v63 }
 0x572   : > { %2545 = vmatmul.mubr.msk.bf16.vlgmr.msra.gmra.mrb[8].mxu1 %vm1271_vm2, %v1283_v2 }
 0x573   : > { %2549 = vmatpush3.bf16.xpose.msra.mxu1 %v1342_v3  ;;  %2550 = vmatprep.mubr.msk.bf16.mxu1 %vm3592_vm0, %v3591_v1 }
 0x574   : > { %2554 = vmatprep.subr.bf16.mxu1 %v3591_v1 }
 0x57a   : > { %2551 = vmatmul.mubr.msk.bf16.vlgmr.msra.gmra.mrb[12].mxu1 %vm1223_vm1, %v1334_v4 }
 0x57b   : > { %2556 = vmatprep.mubr.msk.bf16.mxu1 %vm3592_vm0, %v3591_v1 }
 0x645   : > { %v1325_v5 = vpop.f32.mrb[8].mxu1 }
 0x646   : > { %v2546_v6 = vpop.f32.mrb[9].mxu1  ;;  %v1331_v34 = vpack.c.bf16 %v1325_v5, %v1325_v5 }
 0x647   : > { %v1328_v7 = vpop.f32.mrb[10].mxu1 }
 0x648   : > { %v2547_v8 = vpop.f32.mrb[11].mxu1 }
 0x64d   : > { %v1378_v9 = vpop.f32.mrb[12].mxu1 }
 0x64e   : > { %v1384_v10 = vmul.f32 0.125, %v1378_v9  ;;  %v2552_v11 = vpop.f32.mrb[13].mxu1 }
 0x64f   : > { %v1381_v12 = vpop.f32.mrb[14].mxu1 }
 0x650   : > { %v2553_v13 = vpop.f32.mrb[15].mxu1  ;;  %v1385_v14 = vsel %vm1271_vm2, %v1384_v10, -inf }
 0x651   : > { %1386 = vmax.xlane.f32.xlu0 %v1385_v14 }
 0x667   : > { %1398 = vrot.lane.b32.xlu0 %v1206_v53, %s3593_s20 }
 0x6de   : > { %v1387_v15 = vpop.xlane.xlu0 %1386 }
 0x6df   : > { %v1388_v17 = vsub.f32 %v1384_v10, %v1387_v15 }
 0x6e1   : > { %v1389_v18 = vmul.f32 1.442695, %v1388_v17 }
 0x6e2   : > { %v1399_v19 = vpop.permute.xlu0 %1398 }
 0x6e3   : > { %2877 = vpow2.f32 %v1389_v18  ;;  %v1404_v20 = vsel %vm1287_vm3, %v1399_v19, 0 }
 0x6e4   : > { %2555 = vmatpush3.bf16.msra.mxu1 %v1404_v20 }
 0x6e5   : > { %2572 = vmatprep.subr.bf16.mxu1 %v3591_v1 }
 0x6ed   : > { %v2878_v21 = vpop.eup %2877 }
 0x6ee   : > { %v1391_v22 = vsel %vm1271_vm2, %v2878_v21, 0.0 }
 0x6ef   : > { %1392 = vadd.xlane.f32.xlu1 %v1391_v22 }
 0x77c   : > { %v1393_v26 = vpop.xlane.xlu1 %1392 }
 0x77d   : > { %2879 = vrcp.f32 %v1393_v26 }
 0x787   : > { %v2880_v27 = vpop.eup %2879 }
 0x788   : > { %v1395_v28 = vmul.f32 %v2880_v27, %v2878_v21 }
 0x78a   : > { %v1396_v30 = vpack.c.bf16 %v1395_v28, %v1395_v28 }
 0x78c   : > { %2557 = vmatmul.mubr.msk.bf16.vlgmr.msra.gmra.mrb[16].mxu1 %vm1271_vm2, %v1396_v30 }
 0x78d   : > { %2573 = vmatpush3.bf16.msra.mxu1 %v2865_v29  ;;  %2580 = vmatprep.mubr.msk.bf16.mxu1 %vm3592_vm0, %v3591_v1 }
 0x78e   : > { %2574 = vmatprep.subr.bf16.mxu1 %v3591_v1 }
 0x791   : > { %2575 = vmatpush3.bf16.msra.mxu1 %v2866_v31 }
 0x792   : > { %2576 = vmatprep.subr.bf16.mxu1 %v3591_v1 }
 0x795   : > { %2577 = vmatpush3.bf16.msra.mxu1 %v2867_v32 }
 0x796   : > { %2578 = vmatprep.subr.bf16.mxu1 %v3591_v1 }
 0x799   : > { %2579 = vmatpush3.bf16.msra.mxu1 %v2868_v33 }
 0x79c   : > { %2581 = vmatmul.mubr.msk.bf16.vlgmr.msra.gmra.mrb[20].mxu1 %vm1223_vm1, %v1331_v34 }
 0x85f   : > { %v1440_v36 = vpop.f32.mrb[16].mxu1 }
 0x860   : > { %v1446_v37 = vpack.c.bf16 %v1440_v36, %v1440_v36  ;;  %v2558_v38 = vpop.f32.mrb[17].mxu1 }
 0x861   : > { %v1443_v39 = vpop.f32.mrb[18].mxu1 }
 0x862   : > { %v2559_v40 = vpop.f32.mrb[19].mxu1  ;;  %2569 = vmatmul.mubr.msk.bf16.vlgmr.msra.gmra.mrb[8].mxu0 %vm1223_vm1, %v1446_v37 }
 0x86f   : > { %v1575_v41 = vpop.f32.mrb[20].mxu1 }
 0x870   : > { %v2582_v42 = vpop.f32.mrb[21].mxu1 }
 0x871   : > { %v1578_v43 = vpop.f32.mrb[22].mxu1 }
 0x872   : > { %v2583_v44 = vpop.f32.mrb[23].mxu1 }
 0x935   : > { %v1508_v45 = vpop.f32.mrb[8].mxu0 }
 0x936   : > { %v1576_v1 = vadd.f32 %v1575_v41, %v1508_v45  ;;  %v2570_v47 = vpop.f32.mrb[9].mxu0 }
 0x937   : > { %v1511_v48 = vpop.f32.mrb[10].mxu0 }
 0x938   : > { %v1588_v49 = vadd.f32 %v2363_v46, %v1576_v1  ;;  %v2571_v50 = vpop.f32.mrb[11].mxu0 }
 0x93a   : > { %v1589_v51 = vadd.f32 %v1588_v49, %v4364_v16 }
 0x93c   : > { %1592 = vadd.xlane.f32.xlu0 %v1589_v51 }
 0x9c9   : > { %v1593_v52 = vpop.xlane.xlu0 %1592 }
 0x9ca   : > { %v1595_v53 = vmul.f32 0.0078125, %v1593_v52 }
 0x9cc   : > { %v1596_v54 = vsub.f32 %v1589_v51, %v1595_v53 }
 0x9ce   : > { %v1597_v55 = vmul.f32 %v1596_v54, %v1596_v54 }
 0x9d0   : > { %1598 = vadd.xlane.f32.xlu1 %v1597_v55 }
 0xa5d   : > { %v1599_v56 = vpop.xlane.xlu1 %1598 }
 0xa5e   : > { %v1600_v57 = vmul.f32 0.0078125, %v1599_v56 }
 0xa60   : > { %v1601_v58 = vadd.f32 1e-05, %v1600_v57 }
 0xa62   : > { %2881 = vrsqrt.f32 %v1601_v58 }
 0xa6c   : > { %v2882_v59 = vpop.eup %2881 }
 0xa6d   : > { %v1603_v61 = vmul.f32 %v2882_v59, %v1596_v54 }
 0xa6f   : > { %v1610_v63 = vmul.f32 %v2364_v60, %v1603_v61 }
 0xa71   : > { %v1617_v0 = vadd.f32 %v2365_v62, %v1610_v63 }
 0xa73   : > { %1618 = vst [vmem:[#allocation2] sm:$0xff] %v1617_v0 }
 0xa74 PF: > { %v2883_v16 = vld [vmem:[%s4313_s3 + $0x4] ss:$8 sps:$4 sm:$0xff]   ;;  %v2885_v2 = vld [vmem:[%s4313_s3] ss:$8 sps:$4 sm:$0xff]   ;;  %v3594_v3 = vmov 0   ;;  %v2911_v17 = vld [vmem:[%s4322_s4 + $0x50] sm:$0xff]   ;;  %v1640_v37 = vlaneseq }
 0xa75   : > { %1762 = vmatprep.mubr.bf16.mxu0 %v3594_v3  ;;  %1730 = vmatprep.subr.bf16.mxu0 %v2883_v16  ;;  %v2886_v4 = vld [vmem:[%s4313_s3 + $0x14] ss:$8 sps:$4 sm:$0xff]   ;;  %v2888_v5 = vld [vmem:[%s4313_s3 + $0x10] ss:$8 sps:$4 sm:$0xff]   ;;  %v2889_v6 = vld [vmem:[%s4313_s3 + $0x24] ss:$8 sps:$4 sm:$0xff]  }
 0xa76   : > { %1731 = vmatpush1.bf16.msra.mxu0 %v2885_v2  ;;  %v2891_v7 = vld [vmem:[%s4313_s3 + $0x20] ss:$8 sps:$4 sm:$0xff]   ;;  %v2892_v8 = vld [vmem:[%s4313_s3 + $0x34] ss:$8 sps:$4 sm:$0xff]   ;;  %v2894_v9 = vld [vmem:[%s4313_s3 + $0x30] ss:$8 sps:$4 sm:$0xff]  }
 0xa77   : > { %1732 = vmatprep.subr.bf16.mxu0 %v2886_v4  ;;  %v2895_v10 = vld [vmem:[%s4313_s3 + $0x44] ss:$8 sps:$4 sm:$0xff]   ;;  %v2897_v13 = vld [vmem:[%s4313_s3 + $0x40] ss:$8 sps:$4 sm:$0xff]   ;;  %v2898_v18 = vld [vmem:[%s4313_s3 + $0x54] ss:$8 sps:$4 sm:$0xff]  }
 0xa78   : > { %v2907_v11 = vld [vmem:[%s4322_s4 + $0x40] sm:$0xff]   ;;  %v2909_v14 = vld [vmem:[%s4322_s4 + $0x48] sm:$0xff]   ;;  %v2912_v20 = vld [vmem:[%s4322_s4 + $0x10] sm:$0xff]   ;;  %v1641_v38 = vshrl.u32 %v1640_v37, 7  ;;  %s4677_s14 = sld [smem:[#allocation46_spill]] }
 0xa79   : > { %v2908_v12 = vld [vmem:[%s4322_s4] sm:$0xff]   ;;  %2454 = vmatprep.subr.bf16.mxu1 %v2907_v11  ;;  %v2910_v15 = vld [vmem:[%s4322_s4 + $0x8] sm:$0xff]   ;;  %v2913_v21 = vld [vmem:[%s4322_s4 + $0x58] sm:$0xff]  }
 0xa7a   : > { %1733 = vmatpush1.bf16.msra.mxu0 %v2888_v5  ;;  %2455 = vmatpush3.bf16.msra.mxu1 %v2908_v12  ;;  %v2900_v19 = vld [vmem:[%s4313_s3 + $0x50] ss:$8 sps:$4 sm:$0xff]   ;;  %v2901_v22 = vld [vmem:[%s4313_s3 + $0x64] ss:$8 sps:$4 sm:$0xff]   ;;  %v2903_v23 = vld [vmem:[%s4313_s3 + $0x60] ss:$8 sps:$4 sm:$0xff]  }
 0xa7b   : > { %1734 = vmatprep.subr.bf16.mxu0 %v2889_v6  ;;  %2456 = vmatprep.subr.bf16.mxu1 %v2909_v14  ;;  %v2904_v24 = vld [vmem:[%s4313_s3 + $0x74] ss:$8 sps:$4 sm:$0xff]   ;;  %v2915_v26 = vld [vmem:[%s4322_s4 + $0x60] sm:$0xff]   ;;  %v2906_v28 = vld [vmem:[%s4313_s3 + $0x70] ss:$8 sps:$4 sm:$0xff]   ;;  %v1642_v39 = vsub.s32 0, %v1641_v38 }
 0xa7c   : > { %v2914_v25 = vld [vmem:[%s4322_s4 + $0x18] sm:$0xff]   ;;  %v2916_v27 = vld [vmem:[%s4322_s4 + $0x20] sm:$0xff]   ;;  %v2917_v30 = vld [vmem:[%s4322_s4 + $0x68] sm:$0xff]   ;;  %v1646_v41 = vsub.s32 1, %v1641_v38 }
 0xa7d   : > { %v1620_v29 = vld [vmem:[#allocation2] sm:$0xff]  ;;  %v2918_v32 = vld [vmem:[%s4322_s4 + $0x28] sm:$0xff]   ;;  %v1638_v40 = vld [vmem:[%s766_s10] sm:$0x3] }
 0xa7e   : > { %1735 = vmatpush1.bf16.msra.mxu0 %v2891_v7  ;;  %2457 = vmatpush3.bf16.msra.mxu1 %v2910_v15  ;;  %v1621_v31 = vpack.c.bf16 %v1620_v29, %v1620_v29  ;;  %v2919_v33 = vld [vmem:[%s4322_s4 + $0x70] sm:$0xff]   ;;  %v2921_v35 = vld [vmem:[%s4322_s4 + $0x78] sm:$0xff]   ;;  %v1643_v42 = vrot.slane %v1638_v40, %v1642_v39  ;;  %v1647_v43 = vrot.slane %v1638_v40, %v1646_v41  ;;  %p2398_p2 = scmp.ne.s32.totalorder %s4677_s14, 1 }
 0xa7f   : > { %1736 = vmatprep.subr.bf16.mxu0 %v2892_v8  ;;  %2458 = vmatprep.subr.bf16.mxu1 %v2911_v17  ;;  %v2920_v34 = vld [vmem:[%s4322_s4 + $0x30] sm:$0xff]   ;;  %v2922_v36 = vld [vmem:[%s4322_s4 + $0x38] sm:$0xff]   ;;  %v2399_v62 = vld [vmem:[#allocation24] ss:$0 sm:$0xff] (!%p2398_p2) }
 0xa80   : > { %v1775_v54 = vld [vmem:[#allocation3] sm:$0xff]  ;;  %v1950_v60 = vld [vmem:[#allocation2] sm:$0xff] (!%p2398_p2)  ;;  %v2401_v11 = vld [vmem:[#allocation30] ss:$0 sm:$0xff] (!%p2398_p2) }
 0xa82   : > { %1737 = vmatpush1.bf16.msra.mxu0 %v2894_v9  ;;  %2459 = vmatpush3.bf16.msra.mxu1 %v2912_v20  ;;  %v2400_v9 = vld [vmem:[#allocation28] ss:$0 sm:$0xff] (!%p2398_p2) }
 0xa83   : > { %1738 = vmatprep.subr.bf16.mxu0 %v2895_v10  ;;  %2460 = vmatprep.subr.bf16.mxu1 %v2913_v21 }
 0xa86   : > { %1739 = vmatpush1.bf16.msra.mxu0 %v2897_v13  ;;  %2461 = vmatpush3.bf16.msra.mxu1 %v2914_v25 }
 0xa87   : > { %1740 = vmatprep.subr.bf16.mxu0 %v2898_v18  ;;  %2462 = vmatprep.subr.bf16.mxu1 %v2915_v26 }
 0xa8a   : > { %1741 = vmatpush1.bf16.msra.mxu0 %v2900_v19  ;;  %2463 = vmatpush3.bf16.msra.mxu1 %v2916_v27 }
 0xa8b   : > { %1742 = vmatprep.subr.bf16.mxu0 %v2901_v22  ;;  %2464 = vmatprep.subr.bf16.mxu1 %v2917_v30 }
 0xa8e   : > { %1743 = vmatpush1.bf16.msra.mxu0 %v2903_v23  ;;  %2465 = vmatpush3.bf16.msra.mxu1 %v2918_v32 }
 0xa8f   : > { %1744 = vmatprep.subr.bf16.mxu0 %v2904_v24  ;;  %2466 = vmatprep.subr.bf16.mxu1 %v2919_v33 }
 0xa92   : > { %1745 = vmatpush1.bf16.msra.mxu0 %v2906_v28  ;;  %2467 = vmatpush3.bf16.msra.mxu1 %v2920_v34 }
 0xa93   : > { %2468 = vmatprep.subr.bf16.mxu1 %v2921_v35 }
 0xa95   : > { %1763 = vmatmul.mubr.bf16.vlgmr.msra.gmra.mrb[0].mxu0 %v1621_v31 }
 0xa96   : > { %2469 = vmatpush3.bf16.msra.mxu1 %v2922_v36 }
 0xb68   : > { %v1764_v44 = vpop.f32.mrb[0].mxu0 }
 0xb69   : > { %v1765_v45 = vadd.f32 %v1764_v44, %v1643_v42  ;;  %v1766_v46 = vpop.f32.mrb[1].mxu0 }
 0xb6a   : > { %v1767_v1 = vadd.f32 %v1766_v46, %v1647_v43  ;;  %v1768_v47 = vpop.f32.mrb[2].mxu0 }
 0xb6b   : > { %v1771_v48 = vmax.f32 %v1765_v45, 0.0  ;;  %v1769_v49 = vpop.f32.mrb[3].mxu0 }
 0xb6c   : > { %v1772_v50 = vmax.f32 %v1767_v1, 0.0 }
 0xb6d   : > { %v1773_v52 = vpack.c.bf16 %v1771_v48, %v1771_v48 }
 0xb6e   : > { %v1774_v51 = vpack.c.bf16 %v1772_v50, %v1772_v50 }
 0xb70   : > { %1936 = vmatprep.mubr.bf16.mxu1 %v1774_v51 }
 0xb71   : > { %1937 = vmatmul.mubr.bf16.vlgmr.msra.gmra.mrb[0].mxu1 %v1773_v52 }
 0xc44   : > { %v2470_v53 = vpop.f32.mrb[0].mxu1  ;;  %1949 = sbr.rel (%p2398_p2) target bundleno = 3470 (0xd8e), region = 164 }
 0xc45   : > { %v2471_v55 = vpop.f32.mrb[1].mxu1 }
 0xc46   : > { %v2472_v56 = vadd.f32 %v2471_v55, %v2470_v53  ;;  %v2473_v57 = vpop.f32.mrb[2].mxu1 }
 0xc47   : > { %v2474_v58 = vpop.f32.mrb[3].mxu1 }
 0xc48   : > { %v1944_v59 = vadd.f32 %v2472_v56, %v1775_v54 }
 0xc4a   : > { %1945 = vst [vmem:[#allocation3] sm:$0xff] %v1944_v59 }
 0xc51   : > { %v1951_v61 = vld [vmem:[#allocation3] sm:$0xff] }
 0xc52   : > { %v1952_v63 = vadd.f32 %v1951_v61, %v1950_v60 }
 0xc54   : > { %v1960_v0 = vadd.f32 %v2399_v62, %v1952_v63 }
 0xc56   : > { %1963 = vadd.xlane.f32.xlu0 %v1960_v0 }
 0xce3   : > { %v1964_v16 = vpop.xlane.xlu0 %1963 }
 0xce4   : > { %v1966_v2 = vmul.f32 0.0078125, %v1964_v16 }
 0xce6   : > { %v1967_v3 = vsub.f32 %v1960_v0, %v1966_v2 }
 0xce8   : > { %v1968_v4 = vmul.f32 %v1967_v3, %v1967_v3 }
 0xcea   : > { %1969 = vadd.xlane.f32.xlu0 %v1968_v4 }
 0xd77   : > { %v1970_v5 = vpop.xlane.xlu0 %1969 }
 0xd78   : > { %v1971_v6 = vmul.f32 0.0078125, %v1970_v5 }
 0xd7a   : > { %v1972_v7 = vadd.f32 1e-05, %v1971_v6 }
 0xd7c   : > { %2923 = vrsqrt.f32 %v1972_v7 }
 0xd86   : > { %v2924_v8 = vpop.eup %2923 }
 0xd87   : > { %v1974_v10 = vmul.f32 %v2924_v8, %v1967_v3 }
 0xd89   : > { %v1981_v12 = vmul.f32 %v2400_v9, %v1974_v10 }
 0xd8b   : > { %v1988_v13 = vadd.f32 %v2401_v11, %v1981_v12 }
 0xd8d   : > { %1989 = vst [vmem:[%s4342_s11] sm:$0xff] %v1988_v13 }
 0xd8e PF: > { %s4678_s12 = sld [smem:[#allocation47_spill]]  ;;  %s4679_s17 = sld [smem:[#allocation70_spill]] }
 0xd8f   : > { %s2004_s0 = sshll.u32 %s4342_s11, 4  ;;  %s1991_s24 = scalar_lea.sflag [#allocation6], %s4283_s16  ;;  %s2005_s0 = int_to_ptr.vmem [resolvable:$true] %s2004_s0 }
 0xd90   : > { %s3409_s2 = scalar_lea.vmem %s2005_s0, 128  ;;  %p4680_p6 = scmp.ne.s32.totalorder %s4643_s7, 0 }
 0xd91   : > { %p3410_p0 = scmp.ne.s32.totalorder %s2005_s0, %s3409_s2  ;;  %s3595_s9 = smov [#allocation31]  }
 0xd92   : > { %s3413_s8 = sshll.u32 %s3595_s9, 4  ;;  %s3414_s8 = int_to_ptr.vmem [resolvable:$false] %s3413_s8 }
 0xd93   : > { %p3411_p11 = pnand %p3410_p0, %p4680_p6  ;;  %s3415_s19 = scalar_lea.vmem %s3414_s8, 256 }
 0xd94   : > { %s2403_s29 = sshll.u32 %s4678_s12, 7  ;;  %p3416_p9 = scmp.lt.s32.totalorder %s2005_s0, %s3414_s8 }
 0xd95   : > { %s4463_s30 = scalar_lea.hbm %s4679_s17, %s2403_s29  ;;  %p3412_p4 = pneg %p3411_p11 }
 0xd96   : > { %p3417_p13 = scmp.lt.s32.totalorder %s3415_s19, %s3409_s2 }
 0xd98   : > { %p3418_p10 = por %p3417_p13, %p3416_p9 }
 0xd9a   : > { %p3419_p7 = pnand %p3418_p10, %p3412_p4 }
 0xd9c   : > { %3422 = shalt.err (!%p3419_p7)
}
 0xd9d   : > { %s3423_s16 = scalar_lea.hbm %s4463_s30, 128  ;;  %s3427_s10 = scalar_lea.hbm %s4679_s17, 256 }
 0xd9e   : > { %p3424_p5 = scmp.ne.s32.totalorder %s4463_s30, %s3423_s16  ;;  %p3428_p12 = scmp.lt.u32.totalorder %s4463_s30, %s4679_s17 }
 0xd9f   : > { %p3429_p8 = scmp.lt.u32.totalorder %s3427_s10, %s3423_s16  ;;  %p3431_p0 = scmp.lt.u32.totalorder %s3423_s16, %s4463_s30 }
 0xda0   : > { %p3425_p1 = pnand %p3424_p5, %p4680_p6 }
 0xda1   : > { %p3430_p2 = por %p3429_p8, %p3428_p12 }
 0xda2   : > { %p3426_p3 = pneg %p3425_p1 }
 0xda3   : > { %p3432_p11 = por %p3431_p0, %p3430_p2 }
 0xda5   : > { %p3433_p4 = pnand %p3432_p11, %p3426_p3 }
 0xda7   : > { %3436 = shalt.err (!%p3433_p4)
}
 0xda8   : > { %2644 = dma.vmem_to_hbm [thread:$0]  (%p4680_p6), %s2005_s0, 128, %s4463_s30, %s1991_s24  }
 0xda9 PF: > { %s4681_s11 = sld [smem:[#allocation43_spill]]  ;;  %p2730_p9 = scmp.ge.s32.totalorder %s3567_s1, 2 }
 0xdaa   : > { %p4682_p13 = scmp.ne.s32.totalorder %s4645_s28, 0 }
 0xdac   : > { %p2700_p10 = pnand %p2730_p9, %p4682_p13 }
 0xdaf   : > { %s2016_s13 = sand.u32 1, %s4681_s11  }
 0xdb0   : > { %s2017_s20 = scalar_lea.sflag [#allocation6], %s2016_s13 }
 0xdb1   : > { %3522 = dma.done.wait (!%p2700_p10), %s2017_s20, 128  }
 0xdb2   : > { %3524 = vsyncadd (!%p2700_p10), %s2017_s20, 4294967168  ;;  %s45_s1 = sadd.s32 1, %s3567_s1   ;;  %s4683_s27 = sld [smem:[#allocation44_spill]] }
 0xdb3   : > { %p42_p7 = scmp.ge.s32.totalorder %s45_s1, 6   ;;  %s4684_s28 = sld [smem:[#allocation45_spill]] }
 0xdb4   : > { %s4685_s29 = sld [smem:[#allocation52_spill]]  ;;  %s4686_s30 = sld [smem:[#allocation48_spill]] }
 0xdb5   : > { %s4687_s7 = sld [smem:[#allocation50_spill]]  ;;  %s4688_s19 = sld [smem:[#allocation51_spill]] }
 0xdb6   : > { %s4689_s24 = smov %s3531_s25  ;;  %s4690_s25 = smov %s3535_s26 }
 0xdb7   : > { %s4691_s26 = smov %s4156_s5  ;;  %s4692_s0 = smov %s3559_s18 }
 0xdb8   :  { %44 = sbr.rel (!%p42_p7) target bundleno = 38 (0x26), region = 230 }
 0xdbb   : > { %s4693_s18 = smov %s4687_s7 }
 0xdbf   :  { %2022 = vsyncpa [#allocation5], 1 }
 0xdc0   :  { %2024 = vsyncpa [#allocation5 + $0x1], 1 }
 0xdc1   :  { %2025 = vsyncpa [#allocation8], 1 }
 0xdc2   :  { %2026 = vsyncpa [#allocation11], 1 }
 0xdc3   :  { %2027 = vsyncpa [#allocation14], 1 }
 0xdc4   :  { %2028 = vsyncpa [#allocation17], 1 }
 0xdc5   :  { %2029 = vsyncpa [#allocation20], 1 }
 0xdc6   :  { %2031 = vsyncpa [#allocation20 + $0x1], 1 }
 0xdc7   :  { %2032 = vsyncpa [#allocation23], 1 }
 0xdc8   :  { %2034 = vsyncpa [#allocation23 + $0x1], 1 }
 0xdc9   :  { %2035 = vsyncpa [#allocation26], 1 }
 0xdca   :  { %2036 = vsyncpa [#allocation29], 1 }
 0xdcb   :  { %2037 = vsyncpa [#allocation6], 1 }
 0xdcc   :  { %2039 = vsyncpa [#allocation6 + $0x1], 1 }

// kernel: chordnet_forward.4
= control target key start
LH: loop header
LB: loop body
LE: loop exit
PB: predicated region body
PF: predicated region fallthrough
CT: control target
= control target key end

     0   :  { %s6757_s0 = inlined_call_operand.hbm [shape: f32[16,8,16], index: 0, kind: input, shape index: {}]   ;;  %s6758_s1 = inlined_call_operand.hbm [shape: bf16[16,16], index: 1, kind: input, shape index: {}]   ;;  %s6759_s2 = inlined_call_operand.hbm [shape: f32[1,16], index: 2, kind: input, shape index: {}]   ;;  %s6760_s3 = inlined_call_operand.hbm [shape: bf16[16,16], index: 3, kind: input, shape index: {}]   ;;  %s6761_s4 = inlined_call_operand.hbm [shape: f32[1,16], index: 4, kind: input, shape index: {}]   ;;  %s6762_s5 = inlined_call_operand.hbm [shape: bf16[16,16], index: 5, kind: input, shape index: {}]   ;;  %s6763_s6 = inlined_call_operand.hbm [shape: f32[1,16], index: 6, kind: input, shape index: {}]   ;;  %s6764_s7 = inlined_call_operand.hbm [shape: bf16[16,16], index: 7, kind: input, shape index: {}]   ;;  %s6765_s8 = inlined_call_operand.hbm [shape: f32[1,16], index: 8, kind: input, shape index: {}]   ;;  %s6766_s9 = inlined_call_operand.hbm [shape: bf16[16,64], index: 9, kind: input, shape index: {}]   ;;  %s6767_s10 = inlined_call_operand.hbm [shape: f32[1,64], index: 10, kind: input, shape index: {}]   ;;  %s6768_s11 = inlined_call_operand.hbm [shape: bf16[64,16], index: 11, kind: input, shape index: {}]   ;;  %s6769_s12 = inlined_call_operand.hbm [shape: f32[1,16], index: 12, kind: input, shape index: {}]   ;;  %s6770_s13 = inlined_call_operand.hbm [shape: f32[1,16], index: 13, kind: input, shape index: {}]   ;;  %s6771_s14 = inlined_call_operand.hbm [shape: f32[1,16], index: 14, kind: input, shape index: {}]   ;;  %s6772_s15 = inlined_call_operand.hbm [shape: f32[1,16], index: 15, kind: input, shape index: {}]   ;;  %s6773_s16 = inlined_call_operand.hbm [shape: f32[1,16], index: 16, kind: input, shape index: {}]   ;;  %s6774_s17 = inlined_call_operand.hbm [shape: f32[16,8,16], index: 17, kind: output, shape index: {}]  }
   0x1   :  { %6794 = sst [smem:[#allocation50_spill]] %s6757_s0 }
   0x2   :  { %6795 = sst [smem:[#allocation51_spill]] %s6758_s1 }
   0x3   :  { %6796 = sst [smem:[#allocation52_spill]] %s6759_s2 }
   0x4   :  { %6797 = sst [smem:[#allocation53_spill]] %s6760_s3 }
   0x5   :  { %6798 = sst [smem:[#allocation54_spill]] %s6761_s4 }
   0x6   :  { %6799 = sst [smem:[#allocation55_spill]] %s6773_s16 }
   0x7   :  { %6800 = sst [smem:[#allocation56_spill]] %s6774_s17 }
   0x8   :  { %22 = vsyncpa [#allocation5], 0 }
   0x9   :  { %24 = vsyncpa [#allocation5 + $0x1], 0 }
   0xa   :  { %25 = vsyncpa [#allocation8], 0 }
   0xb   :  { %26 = vsyncpa [#allocation11], 0 }
   0xc   :  { %27 = vsyncpa [#allocation14], 0 }
   0xd   :  { %28 = vsyncpa [#allocation17], 0 }
   0xe   :  { %29 = vsyncpa [#allocation20], 0 }
   0xf   :  { %30 = vsyncpa [#allocation23], 0 }
  0x10   :  { %31 = vsyncpa [#allocation26], 0 }
  0x11   :  { %32 = vsyncpa [#allocation29], 0 }
  0x12   :  { %33 = vsyncpa [#allocation6], 0 }
  0x13   :  { %35 = vsyncpa [#allocation6 + $0x1], 0  ;;  %s5459_s24 = smov 0   ;;  %s5461_s25 = smov 0  }
  0x14   :  { %s5463_s26 = smov 0   ;;  %s5465_s27 = smov 0  }
  0x15   :  { %s5467_s28 = smov 0   ;;  %s5469_s29 = smov 0  }
  0x16 LB: > { %6801 = sst [smem:[#allocation42_spill]] %s5320_s24  ;;  %s6777_s0 = sadd.s32 4294967295, %s5340_s29   ;;  %s5340_s29 = sphi %s5469_s29, %s41_s29   ;;  %s5336_s28 = sphi %s5467_s28, %s6850_s28   ;;  %s5332_s27 = sphi %s5465_s27, %s6848_s27   ;;  %s5328_s26 = sphi %s5463_s26, %s6849_s26   ;;  %s5324_s25 = sphi %s5461_s25, %s6847_s25   ;;  %s5320_s24 = sphi %s5459_s24, %s6846_s24  }
  0x17   : > { %6802 = sst [smem:[#allocation43_spill]] %s5324_s25  ;;  %p3899_p0 = scmp.ge.s32.totalorder %s5340_s29, 1 }
  0x18   : > { %6803 = sst [smem:[#allocation44_spill]] %s5328_s26  ;;  %p5493_p1 = scmp.eq.s32.totalorder %s6777_s0, 0 }
  0x19   : > { %6804 = sst [smem:[#allocation45_spill]] %s5332_s27  ;;  %p461_p2 = scmp.lt.s32.totalorder %s5340_s29, 3 }
  0x1a   : > { %6805 = sst [smem:[#allocation46_spill]] %s5336_s28  ;;  %s5342_s19 = smov [#allocation7]  }
  0x1b   : > { %6806 = sst [smem:[#allocation47_spill]] %s5340_s29  ;;  %p5498_p3 = pnand %p3899_p0, %p461_p2 }
  0x1c   : > { %s6807_s30 = scalar_select %p5493_p1, 1, 0 }
  0x1d   : > { %s6809_s18 = scalar_select %p5498_p3, 1, 0 }
  0x1e   : > { %6808 = sst [smem:[#allocation48_spill]] %s6807_s30  ;;  %s473_s1 = sshll.u32 %s5342_s19, 4  ;;  %s5502_s1 = int_to_ptr.vmem [resolvable:$true] %s473_s1 }
  0x1f   : > { %6810 = sst [smem:[#allocation49_spill]] %s6809_s18  ;;  %p4472_p4 = pneg %p5498_p3 }
  0x20   : > { %s5343_s21 = smov [#allocation10]   ;;  %s5344_s23 = smov [#allocation13]  }
  0x21   : > { %p5509_p6 = pnand %p4472_p4, %p5493_p1  ;;  %s497_s22 = sshll.u32 %s5343_s21, 4  ;;  %s5513_s22 = int_to_ptr.vmem [resolvable:$true] %s497_s22 }
  0x22   : > { %s5515_s0 = sshll.u32 %s5344_s23, 4  ;;  %s6812_s27 = sld [smem:[#allocation51_spill]]  ;;  %s522_s0 = int_to_ptr.vmem [resolvable:$true] %s5515_s0 }
  0x23   : > { %p5525_p8 = pneg %p5509_p6 }
  0x28   : > { %s6813_s16 = smov %s6812_s27  ;;  %s4748_s24 = scalar_lea.hbm %s6812_s27, 128 }
  0x29   : > { %p4749_p7 = scmp.ne.s32.totalorder %s6813_s16, %s4748_s24  ;;  %p4755_p11 = scmp.lt.u32.totalorder %s4748_s24, %s6813_s16 }
  0x2b   : > { %p4751_p9 = pnand %p5525_p8, %p4749_p7 }
  0x2d   : > { %p4752_p10 = pneg %p4751_p9 }
  0x2f   : > { %p4757_p12 = pnand %p4755_p11, %p4752_p10 }
  0x31   : > { %4760 = shalt.err (!%p4757_p12)
}
  0x32   : > { %s4761_s17 = scalar_lea.vmem %s5502_s1, 128  ;;  %p4769_p4 = scmp.lt.s32.totalorder %s5502_s1, %s5502_s1 }
  0x33   : > { %p4762_p13 = scmp.ne.s32.totalorder %s5502_s1, %s4761_s17  ;;  %p4770_p5 = scmp.lt.s32.totalorder %s4761_s17, %s4761_s17 }
  0x35   : > { %p4764_p0 = pnand %p4762_p13, %p5525_p8  ;;  %p4771_p7 = por %p4770_p5, %p4769_p4 }
  0x37   : > { %p4765_p2 = pneg %p4764_p0 }
  0x39   : > { %p4772_p9 = pnand %p4771_p7, %p4765_p2 }
  0x3b   : > { %4775 = shalt.err (!%p4772_p9)
}
  0x3c   : > { %s5345_s25 = smov 64   ;;  %s5346_s24 = smov 4  }
  0x3d   : > { %4475 = dma.hbm_to_vmem [thread:$0]  (!%p5509_p6), %s6813_s16, 128, %s5502_s1, [#allocation8], %s5345_s25, %s5345_s25, %s5346_s24  }
  0x3e   : > { %s6815_s3 = sld [smem:[#allocation53_spill]] }
  0x44   : > { %s4776_s23 = scalar_lea.hbm %s6815_s3, 128 }
  0x45   : > { %p4777_p5 = scmp.ne.s32.totalorder %s6815_s3, %s4776_s23  ;;  %p4783_p12 = scmp.lt.u32.totalorder %s4776_s23, %s6815_s3 }
  0x47   : > { %p4779_p10 = pnand %p4777_p5, %p5525_p8 }
  0x49   : > { %p4780_p11 = pneg %p4779_p10 }
  0x4b   : > { %p4785_p13 = pnand %p4783_p12, %p4780_p11 }
  0x4d   : > { %4788 = shalt.err (!%p4785_p13)
}
  0x4e   : > { %s4789_s1 = scalar_lea.vmem %s5513_s22, 128  ;;  %p4797_p7 = scmp.lt.s32.totalorder %s5513_s22, %s5513_s22 }
  0x4f   : > { %p4790_p0 = scmp.ne.s32.totalorder %s5513_s22, %s4789_s1  ;;  %p4798_p9 = scmp.lt.s32.totalorder %s4789_s1, %s4789_s1 }
  0x51   : > { %p4792_p2 = pnand %p4790_p0, %p5525_p8  ;;  %p4799_p5 = por %p4798_p9, %p4797_p7 }
  0x53   : > { %p4793_p4 = pneg %p4792_p2 }
  0x55   : > { %p4800_p10 = pnand %p4799_p5, %p4793_p4 }
  0x57   : > { %4803 = shalt.err (!%p4800_p10)
}
  0x58   : > { %4481 = dma.hbm_to_vmem [thread:$0]  (!%p5509_p6), %s6815_s3, 128, %s5513_s22, [#allocation11], %s5345_s25, %s5345_s25, %s5346_s24  }
  0x59   : > { %s4804_s18 = scalar_lea.hbm %s6762_s5, 128 }
  0x5a   : > { %p4805_p11 = scmp.ne.s32.totalorder %s6762_s5, %s4804_s18  ;;  %p4811_p0 = scmp.lt.u32.totalorder %s4804_s18, %s6762_s5 }
  0x5c   : > { %p4807_p12 = pnand %p4805_p11, %p5525_p8 }
  0x5e   : > { %p4808_p13 = pneg %p4807_p12 }
  0x60   : > { %p4813_p2 = pnand %p4811_p0, %p4808_p13 }
  0x62   : > { %4816 = shalt.err (!%p4813_p2)
}
  0x63   : > { %s4817_s1 = scalar_lea.vmem %s522_s0, 128  ;;  %p4825_p5 = scmp.lt.s32.totalorder %s522_s0, %s522_s0 }
  0x64   : > { %p4818_p4 = scmp.ne.s32.totalorder %s522_s0, %s4817_s1  ;;  %p4826_p10 = scmp.lt.s32.totalorder %s4817_s1, %s4817_s1 }
  0x66   : > { %p4820_p7 = pnand %p4818_p4, %p5525_p8  ;;  %p4827_p3 = por %p4826_p10, %p4825_p5 }
  0x68   : > { %p4821_p9 = pneg %p4820_p7 }
  0x6a   : > { %p4828_p1 = pnand %p4827_p3, %p4821_p9 }
  0x6c   : > { %4831 = shalt.err (!%p4828_p1)
}
  0x6d   : > { %4487 = dma.hbm_to_vmem [thread:$0]  (!%p5509_p6), %s6762_s5, 128, %s522_s0, [#allocation14], %s5345_s25, %s5345_s25, %s5346_s24  }
  0x6e   : > { %s5347_s28 = smov [#allocation16]   ;;  %s5348_s27 = smov [#allocation19]  }
  0x6f   : > { %s545_s29 = sshll.u32 %s5347_s28, 4  ;;  %s571_s18 = sshll.u32 %s5348_s27, 4  ;;  %s546_s29 = int_to_ptr.vmem [resolvable:$true] %s545_s29  ;;  %s572_s18 = int_to_ptr.vmem [resolvable:$true] %s571_s18 }
  0x70   : > { %s4832_s23 = scalar_lea.hbm %s6764_s7, 128 }
  0x71   : > { %p4833_p1 = scmp.ne.s32.totalorder %s6764_s7, %s4832_s23  ;;  %p4839_p12 = scmp.lt.u32.totalorder %s4832_s23, %s6764_s7 }
  0x73   : > { %p4835_p3 = pnand %p4833_p1, %p5525_p8 }
  0x75   : > { %p4836_p11 = pneg %p4835_p3 }
  0x77   : > { %p4841_p13 = pnand %p4839_p12, %p4836_p11 }
  0x79   : > { %4844 = shalt.err (!%p4841_p13)
}
  0x7a   : > { %s4845_s0 = scalar_lea.vmem %s546_s29, 128  ;;  %p4853_p7 = scmp.lt.s32.totalorder %s546_s29, %s546_s29 }
  0x7b   : > { %p4846_p0 = scmp.ne.s32.totalorder %s546_s29, %s4845_s0  ;;  %p4854_p9 = scmp.lt.s32.totalorder %s4845_s0, %s4845_s0 }
  0x7d   : > { %p4848_p2 = pnand %p4846_p0, %p5525_p8  ;;  %p4855_p5 = por %p4854_p9, %p4853_p7 }
  0x7f   : > { %p4849_p4 = pneg %p4848_p2 }
  0x81   : > { %p4856_p10 = pnand %p4855_p5, %p4849_p4 }
  0x83   : > { %4859 = shalt.err (!%p4856_p10)
}
  0x84   : > { %4493 = dma.hbm_to_vmem [thread:$0]  (!%p5509_p6), %s6764_s7, 128, %s546_s29, [#allocation17], %s5345_s25, %s5345_s25, %s5346_s24  }
  0x85   : > { %s4860_s19 = scalar_lea.hbm %s6766_s9, 128 }
  0x86   : > { %p4861_p1 = scmp.ne.s32.totalorder %s6766_s9, %s4860_s19  ;;  %p4867_p12 = scmp.lt.u32.totalorder %s4860_s19, %s6766_s9 }
  0x88   : > { %p4863_p3 = pnand %p4861_p1, %p5525_p8 }
  0x8a   : > { %p4864_p11 = pneg %p4863_p3 }
  0x8c   : > { %p4869_p13 = pnand %p4867_p12, %p4864_p11 }
  0x8e   : > { %4872 = shalt.err (!%p4869_p13)
}
  0x8f   : > { %s4873_s22 = scalar_lea.vmem %s572_s18, 128  ;;  %p4881_p7 = scmp.lt.s32.totalorder %s572_s18, %s572_s18 }
  0x90   : > { %p4874_p0 = scmp.ne.s32.totalorder %s572_s18, %s4873_s22  ;;  %p4882_p9 = scmp.lt.s32.totalorder %s4873_s22, %s4873_s22 }
  0x92   : > { %p4876_p2 = pnand %p4874_p0, %p5525_p8  ;;  %p4883_p5 = por %p4882_p9, %p4881_p7 }
  0x94   : > { %p4877_p4 = pneg %p4876_p2 }
  0x96   : > { %p4884_p10 = pnand %p4883_p5, %p4877_p4 }
  0x98   : > { %4887 = shalt.err (!%p4884_p10)
}
  0x99   : > { %4499 = dma.hbm_to_vmem [thread:$0]  (!%p5509_p6), %s6766_s9, 128, %s572_s18, [#allocation20], %s5345_s25, %s5345_s25, %s5346_s24  }
  0x9a   : > { %s5349_s3 = smov [#allocation22]   ;;  %s5350_s28 = smov [#allocation25]  }
  0x9b   : > { %s600_s26 = sshll.u32 %s5349_s3, 4  ;;  %s625_s27 = sshll.u32 %s5350_s28, 4  ;;  %s601_s26 = int_to_ptr.vmem [resolvable:$true] %s600_s26  ;;  %s626_s27 = int_to_ptr.vmem [resolvable:$true] %s625_s27 }
  0x9c   : > { %s4888_s23 = scalar_lea.hbm %s6768_s11, 512 }
  0x9d   : > { %p4889_p1 = scmp.ne.s32.totalorder %s6768_s11, %s4888_s23  ;;  %p4895_p12 = scmp.lt.u32.totalorder %s4888_s23, %s6768_s11 }
  0x9f   : > { %p4891_p3 = pnand %p4889_p1, %p5525_p8 }
  0xa1   : > { %p4892_p11 = pneg %p4891_p3 }
  0xa3   : > { %p4897_p13 = pnand %p4895_p12, %p4892_p11 }
  0xa5   : > { %4900 = shalt.err (!%p4897_p13)
}
  0xa6   : > { %s4901_s18 = scalar_lea.vmem %s601_s26, 512  ;;  %p4909_p7 = scmp.lt.s32.totalorder %s601_s26, %s601_s26 }
  0xa7   : > { %p4902_p0 = scmp.ne.s32.totalorder %s601_s26, %s4901_s18  ;;  %p4910_p9 = scmp.lt.s32.totalorder %s4901_s18, %s4901_s18 }
  0xa9   : > { %p4904_p2 = pnand %p4902_p0, %p5525_p8  ;;  %p4911_p5 = por %p4910_p9, %p4909_p7 }
  0xab   : > { %p4905_p4 = pneg %p4904_p2 }
  0xad   : > { %p4912_p10 = pnand %p4911_p5, %p4905_p4 }
  0xaf   : > { %4915 = shalt.err (!%p4912_p10)
}
  0xb0   : > { %4505 = dma.hbm_to_vmem [thread:$0]  (!%p5509_p6), %s6768_s11, 512, %s601_s26, [#allocation23], %s5345_s25, %s5345_s25, %s5346_s24  }
  0xb1   : > { %s4916_s21 = scalar_lea.hbm %s6770_s13, 16 }
  0xb2   : > { %p4917_p1 = scmp.ne.s32.totalorder %s6770_s13, %s4916_s21  ;;  %p4923_p12 = scmp.lt.u32.totalorder %s4916_s21, %s6770_s13 }
  0xb4   : > { %p4919_p3 = pnand %p4917_p1, %p5525_p8 }
  0xb6   : > { %p4920_p11 = pneg %p4919_p3 }
  0xb8   : > { %p4925_p13 = pnand %p4923_p12, %p4920_p11 }
  0xba   : > { %4928 = shalt.err (!%p4925_p13)
}
  0xbb   : > { %s4929_s29 = scalar_lea.vmem %s626_s27, 16  ;;  %s4936_s25 = scalar_lea.vmem %s626_s27, 32 }
  0xbc   : > { %p4930_p0 = scmp.ne.s32.totalorder %s626_s27, %s4929_s29  ;;  %p4937_p7 = scmp.lt.s32.totalorder %s626_s27, %s626_s27 }
  0xbd   : > { %p4938_p9 = scmp.lt.s32.totalorder %s4936_s25, %s4929_s29 }
  0xbe   : > { %p4932_p2 = pnand %p4930_p0, %p5525_p8 }
  0xbf   : > { %p4939_p5 = por %p4938_p9, %p4937_p7 }
  0xc0   : > { %p4933_p4 = pneg %p4932_p2 }
  0xc2   : > { %p4940_p10 = pnand %p4939_p5, %p4933_p4 }
  0xc4   : > { %4943 = shalt.err (!%p4940_p10)
}
  0xc5   : > { %4511 = dma.hbm_to_vmem [thread:$0]  (!%p5509_p6), %s6770_s13, 16, %s626_s27, [#allocation26]  }
  0xc6   : > { %s5351_s18 = smov [#allocation28]   ;;  %s5352_s3 = smov [#allocation9]  }
  0xc7   : > { %s647_s0 = sshll.u32 %s5351_s18, 4  ;;  %s487_s28 = sshll.u32 %s5352_s3, 4  ;;  %s648_s0 = int_to_ptr.vmem [resolvable:$true] %s647_s0  ;;  %s488_s28 = int_to_ptr.vmem [resolvable:$true] %s487_s28 }
  0xc8   : > { %s4944_s23 = scalar_lea.hbm %s6772_s15, 16 }
  0xc9   : > { %p4945_p1 = scmp.ne.s32.totalorder %s6772_s15, %s4944_s23  ;;  %p4951_p12 = scmp.lt.u32.totalorder %s4944_s23, %s6772_s15 }
  0xcb   : > { %p4947_p3 = pnand %p4945_p1, %p5525_p8 }
  0xcd   : > { %p4948_p11 = pneg %p4947_p3 }
  0xcf   : > { %p4953_p13 = pnand %p4951_p12, %p4948_p11 }
  0xd1   : > { %4956 = shalt.err (!%p4953_p13)
}
  0xd2   : > { %s4957_s27 = scalar_lea.vmem %s648_s0, 16  ;;  %s4964_s25 = scalar_lea.vmem %s648_s0, 32 }
  0xd3   : > { %p4958_p0 = scmp.ne.s32.totalorder %s648_s0, %s4957_s27  ;;  %p4965_p7 = scmp.lt.s32.totalorder %s648_s0, %s648_s0 }
  0xd4   : > { %p4966_p9 = scmp.lt.s32.totalorder %s4964_s25, %s4957_s27 }
  0xd5   : > { %p4960_p2 = pnand %p4958_p0, %p5525_p8 }
  0xd6   : > { %p4967_p5 = por %p4966_p9, %p4965_p7 }
  0xd7   : > { %p4961_p4 = pneg %p4960_p2 }
  0xd9   : > { %p4968_p10 = pnand %p4967_p5, %p4961_p4 }
  0xdb   : > { %4971 = shalt.err (!%p4968_p10)
}
  0xdc   : > { %4517 = dma.hbm_to_vmem [thread:$0]  (!%p5509_p6), %s6772_s15, 16, %s648_s0, [#allocation29]  }
  0xdd   : > { %s6816_s2 = sld [smem:[#allocation52_spill]] }
  0xe3   : > { %s4972_s19 = scalar_lea.hbm %s6816_s2, 16 }
  0xe4   : > { %p4973_p1 = scmp.ne.s32.totalorder %s6816_s2, %s4972_s19  ;;  %p4979_p12 = scmp.lt.u32.totalorder %s4972_s19, %s6816_s2 }
  0xe6   : > { %p4975_p3 = pnand %p4973_p1, %p5525_p8 }
  0xe8   : > { %p4976_p11 = pneg %p4975_p3 }
  0xea   : > { %p4981_p13 = pnand %p4979_p12, %p4976_p11 }
  0xec   : > { %4984 = shalt.err (!%p4981_p13)
}
  0xed   : > { %s4985_s22 = scalar_lea.vmem %s488_s28, 16  ;;  %s4992_s0 = scalar_lea.vmem %s488_s28, 32 }
  0xee   : > { %p4986_p0 = scmp.ne.s32.totalorder %s488_s28, %s4985_s22  ;;  %p4993_p7 = scmp.lt.s32.totalorder %s488_s28, %s488_s28 }
  0xef   : > { %p4994_p9 = scmp.lt.s32.totalorder %s4992_s0, %s4985_s22 }
  0xf0   : > { %p4988_p2 = pnand %p4986_p0, %p5525_p8 }
  0xf1   : > { %p4995_p5 = por %p4994_p9, %p4993_p7 }
  0xf2   : > { %p4989_p4 = pneg %p4988_p2 }
  0xf4   : > { %p4996_p10 = pnand %p4995_p5, %p4989_p4 }
  0xf6   : > { %4999 = shalt.err (!%p4996_p10)
}
  0xf7   : > { %4478 = dma.hbm_to_vmem [thread:$0]  (!%p5509_p6), %s6816_s2, 16, %s488_s28, [#allocation8]  }
  0xf8   : > { %s5353_s25 = smov [#allocation12]   ;;  %s5354_s26 = smov [#allocation15]  }
  0xf9   : > { %s511_s24 = sshll.u32 %s5353_s25, 4  ;;  %s535_s18 = sshll.u32 %s5354_s26, 4  ;;  %s512_s24 = int_to_ptr.vmem [resolvable:$true] %s511_s24  ;;  %s536_s18 = int_to_ptr.vmem [resolvable:$true] %s535_s18 }
  0xfa   : > { %s6817_s4 = sld [smem:[#allocation54_spill]] }
 0x100   : > { %s5000_s21 = scalar_lea.hbm %s6817_s4, 16 }
 0x101   : > { %p5001_p1 = scmp.ne.s32.totalorder %s6817_s4, %s5000_s21  ;;  %p5007_p12 = scmp.lt.u32.totalorder %s5000_s21, %s6817_s4 }
 0x103   : > { %p5003_p3 = pnand %p5001_p1, %p5525_p8 }
 0x105   : > { %p5004_p11 = pneg %p5003_p3 }
 0x107   : > { %p5009_p13 = pnand %p5007_p12, %p5004_p11 }
 0x109   : > { %5012 = shalt.err (!%p5009_p13)
}
 0x10a   : > { %s5013_s28 = scalar_lea.vmem %s512_s24, 16  ;;  %s5020_s0 = scalar_lea.vmem %s512_s24, 32 }
 0x10b   : > { %p5014_p0 = scmp.ne.s32.totalorder %s512_s24, %s5013_s28  ;;  %p5021_p7 = scmp.lt.s32.totalorder %s512_s24, %s512_s24 }
 0x10c   : > { %p5022_p9 = scmp.lt.s32.totalorder %s5020_s0, %s5013_s28 }
 0x10d   : > { %p5016_p2 = pnand %p5014_p0, %p5525_p8 }
 0x10e   : > { %p5023_p5 = por %p5022_p9, %p5021_p7 }
 0x10f   : > { %p5017_p4 = pneg %p5016_p2 }
 0x111   : > { %p5024_p10 = pnand %p5023_p5, %p5017_p4 }
 0x113   : > { %5027 = shalt.err (!%p5024_p10)
}
 0x114   : > { %4484 = dma.hbm_to_vmem [thread:$0]  (!%p5509_p6), %s6817_s4, 16, %s512_s24, [#allocation11]  }
 0x115   : > { %s5028_s3 = scalar_lea.hbm %s6763_s6, 16 }
 0x116   : > { %p5029_p1 = scmp.ne.s32.totalorder %s6763_s6, %s5028_s3  ;;  %p5035_p12 = scmp.lt.u32.totalorder %s5028_s3, %s6763_s6 }
 0x118   : > { %p5031_p3 = pnand %p5029_p1, %p5525_p8 }
 0x11a   : > { %p5032_p11 = pneg %p5031_p3 }
 0x11c   : > { %p5037_p13 = pnand %p5035_p12, %p5032_p11 }
 0x11e   : > { %5040 = shalt.err (!%p5037_p13)
}
 0x11f   : > { %s5041_s1 = scalar_lea.vmem %s536_s18, 16  ;;  %s5048_s24 = scalar_lea.vmem %s536_s18, 32 }
 0x120   : > { %p5042_p0 = scmp.ne.s32.totalorder %s536_s18, %s5041_s1  ;;  %p5049_p7 = scmp.lt.s32.totalorder %s536_s18, %s536_s18 }
 0x121   : > { %p5050_p9 = scmp.lt.s32.totalorder %s5048_s24, %s5041_s1 }
 0x122   : > { %p5044_p2 = pnand %p5042_p0, %p5525_p8 }
 0x123   : > { %p5051_p5 = por %p5050_p9, %p5049_p7 }
 0x124   : > { %p5045_p4 = pneg %p5044_p2 }
 0x126   : > { %p5052_p10 = pnand %p5051_p5, %p5045_p4 }
 0x128   : > { %5055 = shalt.err (!%p5052_p10)
}
 0x129   : > { %4490 = dma.hbm_to_vmem [thread:$0]  (!%p5509_p6), %s6763_s6, 16, %s536_s18, [#allocation14]  }
 0x12a   : > { %s5355_s0 = smov [#allocation18]   ;;  %s5356_s27 = smov [#allocation21]  }
 0x12b   : > { %s559_s29 = sshll.u32 %s5355_s0, 4  ;;  %s587_s25 = sshll.u32 %s5356_s27, 4  ;;  %s560_s29 = int_to_ptr.vmem [resolvable:$true] %s559_s29  ;;  %s588_s25 = int_to_ptr.vmem [resolvable:$true] %s587_s25 }
 0x12c   : > { %s5056_s19 = scalar_lea.hbm %s6765_s8, 16 }
 0x12d   : > { %p5057_p1 = scmp.ne.s32.totalorder %s6765_s8, %s5056_s19  ;;  %p5063_p12 = scmp.lt.u32.totalorder %s5056_s19, %s6765_s8 }
 0x12f   : > { %p5059_p3 = pnand %p5057_p1, %p5525_p8 }
 0x131   : > { %p5060_p11 = pneg %p5059_p3 }
 0x133   : > { %p5065_p13 = pnand %p5063_p12, %p5060_p11 }
 0x135   : > { %5068 = shalt.err (!%p5065_p13)
}
 0x136   : > { %s5069_s18 = scalar_lea.vmem %s560_s29, 16  ;;  %s5076_s24 = scalar_lea.vmem %s560_s29, 32 }
 0x137   : > { %p5070_p0 = scmp.ne.s32.totalorder %s560_s29, %s5069_s18  ;;  %p5077_p7 = scmp.lt.s32.totalorder %s560_s29, %s560_s29 }
 0x138   : > { %p5078_p9 = scmp.lt.s32.totalorder %s5076_s24, %s5069_s18 }
 0x139   : > { %p5072_p2 = pnand %p5070_p0, %p5525_p8 }
 0x13a   : > { %p5079_p5 = por %p5078_p9, %p5077_p7 }
 0x13b   : > { %p5073_p4 = pneg %p5072_p2 }
 0x13d   : > { %p5080_p10 = pnand %p5079_p5, %p5073_p4 }
 0x13f   : > { %5083 = shalt.err (!%p5080_p10)
}
 0x140   : > { %4496 = dma.hbm_to_vmem [thread:$0]  (!%p5509_p6), %s6765_s8, 16, %s560_s29, [#allocation17]  }
 0x141   : > { %s5084_s26 = scalar_lea.hbm %s6767_s10, 16 }
 0x142   : > { %p5085_p1 = scmp.ne.s32.totalorder %s6767_s10, %s5084_s26  ;;  %p5091_p12 = scmp.lt.u32.totalorder %s5084_s26, %s6767_s10 }
 0x144   : > { %p5087_p3 = pnand %p5085_p1, %p5525_p8 }
 0x146   : > { %p5088_p11 = pneg %p5087_p3 }
 0x148   : > { %p5093_p13 = pnand %p5091_p12, %p5088_p11 }
 0x14a   : > { %5096 = shalt.err (!%p5093_p13)
}
 0x14b   : > { %s5097_s17 = scalar_lea.vmem %s588_s25, 16  ;;  %s5104_s29 = scalar_lea.vmem %s588_s25, 32 }
 0x14c   : > { %p5098_p0 = scmp.ne.s32.totalorder %s588_s25, %s5097_s17  ;;  %p5105_p7 = scmp.lt.s32.totalorder %s588_s25, %s588_s25 }
 0x14d   : > { %p5106_p9 = scmp.lt.s32.totalorder %s5104_s29, %s5097_s17 }
 0x14e   : > { %p5100_p2 = pnand %p5098_p0, %p5525_p8 }
 0x14f   : > { %p5107_p5 = por %p5106_p9, %p5105_p7 }
 0x150   : > { %p5101_p4 = pneg %p5100_p2 }
 0x152   : > { %p5108_p10 = pnand %p5107_p5, %p5101_p4 }
 0x154   : > { %5111 = shalt.err (!%p5108_p10)
}
 0x155   : > { %4502 = dma.hbm_to_vmem [thread:$0]  (!%p5509_p6), %s6767_s10, 16, %s588_s25, [#allocation20]  }
 0x156   : > { %s5357_s24 = smov [#allocation24]   ;;  %s5358_s28 = smov [#allocation27]  }
 0x157   : > { %s614_s22 = sshll.u32 %s5357_s24, 4  ;;  %s636_s0 = sshll.u32 %s5358_s28, 4  ;;  %s615_s22 = int_to_ptr.vmem [resolvable:$true] %s614_s22  ;;  %s637_s0 = int_to_ptr.vmem [resolvable:$true] %s636_s0 }
 0x158   : > { %s5112_s3 = scalar_lea.hbm %s6769_s12, 16 }
 0x159   : > { %p5113_p1 = scmp.ne.s32.totalorder %s6769_s12, %s5112_s3  ;;  %p5119_p12 = scmp.lt.u32.totalorder %s5112_s3, %s6769_s12 }
 0x15b   : > { %p5115_p3 = pnand %p5113_p1, %p5525_p8 }
 0x15d   : > { %p5116_p11 = pneg %p5115_p3 }
 0x15f   : > { %p5121_p13 = pnand %p5119_p12, %p5116_p11 }
 0x161   : > { %5124 = shalt.err (!%p5121_p13)
}
 0x162   : > { %s5125_s25 = scalar_lea.vmem %s615_s22, 16  ;;  %s5132_s29 = scalar_lea.vmem %s615_s22, 32 }
 0x163   : > { %p5126_p0 = scmp.ne.s32.totalorder %s615_s22, %s5125_s25  ;;  %p5133_p7 = scmp.lt.s32.totalorder %s615_s22, %s615_s22 }
 0x164   : > { %p5134_p9 = scmp.lt.s32.totalorder %s5132_s29, %s5125_s25 }
 0x165   : > { %p5128_p2 = pnand %p5126_p0, %p5525_p8 }
 0x166   : > { %p5135_p5 = por %p5134_p9, %p5133_p7 }
 0x167   : > { %p5129_p4 = pneg %p5128_p2 }
 0x169   : > { %p5136_p10 = pnand %p5135_p5, %p5129_p4 }
 0x16b   : > { %5139 = shalt.err (!%p5136_p10)
}
 0x16c   : > { %4508 = dma.hbm_to_vmem [thread:$0]  (!%p5509_p6), %s6769_s12, 16, %s615_s22, [#allocation23]  }
 0x16d   : > { %s5140_s27 = scalar_lea.hbm %s6771_s14, 16 }
 0x16e   : > { %p5141_p1 = scmp.ne.s32.totalorder %s6771_s14, %s5140_s27  ;;  %p5147_p12 = scmp.lt.u32.totalorder %s5140_s27, %s6771_s14 }
 0x170   : > { %p5143_p3 = pnand %p5141_p1, %p5525_p8 }
 0x172   : > { %p5144_p11 = pneg %p5143_p3 }
 0x174   : > { %p5149_p13 = pnand %p5147_p12, %p5144_p11 }
 0x176   : > { %5152 = shalt.err (!%p5149_p13)
}
 0x177   : > { %s5153_s23 = scalar_lea.vmem %s637_s0, 16  ;;  %s5160_s22 = scalar_lea.vmem %s637_s0, 32 }
 0x178   : > { %p5154_p0 = scmp.ne.s32.totalorder %s637_s0, %s5153_s23  ;;  %p5161_p7 = scmp.lt.s32.totalorder %s637_s0, %s637_s0 }
 0x179   : > { %p5162_p9 = scmp.lt.s32.totalorder %s5160_s22, %s5153_s23 }
 0x17a   : > { %p5156_p2 = pnand %p5154_p0, %p5525_p8 }
 0x17b   : > { %p5163_p5 = por %p5162_p9, %p5161_p7 }
 0x17c   : > { %p5157_p4 = pneg %p5156_p2 }
 0x17e   : > { %p5164_p10 = pnand %p5163_p5, %p5157_p4 }
 0x180   : > { %5167 = shalt.err (!%p5164_p10)
}
 0x181   : > { %4514 = dma.hbm_to_vmem [thread:$0]  (!%p5509_p6), %s6771_s14, 16, %s637_s0, [#allocation26]  }
 0x182   : > { %s5359_s29 = smov [#allocation30]   ;;  %s6818_s28 = sld [smem:[#allocation55_spill]] }
 0x183   : > { %s658_s1 = sshll.u32 %s5359_s29, 4  ;;  %s659_s1 = int_to_ptr.vmem [resolvable:$true] %s658_s1 }
 0x188   : > { %s6819_s3 = smov %s6818_s28  ;;  %s5168_s27 = scalar_lea.hbm %s6818_s28, 16 }
 0x189   : > { %p5169_p1 = scmp.ne.s32.totalorder %s6819_s3, %s5168_s27  ;;  %p5175_p12 = scmp.lt.u32.totalorder %s5168_s27, %s6819_s3 }
 0x18b   : > { %p5171_p3 = pnand %p5169_p1, %p5525_p8 }
 0x18d   : > { %p5172_p11 = pneg %p5171_p3 }
 0x18f   : > { %p5177_p13 = pnand %p5175_p12, %p5172_p11 }
 0x191   : > { %5180 = shalt.err (!%p5177_p13)
}
 0x192   : > { %s5181_s0 = scalar_lea.vmem %s659_s1, 16  ;;  %s5188_s22 = scalar_lea.vmem %s659_s1, 32 }
 0x193   : > { %p5182_p0 = scmp.ne.s32.totalorder %s659_s1, %s5181_s0  ;;  %p5189_p7 = scmp.lt.s32.totalorder %s659_s1, %s659_s1 }
 0x194   : > { %p5190_p9 = scmp.lt.s32.totalorder %s5188_s22, %s5181_s0 }
 0x195   : > { %p5184_p2 = pnand %p5182_p0, %p5525_p8 }
 0x196   : > { %p5191_p5 = por %p5190_p9, %p5189_p7 }
 0x197   : > { %p5185_p4 = pneg %p5184_p2 }
 0x199   : > { %p5192_p10 = pnand %p5191_p5, %p5185_p4 }
 0x19b   : > { %5195 = shalt.err (!%p5192_p10)
}
 0x19c   : > { %s6820_s29 = sld [smem:[#allocation47_spill]]  ;;  %s6821_s18 = sld [smem:[#allocation46_spill]] }
 0x19d   : > { %s6822_s24 = sld [smem:[#allocation44_spill]]  ;;  %s6823_s28 = sld [smem:[#allocation43_spill]] }
 0x19e   : > { %s6824_s30 = sld [smem:[#allocation42_spill]]  ;;  %s6825_s27 = sld [smem:[#allocation48_spill]] }
 0x19f   : > { %4520 = dma.hbm_to_vmem [thread:$0]  (!%p5509_p6), %s6819_s3, 16, %s659_s1, [#allocation29]  }
 0x1a0   : > { %s6832_s2 = sld [smem:[#allocation50_spill]] }
 0x1a2   : > { %s3898_s26 = sadd.s32 4294967294, %s6820_s29   ;;  %s53_s19 = sadd.s32 1, %s6821_s18 }
 0x1a3   : > { %p55_p8 = scmp.ge.s32.totalorder %s53_s19, 2  ;;  %s60_s20 = sadd.s32 1, %s6822_s24 }
 0x1a4   : > { %p67_p1 = scmp.ne.s32.totalorder %s6822_s24, %s6823_s28  ;;  %p68_p3 = scmp.eq.s32.totalorder %s6820_s29, 0 }
 0x1a5   : > { %s6852_s19 = smov (%p55_p8, %s53_s19), 0  ;;  %p73_p12 = scmp.ne.s32.totalorder %s6823_s28, %s6824_s30 }
 0x1a6   : > { %p5848_p11 = por %p68_p3, %p67_p1  ;;  %s57_s1 = ssub.s32 %s6821_s18, %s6852_s19 }
 0x1a7   : > { %s6827_s23 = sadd.s32 4294967295, %s6820_s29   ;;  %p58_p13 = scmp.eq.s32.totalorder %s57_s1, 0 }
 0x1a8   : > { %p448_p6 = scmp.eq.s32.totalorder %s6827_s23, 1  ;;  %p6828_p0 = scmp.ne.s32.totalorder %s6825_s27, 0 }
 0x1a9   : > { %p454_p7 = scmp.eq.s32.totalorder %s3898_s26, 1  ;;  %p4545_p5 = scmp.lt.s32.totalorder %s6820_s29, 2 }
 0x1aa   : > { %p5860_p2 = por %p6828_p0, %p73_p12  ;;  %p5864_p4 = por %p448_p6, %p67_p1 }
 0x1ab   : > { %s5869_s17 = scalar_select %p58_p13, %s6822_s24, %s60_s20  }
 0x1ac   : > { %s6830_s22 = scalar_select %p5864_p4, 1, 0 }
 0x1ad   : > { %p5871_p9 = por %p454_p7, %p73_p12  ;;  %s669_s28 = sand.u32 1, %s6822_s24  }
 0x1ae   : > { %s4022_s30 = sshll.u32 %s6821_s18, 10  ;;  %s3917_s1 = sshll.u32 %s669_s28, 6 }
 0x1af   : > { %s6831_s25 = scalar_select %p5871_p9, 1, 0 }
 0x1b0   : > { %s5881_s3 = scalar_lea.hbm %s6832_s2, %s4022_s30  ;;  %s673_s26 = scalar_lea.vmem [#allocation4], %s3917_s1 }
 0x1b1   : > { %s680_s20 = sshll.u32 %s673_s26, 4  ;;  %p5885_p10 = pnand %p4545_p5, %p5848_p11  ;;  %s5889_s20 = int_to_ptr.vmem [resolvable:$true] %s680_s20 }
 0x1b2   : > { %s5891_s29 = scalar_lea.sflag [#allocation5], %s669_s28  ;;  %s5196_s18 = scalar_lea.hbm %s5881_s3, 1024 }
 0x1b3   : > { %p5197_p8 = scmp.ne.s32.totalorder %s5881_s3, %s5196_s18  ;;  %p5198_p1 = pneg %p5885_p10 }
 0x1b4   : > { %s5201_s30 = scalar_lea.hbm %s6832_s2, 2048  ;;  %p5202_p11 = scmp.lt.u32.totalorder %s5881_s3, %s6832_s2 }
 0x1b5   : > { %p5199_p3 = pnand %p5198_p1, %p5197_p8  ;;  %p5203_p6 = scmp.lt.u32.totalorder %s5201_s30, %s5196_s18 }
 0x1b6   : > { %p5205_p0 = scmp.lt.u32.totalorder %s5196_s18, %s5881_s3 }
 0x1b7   : > { %p5200_p12 = pneg %p5199_p3  ;;  %p5204_p13 = por %p5203_p6, %p5202_p11 }
 0x1b9   : > { %p5206_p7 = por %p5205_p0, %p5204_p13 }
 0x1bb   : > { %p5207_p5 = pnand %p5206_p7, %p5200_p12 }
 0x1bd   : > { %5210 = shalt.err (!%p5207_p5)
}
 0x1be   : > { %s5211_s28 = scalar_lea.vmem %s5889_s20, 1024  ;;  %s5360_s23 = smov [#allocation4]  }
 0x1bf   : > { %p5212_p8 = scmp.ne.s32.totalorder %s5889_s20, %s5211_s28  ;;  %s5216_s26 = sshll.u32 %s5360_s23, 4  ;;  %s5217_s26 = int_to_ptr.vmem [resolvable:$false] %s5216_s26 }
 0x1c0   : > { %s5218_s24 = scalar_lea.vmem %s5217_s26, 2048  ;;  %p5219_p4 = scmp.lt.s32.totalorder %s5889_s20, %s5217_s26 }
 0x1c1   : > { %p5214_p3 = pnand %p5212_p8, %p5198_p1  ;;  %p5220_p11 = scmp.lt.s32.totalorder %s5218_s24, %s5211_s28 }
 0x1c3   : > { %p5215_p9 = pneg %p5214_p3  ;;  %p5221_p6 = por %p5220_p11, %p5219_p4 }
 0x1c5   : > { %p5222_p13 = pnand %p5221_p6, %p5215_p9 }
 0x1c7   : > { %5225 = shalt.err (!%p5222_p13)
}
 0x1c8   : > { %s5361_s18 = smov 128   ;;  %s5362_s21 = smov 8  }
 0x1c9   : > { %4524 = dma.hbm_to_vmem [thread:$0]  (!%p5885_p10), %s5881_s3, 1024, %s5889_s20, %s5891_s29, %s5361_s18, %s5361_s18, %s5362_s21  }
 0x1ca   : > { %s6834_s30 = sld [smem:[#allocation49_spill]] }
 0x1d0   : > { %p6835_p1 = scmp.ne.s32.totalorder %s6834_s30, 0 }
 0x1d1   : > { %s6836_s1 = sld [smem:[#allocation43_spill]] (!%p6835_p1) }
 0x1d2   : > { %692 = sbr.rel (%p6835_p1) target bundleno = 3554 (0xde2), region = 88 }
 0x1d7   : > { %s5922_s27 = sand.u32 (!%p6835_p1), 1, %s6836_s1  }
 0x1d8   : > { %s3921_s28 = sshll.u32 (!%p6835_p1), %s5922_s27, 6  ;;  %s695_s23 = scalar_lea.sflag (!%p6835_p1), [#allocation5], %s5922_s27 }
 0x1d9   : > { %s5928_s26 = scalar_lea.vmem [#allocation4], %s3921_s28 }
 0x1da   : > { %5279 = dma.done.wait (%p5860_p2), %s695_s23, 1024  }
 0x1db   : > { %5281 = vsyncadd (%p5860_p2), %s695_s23, 4294966272  ;;  %s6837_s4 = sld [smem:[#allocation48_spill]] }
 0x1e1   : > { %p6838_p4 = scmp.ne.s32.totalorder %s6837_s4, 0 }
 0x1e3   : > { %5283 = dma.done.wait (%p6838_p4), [#allocation8], 144  }
 0x1e4   : > { %5285 = vsyncadd (%p6838_p4), [#allocation8], 4294967152 }
 0x1e5   : > { %5287 = dma.done.wait (%p6838_p4), [#allocation11], 144  }
 0x1e6   : > { %5289 = vsyncadd (%p6838_p4), [#allocation11], 4294967152 }
 0x1e7   : > { %5291 = dma.done.wait (%p6838_p4), [#allocation14], 144  }
 0x1e8   : > { %5293 = vsyncadd (%p6838_p4), [#allocation14], 4294967152 }
 0x1e9   : > { %5295 = dma.done.wait (%p6838_p4), [#allocation17], 144  }
 0x1ea   : > { %5297 = vsyncadd (%p6838_p4), [#allocation17], 4294967152 }
 0x1eb   : > { %5299 = dma.done.wait (%p6838_p4), [#allocation20], 144  }
 0x1ec   : > { %5301 = vsyncadd (%p6838_p4), [#allocation20], 4294967152 }
 0x1ed   : > { %5303 = dma.done.wait (%p6838_p4), [#allocation23], 528  }
 0x1ee   : > { %5305 = vsyncadd (%p6838_p4), [#allocation23], 4294966768 }
 0x1ef   : > { %5307 = dma.done.wait (%p6838_p4), [#allocation26], 32  }
 0x1f0   : > { %5309 = vsyncadd (%p6838_p4), [#allocation26], 4294967264 }
 0x1f1   : > { %5311 = dma.done.wait (%p6838_p4), [#allocation29], 32  }
 0x1f2   : > { %5313 = vsyncadd (%p6838_p4), [#allocation29], 4294967264  ;;  %v4636_v0 = vld [vmem:[#allocation10] sm:$0xff]   ;;  %v821_v1 = vld [vmem:[%s5928_s26] sm:$0xff]  ;;  %vm848_vm0 = vcmask 130048   ;;  %v5363_v15 = vmov 0.0  }
 0x1f3   : > { %v822_v2 = vld [vmem:[%s5928_s26 + $0x8] sm:$0xff]  ;;  %v823_v3 = vld [vmem:[%s5928_s26 + $0x10] sm:$0xff]  ;;  %4136 = vmatprep.subr.bf16.mxu1 %v4636_v0  ;;  %v824_v5 = vld [vmem:[%s5928_s26 + $0x18] sm:$0xff]  ;;  %3200 = vst.msk [vmem:[#allocation3] sm:$0xff] %vm848_vm0, %v5363_v15  ;;  %vm5364_vm1 = vmmov 0   ;;  %vm1112_vm2 = vcmask 64512  }
 0x1f4   : > { %v829_v4 = vpack.c.bf16 %v822_v2, %v821_v1  ;;  %4137 = vmatpush3.bf16.msra.mxu1 %v4636_v0  ;;  %v830_v6 = vpack.c.bf16 %v824_v5, %v823_v3  ;;  %v4637_v7 = vld [vmem:[#allocation7] sm:$0xff]   ;;  %v826_v9 = vld [vmem:[%s5928_s26 + $0x28] sm:$0xff]  ;;  %v827_v11 = vld [vmem:[%s5928_s26 + $0x30] sm:$0xff]  ;;  %3201 = vst.msk [vmem:[#allocation3 + $0x8] sm:$0xff] %vm848_vm0, %v5363_v15  ;;  %vm1588_vm3 = vcmask 1043456   ;;  %s5365_s3 = smov 120  }
 0x1f5   : > { %v825_v8 = vld [vmem:[%s5928_s26 + $0x20] sm:$0xff]  ;;  %4126 = vmatprep.subr.bf16.mxu0 %v4637_v7  ;;  %v828_v12 = vld [vmem:[%s5928_s26 + $0x38] sm:$0xff]  ;;  %3202 = vst.msk [vmem:[#allocation3 + $0x10] sm:$0xff] %vm848_vm0, %v5363_v15  ;;  %3203 = vst.msk [vmem:[#allocation3 + $0x18] sm:$0xff] %vm848_vm0, %v5363_v15  ;;  %4156 = vmatprep.subr.bf16.mxu1 %v5363_v15  ;;  %vm3365_vm4 = vcmask 523264   ;;  %s6678_s0 = scalar_lea.vmem [#allocation31], %s3921_s28 }
 0x1f6   : > { %4138 = vmatprep.mubr.msk.bf16.mxu1 %vm848_vm0, %v829_v4  ;;  %4128 = vmatprep.mubr.msk.bf16.mxu0 %vm848_vm0, %v829_v4  ;;  %v831_v10 = vpack.c.bf16 %v826_v9, %v825_v8  ;;  %v4638_v13 = vld [vmem:[#allocation13] sm:$0xff]   ;;  %v832_v14 = vpack.c.bf16 %v828_v12, %v827_v11  ;;  %3204 = vst.msk [vmem:[#allocation3 + $0x20] sm:$0xff] %vm848_vm0, %v5363_v15  ;;  %3205 = vst.msk [vmem:[#allocation3 + $0x28] sm:$0xff] %vm848_vm0, %v5363_v15  ;;  %v6008_v16 = vld [vmem:[#allocation12] ss:$0 sm:$0xff]  ;;  %s6839_s20 = sld [smem:[#allocation45_spill]] }
 0x1f7   : > { %4139 = vmatmul.mubr.msk.bf16.vlgmr.msra.gmra.mrb[0].mxu1 %vm848_vm0, %v830_v6  ;;  %4127 = vmatpush3.bf16.msra.mxu0 %v4637_v7  ;;  %3206 = vst.msk [vmem:[#allocation3 + $0x30] sm:$0xff] %vm848_vm0, %v5363_v15  ;;  %3207 = vst.msk [vmem:[#allocation3 + $0x38] sm:$0xff] %vm848_vm0, %v5363_v15  ;;  %v6012_v22 = vld [vmem:[#allocation9] ss:$0 sm:$0xff]  ;;  %v3951_v55 = vld [vmem:[#allocation15] ss:$0 sm:$0xff] }
 0x1f8   : > { %4142 = vmatprep.mubr.msk.bf16.mxu1 %vm848_vm0, %v831_v10  ;;  %4146 = vmatprep.subr.bf16.mxu0 %v4638_v13  ;;  %s3658_s24 = sshll.u32 %s6678_s0, 4  ;;  %s6840_s30 = sld [smem:[#allocation56_spill]]  ;;  %s6704_s24 = int_to_ptr.vmem [resolvable:$true] %s3658_s24 }
 0x1f9   : > { %s3645_s28 = scalar_lea.sflag [#allocation6], %s5922_s27  ;;  %s5226_s23 = scalar_lea.vmem %s6704_s24, 1024 }
 0x1fa   : > { %4129 = vmatmul.mubr.msk.bf16.vlgmr.msra.gmra.mrb[0].mxu0 %vm848_vm0, %v830_v6  ;;  %p5227_p2 = scmp.ne.s32.totalorder %s6704_s24, %s5226_s23  ;;  %p6841_p9 = scmp.ne.s32.totalorder %s6830_s22, 0 }
 0x1fb   : > { %4132 = vmatprep.mubr.msk.bf16.mxu0 %vm848_vm0, %v831_v10  ;;  %4147 = vmatpush3.bf16.msra.mxu0 %v4638_v13 }
 0x1fc   : > { %4168 = vmatprep.subr.bf16.mxu0 %v5363_v15  ;;  %s4023_s29 = sshll.u32 %s6839_s20, 10  ;;  %p5228_p10 = pnand %p5227_p2, %p6841_p9 }
 0x1fe   : > { %s6702_s1 = scalar_lea.hbm %s6840_s30, %s4023_s29  ;;  %p5229_p12 = pneg %p5228_p10 }
 0x1ff   : > { %4143 = vmatmul.mubr.msk.bf16.gmra.mrb[4].mxu1 %vm848_vm0, %v832_v14 }
 0x200   : > { %4158 = vmatprep.mubr.msk.bf16.mxu1 %vm5364_vm1, %v5363_v15 }
 0x202   : > { %4133 = vmatmul.mubr.msk.bf16.gmra.mrb[4].mxu0 %vm848_vm0, %v832_v14 }
 0x203   : > { %4148 = vmatprep.mubr.msk.bf16.mxu0 %vm848_vm0, %v829_v4 }
 0x20a   : > { %4149 = vmatmul.mubr.msk.bf16.vlgmr.msra.gmra.mrb[8].mxu0 %vm848_vm0, %v830_v6 }
 0x20b   : > { %4152 = vmatprep.mubr.msk.bf16.mxu0 %vm848_vm0, %v831_v10 }
 0x212   : > { %4153 = vmatmul.mubr.msk.bf16.gmra.mrb[12].mxu0 %vm848_vm0, %v832_v14 }
 0x213   : > { %4170 = vmatprep.mubr.msk.bf16.mxu0 %vm5364_vm1, %v5363_v15 }
 0x2ca   : > { %v4140_v17 = vpop.f32.mrb[0].mxu1 }
 0x2cb   : > { %v984_v18 = vadd.f32 %v4140_v17, %v6008_v16  ;;  %v975_v19 = vpop.f32.mrb[1].mxu1 }
 0x2cc   : > { %v976_v20 = vadd.f32 %v6008_v16, %v975_v19  ;;  %v4141_v21 = vpop.f32.mrb[2].mxu1 }
 0x2cd   : > { %v6014_v23 = vpack.c.bf16 %v984_v18, %v984_v18  ;;  %v978_v24 = vpop.f32.mrb[3].mxu1  ;;  %v4130_v25 = vpop.f32.mrb[0].mxu0  ;;  %v987_v48 = vadd.f32 %v4141_v21, %v6008_v16 }
 0x2ce   : > { %v6016_v26 = vpack.c.bf16 %v976_v20, %v976_v20  ;;  %v895_v27 = vpop.f32.mrb[1].mxu0  ;;  %v904_v29 = vadd.f32 %v4130_v25, %v6012_v22  ;;  %v979_v32 = vadd.f32 %v6008_v16, %v978_v24 }
 0x2cf   : > { %v1209_v28 = vsel %vm1112_vm2, %v6014_v23, 0  ;;  %v4131_v30 = vpop.f32.mrb[2].mxu0  ;;  %v896_v33 = vadd.f32 %v6012_v22, %v895_v27  ;;  %v6058_v56 = vpack.c.bf16 %v987_v48, %v987_v48 }
 0x2d0   : > { %v1117_v31 = vsel %vm1112_vm2, %v6016_v26, 0  ;;  %4169 = vmatpush3.bf16.xpose.msra.mxu0 %v1209_v28  ;;  %v898_v34 = vpop.f32.mrb[3].mxu0  ;;  %v6027_v36 = vpack.c.bf16 %v904_v29, %v904_v29  ;;  %v6029_v38 = vpack.c.bf16 %v979_v32, %v979_v32  ;;  %v907_v6 = vadd.f32 %v4131_v30, %v6012_v22 }
 0x2d1   : > { %4157 = vmatpush3.bf16.xpose.msra.mxu1 %v1117_v31  ;;  %4180 = vmatprep.subr.bf16.mxu0 %v5363_v15  ;;  %v6031_v39 = vpack.c.bf16 %v896_v33, %v896_v33  ;;  %v899_v54 = vadd.f32 %v6012_v22, %v898_v34  ;;  %v1255_v2 = vsel %vm1112_vm2, %v6058_v56, 0 }
 0x2d2   : > { %v4144_v35 = vpop.f32.mrb[4].mxu1  ;;  %4162 = vmatprep.subr.bf16.mxu1 %v5363_v15  ;;  %v1163_v49 = vsel %vm1112_vm2, %v6029_v38, 0  ;;  %v6091_v11 = vpack.c.bf16 %v907_v6, %v907_v6 }
 0x2d3   : > { %v991_v37 = vpop.f32.mrb[5].mxu1  ;;  %v1000_v44 = vadd.f32 %v4144_v35, %v6008_v16  ;;  %v6064_v60 = vpack.c.bf16 %v899_v54, %v899_v54 }
 0x2d4   : > { %v992_v40 = vadd.f32 %v6008_v16, %v991_v37  ;;  %v4145_v41 = vpop.f32.mrb[6].mxu1 }
 0x2d5   : > { %v4134_v42 = vpop.f32.mrb[4].mxu0  ;;  %v994_v43 = vpop.f32.mrb[7].mxu1  ;;  %v6051_v53 = vpack.c.bf16 %v1000_v44, %v1000_v44  ;;  %v1003_v12 = vadd.f32 %v4145_v41, %v6008_v16 }
 0x2d6   : > { %v6035_v45 = vpack.c.bf16 %v992_v40, %v992_v40  ;;  %v911_v46 = vpop.f32.mrb[5].mxu0  ;;  %v995_v61 = vadd.f32 %v6008_v16, %v994_v43  ;;  %v920_v3 = vadd.f32 %v4134_v42, %v6012_v22 }
 0x2d7   : > { %4171 = vmatmul.mubr.msk.bf16.vlgmr.msra.gmra.mrb[16].mxu0 %vm1112_vm2, %v6027_v36  ;;  %v6039_v47 = vpop.f32.mrb[6].mxu0  ;;  %v912_v51 = vadd.f32 %v6012_v22, %v911_v46  ;;  %v1393_v59 = vsel %vm1112_vm2, %v6051_v53, 0  ;;  %v6113_v27 = vpack.c.bf16 %v1003_v12, %v1003_v12 }
 0x2d8   : > { %v1301_v50 = vsel %vm1112_vm2, %v6035_v45, 0  ;;  %4159 = vmatmul.mubr.msk.bf16.vlgmr.msra.gmra.mrb[8].mxu1 %vm1112_vm2, %v6031_v39  ;;  %4182 = vmatprep.mubr.msk.bf16.mxu0 %vm5364_vm1, %v5363_v15  ;;  %v914_v52 = vpop.f32.mrb[7].mxu0  ;;  %v6079_v7 = vpack.c.bf16 %v995_v61, %v995_v61  ;;  %v6089_v9 = vpack.c.bf16 %v920_v3, %v920_v3  ;;  %v923_v31 = vadd.f32 %v6039_v47, %v6012_v22 }
 0x2d9   : > { %4163 = vmatpush3.bf16.xpose.msra.mxu1 %v1163_v49  ;;  %4181 = vmatpush3.bf16.xpose.msra.mxu0 %v1301_v50  ;;  %v6060_v57 = vpack.c.bf16 %v912_v51, %v912_v51  ;;  %v915_v16 = vadd.f32 %v6012_v22, %v914_v52  ;;  %v1439_v29 = vsel %vm1112_vm2, %v6113_v27, 0 }
 0x2da   : > { %4164 = vmatprep.mubr.msk.bf16.mxu1 %vm5364_vm1, %v5363_v15  ;;  %4174 = vmatprep.subr.bf16.mxu1 %v5363_v15  ;;  %v1347_v13 = vsel %vm1112_vm2, %v6079_v7, 0  ;;  %v6132_v33 = vpack.c.bf16 %v923_v31, %v923_v31 }
 0x2db   : > { %4192 = vmatprep.subr.bf16.mxu0 %v5363_v15  ;;  %v6119_v28 = vpack.c.bf16 %v915_v16, %v915_v16 }
 0x2dd   : > { %v4150_v58 = vpop.f32.mrb[8].mxu0 }
 0x2de   : > { %v6067_v62 = vadd.f32 %v4150_v58, %v3951_v55  ;;  %v1055_v63 = vpop.f32.mrb[9].mxu0 }
 0x2df   : > { %v1056_v0 = vadd.f32 %v3951_v55, %v1055_v63  ;;  %v4151_v1 = vpop.f32.mrb[10].mxu0 }
 0x2e0   : > { %4165 = vmatmul.mubr.msk.bf16.vlgmr.msra.gmra.mrb[12].mxu1 %vm1112_vm2, %v6064_v60  ;;  %4183 = vmatmul.mubr.msk.bf16.vlgmr.msra.gmra.mrb[20].mxu0 %vm1112_vm2, %v6060_v57  ;;  %v6076_v4 = vadd.f32 %v4151_v1, %v3951_v55  ;;  %v1058_v5 = vpop.f32.mrb[11].mxu0 }
 0x2e1   : > { %4175 = vmatpush3.bf16.xpose.msra.mxu1 %v1255_v2  ;;  %4193 = vmatpush3.bf16.xpose.msra.mxu0 %v1393_v59  ;;  %v6086_v8 = vpack.c.bf16 %v1056_v0, %v1056_v0  ;;  %v1059_v30 = vadd.f32 %v3951_v55, %v1058_v5 }
 0x2e2   : > { %4176 = vmatprep.mubr.msk.bf16.mxu1 %vm5364_vm1, %v5363_v15  ;;  %4194 = vmatprep.mubr.msk.bf16.mxu0 %vm5364_vm1, %v5363_v15 }
 0x2e3   : > { %4186 = vmatprep.subr.bf16.mxu1 %v5363_v15  ;;  %4204 = vmatprep.subr.bf16.mxu0 %v5363_v15  ;;  %v1590_v18 = vsel %vm1588_vm3, %v6086_v8, 0  ;;  %v6129_v32 = vpack.c.bf16 %v1059_v30, %v1059_v30 }
 0x2e5   : > { %v4154_v10 = vpop.f32.mrb[12].mxu0  ;;  %v1636_v34 = vsel %vm1588_vm3, %v6129_v32, 0 }
 0x2e6   : > { %v6096_v14 = vadd.f32 %v4154_v10, %v3951_v55  ;;  %v1071_v17 = vpop.f32.mrb[13].mxu0 }
 0x2e7   : > { %v6100_v19 = vadd.f32 %v3951_v55, %v1071_v17  ;;  %v4155_v20 = vpop.f32.mrb[14].mxu0 }
 0x2e8   : > { %4177 = vmatmul.mubr.msk.bf16.vlgmr.msra.gmra.mrb[16].mxu1 %vm1112_vm2, %v6091_v11  ;;  %4195 = vmatmul.mubr.msk.bf16.vlgmr.msra.gmra.mrb[24].mxu0 %vm1112_vm2, %v6089_v9  ;;  %v6107_v21 = vadd.f32 %v4155_v20, %v3951_v55  ;;  %v1074_v24 = vpop.f32.mrb[15].mxu0 }
 0x2e9   : > { %4187 = vmatpush3.bf16.xpose.msra.mxu1 %v1347_v13  ;;  %4188 = vmatprep.mubr.msk.bf16.mxu1 %vm5364_vm1, %v5363_v15  ;;  %v6111_v25 = vadd.f32 %v3951_v55, %v1074_v24 }
 0x2ea   : > { %4198 = vmatprep.subr.bf16.mxu1 %v5363_v15  ;;  %4205 = vmatpush3.bf16.msra.mxu0 %v1590_v18 }
 0x2eb   : > { %4206 = vmatprep.mubr.msk.bf16.mxu0 %vm5364_vm1, %v5363_v15  ;;  %4216 = vmatprep.subr.bf16.mxu0 %v5363_v15 }
 0x2f0   : > { %4189 = vmatmul.mubr.msk.bf16.vlgmr.msra.gmra.mrb[20].mxu1 %vm1112_vm2, %v6119_v28 }
 0x2f1   : > { %4199 = vmatpush3.bf16.xpose.msra.mxu1 %v1439_v29  ;;  %4200 = vmatprep.mubr.msk.bf16.mxu1 %vm5364_vm1, %v5363_v15 }
 0x2f2   : > { %4210 = vmatprep.subr.bf16.mxu1 %v5363_v15 }
 0x2f8   : > { %4201 = vmatmul.mubr.msk.bf16.vlgmr.msra.gmra.mrb[24].mxu1 %vm1112_vm2, %v6132_v33 }
 0x2f9   : > { %4211 = vmatpush3.bf16.msra.mxu1 %v1636_v34  ;;  %4212 = vmatprep.mubr.msk.bf16.mxu1 %vm5364_vm1, %v5363_v15 }
 0x2fa   : > { %4222 = vmatprep.subr.bf16.mxu1 %v5363_v15 }
 0x3aa   : > { %v1245_v22 = vpop.f32.mrb[16].mxu0 }
 0x3ab   : > { %v1483_v35 = vmul.f32 0.35355338, %v1245_v22  ;;  %v1153_v37 = vpop.f32.mrb[8].mxu1  ;;  %v4172_v40 = vpop.f32.mrb[17].mxu0 }
 0x3ac   : > { %v1481_v41 = vmul.f32 0.35355338, %v1153_v37  ;;  %v4160_v42 = vpop.f32.mrb[9].mxu1  ;;  %v1248_v43 = vpop.f32.mrb[18].mxu0 }
 0x3ad   : > { %v1495_v44 = vsel %vm1112_vm2, %v1483_v35, -inf  ;;  %v1156_v46 = vpop.f32.mrb[10].mxu1  ;;  %v4173_v47 = vpop.f32.mrb[19].mxu0 }
 0x3ae   : > { %1496 = vmax.xlane.f32.xlu1 %v1495_v44  ;;  %v1489_v48 = vsel %vm1112_vm2, %v1481_v41, -inf  ;;  %v4161_v49 = vpop.f32.mrb[11].mxu1 }
 0x3af   : > { %1490 = vmax.xlane.f32.xlu0 %v1489_v48 }
 0x3b3   : > { %v1199_v50 = vpop.f32.mrb[12].mxu1  ;;  %v1337_v51 = vpop.f32.mrb[20].mxu0 }
 0x3b4   : > { %v1482_v52 = vmul.f32 0.35355338, %v1199_v50  ;;  %v4166_v54 = vpop.f32.mrb[13].mxu1  ;;  %v1485_v55 = vmul.f32 0.35355338, %v1337_v51  ;;  %v4184_v58 = vpop.f32.mrb[21].mxu0 }
 0x3b5   : > { %v1202_v59 = vpop.f32.mrb[14].mxu1  ;;  %v1340_v61 = vpop.f32.mrb[22].mxu0 }
 0x3b6   : > { %v4167_v63 = vpop.f32.mrb[15].mxu1  ;;  %v1492_v0 = vsel %vm1112_vm2, %v1482_v52, -inf  ;;  %v4185_v1 = vpop.f32.mrb[23].mxu0  ;;  %v1501_v2 = vsel %vm1112_vm2, %v1485_v55, -inf }
 0x3b7   : > { %1493 = vmax.xlane.f32.xlu0 %v1492_v0 }
 0x3bb   : > { %v1429_v3 = vpop.f32.mrb[24].mxu0  ;;  %1502 = vmax.xlane.f32.xlu0 %v1501_v2  ;;  %v1291_v5 = vpop.f32.mrb[16].mxu1 }
 0x3bc   : > { %v1487_v6 = vmul.f32 0.35355338, %v1429_v3  ;;  %v1484_v10 = vmul.f32 0.35355338, %v1291_v5  ;;  %v4178_v12 = vpop.f32.mrb[17].mxu1  ;;  %v4196_v13 = vpop.f32.mrb[25].mxu0 }
 0x3bd   : > { %v1294_v17 = vpop.f32.mrb[18].mxu1  ;;  %v1432_v18 = vpop.f32.mrb[26].mxu0 }
 0x3be   : > { %v4179_v20 = vpop.f32.mrb[19].mxu1  ;;  %v1507_v16 = vsel %vm1112_vm2, %v1487_v6, -inf  ;;  %v1498_v24 = vsel %vm1112_vm2, %v1484_v10, -inf  ;;  %v4197_v29 = vpop.f32.mrb[27].mxu0 }
 0x3bf   : > { %1508 = vmax.xlane.f32.xlu0 %v1507_v16  ;;  %1499 = vmax.xlane.f32.xlu1 %v1498_v24 }
 0x3c3   : > { %v1383_v30 = vpop.f32.mrb[20].mxu1 }
 0x3c4   : > { %v6147_v31 = vmul.f32 0.35355338, %v1383_v30  ;;  %v4190_v34 = vpop.f32.mrb[21].mxu1 }
 0x3c5   : > { %v1386_v22 = vpop.f32.mrb[22].mxu1 }
 0x3c6   : > { %v1504_v37 = vsel %vm1112_vm2, %v6147_v31, -inf  ;;  %v4191_v40 = vpop.f32.mrb[23].mxu1 }
 0x3c7   : > { %1505 = vmax.xlane.f32.xlu1 %v1504_v37 }
 0x3cb   : > { %v1475_v42 = vpop.f32.mrb[24].mxu1 }
 0x3cc   : > { %v6151_v43 = vmul.f32 0.35355338, %v1475_v42  ;;  %v4202_v44 = vpop.f32.mrb[25].mxu1 }
 0x3cd   : > { %v1478_v46 = vpop.f32.mrb[26].mxu1  ;;  %v6217_v44 = vpack.c.bf16 %v6067_v62, %v6067_v62 }
 0x3ce   : > { %v1510_v47 = vsel %vm1112_vm2, %v6151_v43, -inf  ;;  %v4203_v48 = vpop.f32.mrb[27].mxu1 }
 0x3cf   : > { %1511 = vmax.xlane.f32.xlu1 %v1510_v47 }
 0x43b   : > { %v1497_v49 = vpop.xlane.xlu1 %1496 }
 0x43c   : > { %v1515_v50 = vsub.f32 %v1483_v35, %v1497_v49  ;;  %v1491_v51 = vpop.xlane.xlu0 %1490 }
 0x43d   : > { %v1513_v54 = vsub.f32 %v1481_v41, %v1491_v51 }
 0x43e   : > { %v1525_v58 = vmul.f32 1.442695, %v1515_v50  ;;  %v6237_v50 = vpack.c.bf16 %v6100_v19, %v6100_v19 }
 0x43f   : > { %v1521_v59 = vmul.f32 1.442695, %v1513_v54 }
 0x441   : > { %4644 = vpow2.f32 %v1521_v59 }
 0x442   : > { %4646 = vpow2.f32 %v1525_v58 }
 0x444   : > { %v1494_v61 = vpop.xlane.xlu0 %1493 }
 0x445   : > { %v1514_v63 = vsub.f32 %v1482_v52, %v1494_v61  ;;  %v6257_v61 = vpack.c.bf16 %v6096_v14, %v6096_v14 }
 0x447   : > { %v1523_v0 = vmul.f32 1.442695, %v1514_v63  ;;  %v6261_v63 = vpack.c.bf16 %v6111_v25, %v6111_v25 }
 0x448   : > { %v1503_v1 = vpop.xlane.xlu0 %1502 }
 0x449   : > { %4648 = vpow2.f32 %v1523_v0  ;;  %v1517_v2 = vsub.f32 %v1485_v55, %v1503_v1 }
 0x44b   : > { %v6155_v3 = vpop.eup %4644  ;;  %v1529_v5 = vmul.f32 1.442695, %v1517_v2 }
 0x44c   : > { %v1509_v12 = vpop.xlane.xlu0 %1508  ;;  %v1500_v13 = vpop.xlane.xlu1 %1499  ;;  %v1537_v35 = vsel %vm1112_vm2, %v6155_v3, 0.0 }
 0x44d   : > { %v6159_v17 = vpop.eup %4646  ;;  %4650 = vpow2.f32 %v1529_v5  ;;  %v1519_v41 = vsub.f32 %v1487_v6, %v1509_v12  ;;  %v1516_v18 = vsub.f32 %v1484_v10, %v1500_v13  ;;  %1538 = vadd.xlane.f32.xlu0 %v1537_v35  ;;  %v1866_v5 = vsel %vm1588_vm3, %v6257_v61, 0 }
 0x44e   : > { %v1543_v16 = vsel %vm1112_vm2, %v6159_v17, 0.0  ;;  %v1820_v12 = vsel %vm1588_vm3, %v6261_v63, 0 }
 0x44f   : > { %v1533_v20 = vmul.f32 1.442695, %v1519_v41  ;;  %v1527_v52 = vmul.f32 1.442695, %v1516_v18 }
 0x451   : > { %4652 = vpow2.f32 %v1533_v20  ;;  %1544 = vadd.xlane.f32.xlu0 %v1543_v16 }
 0x452   : > { %4654 = vpow2.f32 %v1527_v52 }
 0x453   : > { %v6163_v55 = vpop.eup %4648 }
 0x454   : > { %v1540_v24 = vsel %vm1112_vm2, %v6163_v55, 0.0  ;;  %v1506_v37 = vpop.xlane.xlu1 %1505 }
 0x455   : > { %1541 = vadd.xlane.f32.xlu1 %v1540_v24  ;;  %v1518_v40 = vsub.f32 %v6147_v31, %v1506_v37 }
 0x457   : > { %v6167_v29 = vpop.eup %4650  ;;  %v1531_v42 = vmul.f32 1.442695, %v1518_v40 }
 0x458   : > { %v1549_v6 = vsel %vm1112_vm2, %v6167_v29, 0.0 }
 0x459   : > { %1550 = vadd.xlane.f32.xlu0 %v1549_v6  ;;  %4656 = vpow2.f32 %v1531_v42 }
 0x45b   : > { %v6171_v10 = vpop.eup %4652 }
 0x45c   : > { %v6173_v30 = vpop.eup %4654  ;;  %v1555_v34 = vsel %vm1112_vm2, %v6171_v10, 0.0 }
 0x45d   : > { %1556 = vadd.xlane.f32.xlu0 %v1555_v34  ;;  %v1546_v22 = vsel %vm1112_vm2, %v6173_v30, 0.0 }
 0x45e   : > { %1547 = vadd.xlane.f32.xlu1 %v1546_v22 }
 0x46f   : > { %2014 = vrot.lane.b32.xlu1 %v6029_v38, %s5365_s3 }
 0x473   : > { %1962 = vrot.lane.b32.xlu0 %v6016_v26, %s5365_s3 }
 0x477   : > { %2066 = vrot.lane.b32.xlu0 %v6014_v23, %s5365_s3  ;;  %v6196_v23 = vpop.eup %4656 }
 0x478   : > { %v1552_v26 = vsel %vm1112_vm2, %v6196_v23, 0.0 }
 0x47b   : > { %2063 = vrot.lane.b32.xlu0 %v6027_v36, %s5365_s3  ;;  %v1512_v36 = vpop.xlane.xlu1 %1511 }
 0x47c   : > { %v1520_v38 = vsub.f32 %v6151_v43, %v1512_v36 }
 0x47f   : > { %2170 = vrot.lane.b32.xlu0 %v6035_v45, %s5365_s3  ;;  %v1535_v45 = vmul.f32 1.442695, %v1520_v38 }
 0x481   : > { %4658 = vpow2.f32 %v1535_v45 }
 0x483   : > { %2167 = vrot.lane.b32.xlu0 %v6060_v57, %s5365_s3 }
 0x487   : > { %2274 = vrot.lane.b32.xlu0 %v6051_v53, %s5365_s3 }
 0x48b   : > { %2271 = vrot.lane.b32.xlu0 %v6089_v9, %s5365_s3  ;;  %v6203_v57 = vpop.eup %4658 }
 0x48c   : > { %v1558_v53 = vsel %vm1112_vm2, %v6203_v57, 0.0 }
 0x493   : > { %1553 = vadd.xlane.f32.xlu1 %v1552_v26 }
 0x4a4   : > { %1959 = vrot.lane.b32.xlu1 %v6031_v39, %s5365_s3 }
 0x4c8   : > { %1559 = vadd.xlane.f32.xlu1 %v1558_v53 }
 0x4d9   : > { %2011 = vrot.lane.b32.xlu1 %v6064_v60, %s5365_s3 }
 0x4da   : > { %v1539_v9 = vpop.xlane.xlu0 %1538 }
 0x4db   : > { %4660 = vrcp.f32 %v1539_v9 }
 0x4dd   : > { %2118 = vrot.lane.b32.xlu1 %v6058_v56, %s5365_s3 }
 0x4de   : > { %v1545_v39 = vpop.xlane.xlu0 %1544 }
 0x4df   : > { %4662 = vrcp.f32 %v1545_v39 }
 0x4e1   : > { %2115 = vrot.lane.b32.xlu1 %v6091_v11, %s5365_s3  ;;  %v1682_v11 = vsel %vm1588_vm3, %v6217_v44, 0 }
 0x4e2   : > { %v1542_v31 = vpop.xlane.xlu1 %1541 }
 0x4e3   : > { %4664 = vrcp.f32 %v1542_v31 }
 0x4e5   : > { %v4661_v43 = vpop.eup %4660  ;;  %2222 = vrot.lane.b32.xlu1 %v6079_v7, %s5365_s3 }
 0x4e6   : > { %v1569_v60 = vmul.f32 %v4661_v43, %v6155_v3  ;;  %v1551_v46 = vpop.xlane.xlu0 %1550 }
 0x4e7   : > { %4666 = vrcp.f32 %v1551_v46 }
 0x4e8   : > { %v1577_v56 = vpack.c.bf16 %v1569_v60, %v1569_v60 }
 0x4e9   : > { %v4663_v47 = vpop.eup %4662  ;;  %2219 = vrot.lane.b32.xlu1 %v6119_v28, %s5365_s3  ;;  %v6233_v28 = vpack.c.bf16 %v6076_v4, %v6076_v4  ;;  %v1774_v4 = vsel %vm1588_vm3, %v6237_v50, 0 }
 0x4ea   : > { %4207 = vmatmul.mubr.msk.bf16.vlgmr.msra.gmra.mrb[28].mxu0 %vm1112_vm2, %v1577_v56  ;;  %v1571_v62 = vmul.f32 %v4663_v47, %v6159_v17  ;;  %v1557_v48 = vpop.xlane.xlu0 %1556 }
 0x4eb   : > { %4217 = vmatpush3.bf16.msra.mxu0 %v1682_v11  ;;  %v1548_v7 = vpop.xlane.xlu1 %1547  ;;  %4218 = vmatprep.mubr.msk.bf16.mxu0 %vm5364_vm1, %v5363_v15 }
 0x4ec   : > { %4668 = vrcp.f32 %v1548_v7  ;;  %4228 = vmatprep.subr.bf16.mxu0 %v5363_v15  ;;  %v1579_v54 = vpack.c.bf16 %v1571_v62, %v1571_v62 }
 0x4ed   : > { %v4665_v49 = vpop.eup %4664  ;;  %2326 = vrot.lane.b32.xlu1 %v6113_v27, %s5365_s3  ;;  %4670 = vrcp.f32 %v1557_v48  ;;  %v1728_v27 = vsel %vm1588_vm3, %v6233_v28, 0 }
 0x4ee   : > { %v1570_v51 = vmul.f32 %v4665_v49, %v6163_v55  ;;  %v1963_v25 = vpop.permute.xlu0 %1962 }
 0x4ef   : > { %v1968_v35 = vsel %vm1112_vm2, %v1963_v25, 0  ;;  %v2015_v41 = vpop.permute.xlu1 %2014 }
 0x4f0   : > { %v1578_v58 = vpack.c.bf16 %v1570_v51, %v1570_v51  ;;  %v2020_v53 = vsel %vm1112_vm2, %v2015_v41, 0 }
 0x4f1   : > { %v4667_v59 = vpop.eup %4666  ;;  %2323 = vrot.lane.b32.xlu1 %v6132_v33, %s5365_s3 }
 0x4f2   : > { %4219 = vmatmul.mubr.msk.bf16.vlgmr.msra.gmra.mrb[32].mxu0 %vm1112_vm2, %v1579_v54  ;;  %4213 = vmatmul.mubr.msk.bf16.vlgmr.msra.gmra.mrb[28].mxu1 %vm1112_vm2, %v1578_v58  ;;  %v1573_v19 = vmul.f32 %v4667_v59, %v6167_v29  ;;  %v2067_v17 = vpop.permute.xlu0 %2066  ;;  %v6289_v29 = vpack.c.bf16 %v6107_v21, %v6107_v21 }
 0x4f3   : > { %4229 = vmatpush3.bf16.msra.mxu0 %v1774_v4  ;;  %4223 = vmatpush3.bf16.msra.mxu1 %v1728_v27  ;;  %v2072_v16 = vsel %vm1112_vm2, %v2067_v17, 0 }
 0x4f4   : > { %4224 = vmatprep.mubr.msk.bf16.mxu1 %vm5364_vm1, %v5363_v15  ;;  %4230 = vmatprep.mubr.msk.bf16.mxu0 %vm5364_vm1, %v5363_v15  ;;  %v1581_v1 = vpack.c.bf16 %v1573_v19, %v1573_v19  ;;  %v1912_v22 = vsel %vm1588_vm3, %v6289_v29, 0 }
 0x4f5   : > { %4234 = vmatprep.subr.bf16.mxu1 %v5363_v15  ;;  %4240 = vmatprep.subr.bf16.mxu0 %v5363_v15 }
 0x4f6   : > { %v4669_v33 = vpop.eup %4668  ;;  %v2064_v18 = vpop.permute.xlu0 %2063 }
 0x4f7   : > { %v1572_v0 = vmul.f32 %v4669_v33, %v6173_v30  ;;  %v4671_v2 = vpop.eup %4670 }
 0x4f8   : > { %v1575_v14 = vmul.f32 %v4671_v2, %v6171_v10 }
 0x4f9   : > { %v1580_v3 = vpack.c.bf16 %v1572_v0, %v1572_v0 }
 0x4fa   : > { %4231 = vmatmul.mubr.msk.bf16.vlgmr.msra.gmra.mrb[36].mxu0 %vm1112_vm2, %v1581_v1  ;;  %v1583_v13 = vpack.c.bf16 %v1575_v14, %v1575_v14  ;;  %v2171_v55 = vpop.permute.xlu0 %2170 }
 0x4fb   : > { %4241 = vmatpush3.bf16.msra.mxu0 %v1866_v5  ;;  %4225 = vmatmul.mubr.msk.bf16.vlgmr.msra.gmra.mrb[32].mxu1 %vm1112_vm2, %v1580_v3  ;;  %v2176_v30 = vsel %vm1112_vm2, %v2171_v55, 0 }
 0x4fc   : > { %4235 = vmatpush3.bf16.msra.mxu1 %v1820_v12  ;;  %4242 = vmatprep.mubr.msk.bf16.mxu0 %vm5364_vm1, %v5363_v15 }
 0x4fd   : > { %4252 = vmatprep.subr.bf16.mxu0 %v5363_v15  ;;  %4236 = vmatprep.mubr.msk.bf16.mxu1 %vm5364_vm1, %v5363_v15 }
 0x4fe   : > { %4246 = vmatprep.subr.bf16.mxu1 %v5363_v15  ;;  %v2168_v6 = vpop.permute.xlu0 %2167 }
 0x502   : > { %4243 = vmatmul.mubr.msk.bf16.vlgmr.msra.gmra.mrb[40].mxu0 %vm1112_vm2, %v1583_v13  ;;  %v2275_v21 = vpop.permute.xlu0 %2274 }
 0x503   : > { %4254 = vmatprep.mubr.msk.bf16.mxu0 %vm5364_vm1, %v5363_v15  ;;  %v2280_v37 = vsel %vm1112_vm2, %v2275_v21, 0 }
 0x504   : > { %4253 = vmatpush3.bf16.xpose.msra.mxu0 %v1968_v35 }
 0x505   : > { %4264 = vmatprep.subr.bf16.mxu0 %v5363_v15 }
 0x506   : > { %v2272_v40 = vpop.permute.xlu0 %2271 }
 0x520   : > { %v1554_v20 = vpop.xlane.xlu1 %1553 }
 0x521   : > { %4672 = vrcp.f32 %v1554_v20 }
 0x524   : > { %v1960_v52 = vpop.permute.xlu1 %1959 }
 0x525   : > { %4255 = vmatmul.mubr.msk.bf16.vlgmr.msra.gmra.mrb[44].mxu0 %vm1112_vm2, %v1960_v52 }
 0x526   : > { %4265 = vmatpush3.bf16.xpose.msra.mxu0 %v2072_v16  ;;  %4266 = vmatprep.mubr.msk.bf16.mxu0 %vm5364_vm1, %v5363_v15 }
 0x527   : > { %4276 = vmatprep.subr.bf16.mxu0 %v5363_v15 }
 0x52b   : > { %v4673_v24 = vpop.eup %4672 }
 0x52c   : > { %v1574_v10 = vmul.f32 %v4673_v24, %v6196_v23 }
 0x52d   : > { %4267 = vmatmul.mubr.msk.bf16.vlgmr.msra.gmra.mrb[48].mxu0 %vm1112_vm2, %v2064_v18 }
 0x52e   : > { %4277 = vmatpush3.bf16.xpose.msra.mxu0 %v2176_v30  ;;  %v1582_v34 = vpack.c.bf16 %v1574_v10, %v1574_v10  ;;  %4278 = vmatprep.mubr.msk.bf16.mxu0 %vm5364_vm1, %v5363_v15 }
 0x52f   : > { %4288 = vmatprep.subr.bf16.mxu0 %v5363_v15 }
 0x530   : > { %4237 = vmatmul.mubr.msk.bf16.vlgmr.msra.gmra.mrb[36].mxu1 %vm1112_vm2, %v1582_v34 }
 0x531   : > { %4247 = vmatpush3.bf16.msra.mxu1 %v1912_v22  ;;  %4248 = vmatprep.mubr.msk.bf16.mxu1 %vm5364_vm1, %v5363_v15 }
 0x532   : > { %4258 = vmatprep.subr.bf16.mxu1 %v5363_v15 }
 0x535   : > { %4279 = vmatmul.mubr.msk.bf16.vlgmr.msra.gmra.mrb[52].mxu0 %vm1112_vm2, %v2168_v6 }
 0x536   : > { %4289 = vmatpush3.bf16.xpose.msra.mxu0 %v2280_v37  ;;  %4290 = vmatprep.mubr.msk.bf16.mxu0 %vm5364_vm1, %v5363_v15 }
 0x537   : > { %4300 = vmatprep.subr.bf16.mxu0 %v5363_v15 }
 0x53d   : > { %4291 = vmatmul.mubr.msk.bf16.vlgmr.msra.gmra.mrb[56].mxu0 %vm1112_vm2, %v2272_v40 }
 0x53e   : > { %4302 = vmatprep.mubr.msk.bf16.mxu0 %vm5364_vm1, %v5363_v15 }
 0x555   : > { %v1560_v42 = vpop.xlane.xlu1 %1559 }
 0x556   : > { %4674 = vrcp.f32 %v1560_v42 }
 0x559   : > { %v2012_v23 = vpop.permute.xlu1 %2011 }
 0x55d   : > { %v2119_v38 = vpop.permute.xlu1 %2118 }
 0x55e   : > { %v2124_v39 = vsel %vm1112_vm2, %v2119_v38, 0 }
 0x560   : > { %v4675_v26 = vpop.eup %4674 }
 0x561   : > { %v1576_v36 = vmul.f32 %v4675_v26, %v6203_v57  ;;  %v2116_v9 = vpop.permute.xlu1 %2115 }
 0x563   : > { %v1584_v45 = vpack.c.bf16 %v1576_v36, %v1576_v36 }
 0x565   : > { %4249 = vmatmul.mubr.msk.bf16.vlgmr.msra.gmra.mrb[40].mxu1 %vm1112_vm2, %v1584_v45  ;;  %v2223_v31 = vpop.permute.xlu1 %2222 }
 0x566   : > { %4259 = vmatpush3.bf16.xpose.msra.mxu1 %v2020_v53  ;;  %4260 = vmatprep.mubr.msk.bf16.mxu1 %vm5364_vm1, %v5363_v15  ;;  %v2228_v43 = vsel %vm1112_vm2, %v2223_v31, 0 }
 0x567   : > { %4270 = vmatprep.subr.bf16.mxu1 %v5363_v15 }
 0x569   : > { %v2220_v57 = vpop.permute.xlu1 %2219 }
 0x56d   : > { %4261 = vmatmul.mubr.msk.bf16.vlgmr.msra.gmra.mrb[44].mxu1 %vm1112_vm2, %v2012_v23  ;;  %v2327_v60 = vpop.permute.xlu1 %2326 }
 0x56e   : > { %4271 = vmatpush3.bf16.xpose.msra.mxu1 %v2124_v39  ;;  %4272 = vmatprep.mubr.msk.bf16.mxu1 %vm5364_vm1, %v5363_v15  ;;  %v2332_v46 = vsel %vm1112_vm2, %v2327_v60, 0 }
 0x56f   : > { %4282 = vmatprep.subr.bf16.mxu1 %v5363_v15 }
 0x571   : > { %v2324_v56 = vpop.permute.xlu1 %2323 }
 0x575   : > { %4273 = vmatmul.mubr.msk.bf16.vlgmr.msra.gmra.mrb[48].mxu1 %vm1112_vm2, %v2116_v9 }
 0x576   : > { %4283 = vmatpush3.bf16.xpose.msra.mxu1 %v2228_v43  ;;  %4284 = vmatprep.mubr.msk.bf16.mxu1 %vm5364_vm1, %v5363_v15 }
 0x577   : > { %4294 = vmatprep.subr.bf16.mxu1 %v5363_v15 }
 0x57d   : > { %4285 = vmatmul.mubr.msk.bf16.vlgmr.msra.gmra.mrb[52].mxu1 %vm1112_vm2, %v2220_v57 }
 0x57e   : > { %4295 = vmatpush3.bf16.xpose.msra.mxu1 %v2332_v46  ;;  %4296 = vmatprep.mubr.msk.bf16.mxu1 %vm5364_vm1, %v5363_v15 }
 0x57f   : > { %4306 = vmatprep.subr.bf16.mxu1 %v5363_v15 }
 0x585   : > { %4297 = vmatmul.mubr.msk.bf16.vlgmr.msra.gmra.mrb[56].mxu1 %vm1112_vm2, %v2324_v56 }
 0x586   : > { %4308 = vmatprep.mubr.msk.bf16.mxu1 %vm5364_vm1, %v5363_v15 }
 0x5bd   : > { %v6335_v47 = vpop.f32.mrb[28].mxu0 }
 0x5be   : > { %v4208_v11 = vpop.f32.mrb[29].mxu0 }
 0x5bf   : > { %v1629_v7 = vpop.f32.mrb[30].mxu0 }
 0x5c0   : > { %v4209_v62 = vpop.f32.mrb[31].mxu0 }
 0x5c5   : > { %v6337_v48 = vpop.f32.mrb[28].mxu1  ;;  %v6339_v49 = vpop.f32.mrb[32].mxu0 }
 0x5c6   : > { %v1954_v51 = vpack.c.bf16 %v6337_v48, %v6335_v47  ;;  %v4214_v54 = vpop.f32.mrb[29].mxu1  ;;  %v4220_v58 = vpop.f32.mrb[33].mxu0  ;;  %v3997_v47 = vld [vmem:[#allocation18] ss:$0 sm:$0xff] }
 0x5c7   : > { %v1675_v59 = vpop.f32.mrb[30].mxu1  ;;  %v1721_v27 = vpop.f32.mrb[34].mxu0 }
 0x5c8   : > { %v4215_v4 = vpop.f32.mrb[31].mxu1  ;;  %v4221_v19 = vpop.f32.mrb[35].mxu0 }
 0x5cd   : > { %v6343_v33 = vpop.f32.mrb[36].mxu0 }
 0x5ce   : > { %v6345_v0 = vpop.f32.mrb[32].mxu1  ;;  %v4232_v1 = vpop.f32.mrb[37].mxu0 }
 0x5cf   : > { %v1955_v2 = vpack.c.bf16 %v6345_v0, %v6339_v49  ;;  %v4226_v3 = vpop.f32.mrb[33].mxu1  ;;  %v1813_v5 = vpop.f32.mrb[38].mxu0 }
 0x5d0   : > { %v1767_v12 = vpop.f32.mrb[34].mxu1  ;;  %v4233_v14 = vpop.f32.mrb[39].mxu0 }
 0x5d1   : > { %v4227_v25 = vpop.f32.mrb[35].mxu1 }
 0x5d5   : > { %v6349_v13 = vpop.f32.mrb[40].mxu0 }
 0x5d6   : > { %v4244_v35 = vpop.f32.mrb[41].mxu0 }
 0x5d7   : > { %v1905_v17 = vpop.f32.mrb[42].mxu0 }
 0x5d8   : > { %v4245_v41 = vpop.f32.mrb[43].mxu0 }
 0x5f8   : > { %v2004_v18 = vpop.f32.mrb[44].mxu0 }
 0x5f9   : > { %v6351_v20 = vmul.f32 0.35355338, %v2004_v18  ;;  %v4256_v52 = vpop.f32.mrb[45].mxu0 }
 0x5fa   : > { %v2007_v16 = vpop.f32.mrb[46].mxu0 }
 0x5fb   : > { %v4257_v55 = vpop.f32.mrb[47].mxu0  ;;  %v2382_v24 = vsel %vm1112_vm2, %v6351_v20, -inf }
 0x5fc   : > { %2383 = vmax.xlane.f32.xlu0 %v2382_v24 }
 0x600   : > { %v2108_v6 = vpop.f32.mrb[48].mxu0 }
 0x601   : > { %v6355_v10 = vmul.f32 0.35355338, %v2108_v6  ;;  %v4268_v30 = vpop.f32.mrb[49].mxu0 }
 0x602   : > { %v2111_v34 = vpop.f32.mrb[50].mxu0 }
 0x603   : > { %v6357_v22 = vpop.f32.mrb[36].mxu1  ;;  %v4269_v21 = vpop.f32.mrb[51].mxu0  ;;  %v2388_v37 = vsel %vm1112_vm2, %v6355_v10, -inf }
 0x604   : > { %v1956_v40 = vpack.c.bf16 %v6357_v22, %v6343_v33  ;;  %2389 = vmax.xlane.f32.xlu0 %v2388_v37  ;;  %v4238_v42 = vpop.f32.mrb[37].mxu1 }
 0x605   : > { %v1859_v23 = vpop.f32.mrb[38].mxu1 }
 0x606   : > { %v4239_v26 = vpop.f32.mrb[39].mxu1 }
 0x608   : > { %v2212_v36 = vpop.f32.mrb[52].mxu0 }
 0x609   : > { %v4280_v38 = vpop.f32.mrb[53].mxu0  ;;  %v2378_v5 = vmul.f32 0.35355338, %v2212_v36 }
 0x60a   : > { %v2215_v45 = vpop.f32.mrb[54].mxu0 }
 0x60b   : > { %v4281_v53 = vpop.f32.mrb[55].mxu0  ;;  %v2394_v35 = vsel %vm1112_vm2, %v2378_v5, -inf }
 0x610   : > { %v2316_v9 = vpop.f32.mrb[56].mxu0 }
 0x611   : > { %v4292_v39 = vpop.f32.mrb[57].mxu0  ;;  %v2380_v25 = vmul.f32 0.35355338, %v2316_v9 }
 0x612   : > { %v2319_v31 = vpop.f32.mrb[58].mxu0 }
 0x613   : > { %v4293_v57 = vpop.f32.mrb[59].mxu0  ;;  %v2400_v55 = vsel %vm1112_vm2, %v2380_v25, -inf }
 0x638   : > { %v6363_v43 = vpop.f32.mrb[40].mxu1 }
 0x639   : > { %v1957_v60 = vpack.c.bf16 %v6363_v43, %v6349_v13  ;;  %v4250_v46 = vpop.f32.mrb[41].mxu1  ;;  %v4742_v13 = vld [vmem:[%s5928_s26 + $0x10] sm:$0xff] }
 0x63a   : > { %v1951_v56 = vpop.f32.mrb[42].mxu1 }
 0x63b   : > { %v4251_v11 = vpop.f32.mrb[43].mxu1 }
 0x640   : > { %v2056_v7 = vpop.f32.mrb[44].mxu1 }
 0x641   : > { %v2375_v62 = vmul.f32 0.35355338, %v2056_v7  ;;  %v4262_v54 = vpop.f32.mrb[45].mxu1 }
 0x642   : > { %v2059_v58 = vpop.f32.mrb[46].mxu1 }
 0x643   : > { %v4263_v59 = vpop.f32.mrb[47].mxu1  ;;  %v2385_v27 = vsel %vm1112_vm2, %v2375_v62, -inf }
 0x644   : > { %2386 = vmax.xlane.f32.xlu1 %v2385_v27 }
 0x648   : > { %v2160_v4 = vpop.f32.mrb[48].mxu1 }
 0x649   : > { %v6368_v19 = vmul.f32 0.35355338, %v2160_v4  ;;  %v4274_v1 = vpop.f32.mrb[49].mxu1 }
 0x64a   : > { %v2163_v3 = vpop.f32.mrb[50].mxu1 }
 0x64b   : > { %v4275_v12 = vpop.f32.mrb[51].mxu1  ;;  %v2391_v14 = vsel %vm1112_vm2, %v6368_v19, -inf }
 0x64c   : > { %2392 = vmax.xlane.f32.xlu0 %v2391_v14 }
 0x650   : > { %2395 = vmax.xlane.f32.xlu0 %v2394_v35  ;;  %v2264_v17 = vpop.f32.mrb[52].mxu1 }
 0x651   : > { %v6373_v41 = vmul.f32 0.35355338, %v2264_v17  ;;  %v4286_v18 = vpop.f32.mrb[53].mxu1 }
 0x652   : > { %v2267_v52 = vpop.f32.mrb[54].mxu1 }
 0x653   : > { %v4287_v16 = vpop.f32.mrb[55].mxu1  ;;  %v2397_v24 = vsel %vm1112_vm2, %v6373_v41, -inf }
 0x654   : > { %2401 = vmax.xlane.f32.xlu0 %v2400_v55  ;;  %2398 = vmax.xlane.f32.xlu1 %v2397_v24 }
 0x658   : > { %v2368_v6 = vpop.f32.mrb[56].mxu1 }
 0x659   : > { %v4298_v30 = vpop.f32.mrb[57].mxu1  ;;  %v6384_v37 = vmul.f32 0.35355338, %v2368_v6 }
 0x65a   : > { %v2371_v34 = vpop.f32.mrb[58].mxu1 }
 0x65b   : > { %v4299_v21 = vpop.f32.mrb[59].mxu1  ;;  %v2403_v36 = vsel %vm1112_vm2, %v6384_v37, -inf }
 0x665   : > { %2528 = vrot.lane.b32.xlu1 %v6129_v32, %s5365_s3 }
 0x669   : > { %2577 = vrot.lane.b32.xlu1 %v6217_v44, %s5365_s3 }
 0x66a   : > { %2479 = vrot.lane.b32.xlu0 %v6086_v8, %s5365_s3 }
 0x689   : > { %v2384_v42 = vpop.xlane.xlu0 %2383 }
 0x68a   : > { %v2406_v23 = vsub.f32 %v6351_v20, %v2384_v42 }
 0x68c   : > { %v2414_v26 = vmul.f32 1.442695, %v2406_v23 }
 0x68d   : > { %2404 = vmax.xlane.f32.xlu1 %v2403_v36 }
 0x68e   : > { %4676 = vpow2.f32 %v2414_v26 }
 0x691   : > { %v2390_v38 = vpop.xlane.xlu0 %2389 }
 0x692   : > { %v2408_v32 = vsub.f32 %v6355_v10, %v2390_v38 }
 0x694   : > { %v2418_v45 = vmul.f32 1.442695, %v2408_v32 }
 0x696   : > { %4678 = vpow2.f32 %v2418_v45 }
 0x698   : > { %v6390_v44 = vpop.eup %4676 }
 0x699   : > { %v2430_v8 = vsel %vm1112_vm2, %v6390_v44, 0.0 }
 0x69a   : > { %2431 = vadd.xlane.f32.xlu0 %v2430_v8 }
 0x69e   : > { %2626 = vrot.lane.b32.xlu1 %v6233_v28, %s5365_s3 }
 0x6a0   : > { %v6396_v20 = vpop.eup %4678 }
 0x6a1   : > { %v2436_v53 = vsel %vm1112_vm2, %v6396_v20, 0.0 }
 0x6a2   : > { %2437 = vadd.xlane.f32.xlu0 %v2436_v53 }
 0x6b8   : > { %2675 = vrot.lane.b32.xlu0 %v6237_v50, %s5365_s3 }
 0x6d1   : > { %v2387_v10 = vpop.xlane.xlu1 %2386 }
 0x6d2   : > { %v2407_v9 = vsub.f32 %v2375_v62, %v2387_v10 }
 0x6d4   : > { %v2416_v39 = vmul.f32 1.442695, %v2407_v9 }
 0x6d6   : > { %4680 = vpow2.f32 %v2416_v39 }
 0x6d9   : > { %v2393_v31 = vpop.xlane.xlu0 %2392 }
 0x6da   : > { %v2409_v14 = vsub.f32 %v6368_v19, %v2393_v31 }
 0x6dd   : > { %v2396_v57 = vpop.xlane.xlu0 %2395 }
 0x6de   : > { %v2410_v46 = vsub.f32 %v2378_v5, %v2396_v57 }
 0x6e0   : > { %v6402_v56 = vpop.eup %4680  ;;  %v2422_v11 = vmul.f32 1.442695, %v2410_v46 }
 0x6e1   : > { %v2402_v28 = vpop.xlane.xlu0 %2401  ;;  %v2399_v7 = vpop.xlane.xlu1 %2398  ;;  %v2433_v54 = vsel %vm1112_vm2, %v6402_v56, 0.0 }
 0x6e2   : > { %4682 = vpow2.f32 %v2422_v11  ;;  %v2412_v58 = vsub.f32 %v2380_v25, %v2402_v28  ;;  %2434 = vadd.xlane.f32.xlu1 %v2433_v54  ;;  %v2420_v25 = vmul.f32 1.442695, %v2409_v14  ;;  %v2411_v35 = vsub.f32 %v6373_v41, %v2399_v7 }
 0x6e4   : > { %v2426_v59 = vmul.f32 1.442695, %v2412_v58  ;;  %v2424_v17 = vmul.f32 1.442695, %v2411_v35 }
 0x6e5   : > { %v2480_v50 = vpop.permute.xlu0 %2479  ;;  %v2529_v27 = vpop.permute.xlu1 %2528 }
 0x6e6   : > { %4684 = vpow2.f32 %v2426_v59  ;;  %v2485_v62 = vsel %vm1588_vm3, %v2480_v50, 0  ;;  %v2534_v4 = vsel %vm1588_vm3, %v2529_v27, 0 }
 0x6e7   : > { %4301 = vmatpush3.bf16.msra.mxu0 %v2485_v62  ;;  %4307 = vmatpush3.bf16.msra.mxu1 %v2534_v4  ;;  %4686 = vpow2.f32 %v2420_v25 }
 0x6e8   : > { %4312 = vmatprep.subr.bf16.mxu0 %v5363_v15  ;;  %4318 = vmatprep.subr.bf16.mxu1 %v5363_v15  ;;  %4688 = vpow2.f32 %v2424_v17 }
 0x6e9   : > { %v2578_v52 = vpop.permute.xlu1 %2577 }
 0x6ea   : > { %v2583_v26 = vsel %vm1588_vm3, %v2578_v52, 0 }
 0x6ec   : > { %v6410_v1 = vpop.eup %4682 }
 0x6ed   : > { %v2442_v3 = vsel %vm1112_vm2, %v6410_v1, 0.0 }
 0x6ee   : > { %2443 = vadd.xlane.f32.xlu0 %v2442_v3 }
 0x6f0   : > { %v6414_v5 = vpop.eup %4684 }
 0x6f1   : > { %v2448_v12 = vsel %vm1112_vm2, %v6414_v5, 0.0  ;;  %v6424_v18 = vpop.eup %4686 }
 0x6f2   : > { %2449 = vadd.xlane.f32.xlu0 %v2448_v12  ;;  %v2439_v16 = vsel %vm1112_vm2, %v6424_v18, 0.0  ;;  %v6428_v55 = vpop.eup %4688 }
 0x6f3   : > { %2724 = vrot.lane.b32.xlu1 %v6261_v63, %s5365_s3  ;;  %v2445_v19 = vsel %vm1112_vm2, %v6428_v55, 0.0 }
 0x708   : > { %2773 = vrot.lane.b32.xlu0 %v6257_v61, %s5365_s3 }
 0x717   : > { %2440 = vadd.xlane.f32.xlu1 %v2439_v16  ;;  %v1111_v16 = vld [vmem:[#allocation16 + $0x4] sm:$0xf] }
 0x71a   : > { %v2405_v63 = vpop.xlane.xlu1 %2404 }
 0x71b   : > { %v2413_v41 = vsub.f32 %v6384_v37, %v2405_v63  ;;  %2446 = vadd.xlane.f32.xlu1 %v2445_v19 }
 0x71d   : > { %v2428_v61 = vmul.f32 1.442695, %v2413_v41 }
 0x71f   : > { %4690 = vpow2.f32 %v2428_v61 }
 0x727   : > { %v2432_v24 = vpop.xlane.xlu0 %2431 }
 0x728   : > { %4692 = vrcp.f32 %v2432_v24 }
 0x729   : > { %v6433_v6 = vpop.eup %4690 }
 0x72a   : > { %v2451_v30 = vsel %vm1112_vm2, %v6433_v6, 0.0 }
 0x72b   : > { %2452 = vadd.xlane.f32.xlu1 %v2451_v30 }
 0x72f   : > { %v2438_v34 = vpop.xlane.xlu0 %2437 }
 0x730   : > { %4694 = vrcp.f32 %v2438_v34 }
 0x732   : > { %v4693_v21 = vpop.eup %4692 }
 0x733   : > { %v2462_v42 = vmul.f32 %v4693_v21, %v6390_v44  ;;  %v2676_v38 = vpop.permute.xlu0 %2675  ;;  %v2627_v44 = vpop.permute.xlu1 %2626  ;;  %v1110_v21 = vld [vmem:[#allocation16] sm:$0xf] }
 0x734   : > { %v2681_v45 = vsel %vm1588_vm3, %v2676_v38, 0  ;;  %v2632_v9 = vsel %vm1588_vm3, %v2627_v44, 0 }
 0x735   : > { %v2470_v23 = vpack.c.bf16 %v2462_v42, %v2462_v42 }
 0x737   : > { %4303 = vmatmul.mubr.msk.bf16.vlgmr.msra.gmra.mrb[60].mxu0 %vm1112_vm2, %v2470_v23 }
 0x738   : > { %4313 = vmatpush3.bf16.msra.mxu0 %v2583_v26  ;;  %4314 = vmatprep.mubr.msk.bf16.mxu0 %vm5364_vm1, %v5363_v15 }
 0x739   : > { %4324 = vmatprep.subr.bf16.mxu0 %v5363_v15 }
 0x73a   : > { %v4695_v37 = vpop.eup %4694 }
 0x73b   : > { %v2464_v36 = vmul.f32 %v4695_v37, %v6396_v20 }
 0x73c   : > { %2822 = vrot.lane.b32.xlu1 %v6289_v29, %s5365_s3 }
 0x73d   : > { %v2472_v32 = vpack.c.bf16 %v2464_v36, %v2464_v36 }
 0x73f   : > { %4315 = vmatmul.mubr.msk.bf16.vlgmr.msra.gmra.mrb[64].mxu0 %vm1112_vm2, %v2472_v32 }
 0x740   : > { %4325 = vmatpush3.bf16.msra.mxu0 %v2681_v45  ;;  %4326 = vmatprep.mubr.msk.bf16.mxu0 %vm5364_vm1, %v5363_v15 }
 0x741   : > { %4336 = vmatprep.subr.bf16.mxu0 %v5363_v15 }
 0x76f   : > { %v2435_v8 = vpop.xlane.xlu1 %2434 }
 0x770   : > { %4696 = vrcp.f32 %v2435_v8 }
 0x773   : > { %v2725_v58 = vpop.permute.xlu1 %2724 }
 0x774   : > { %v2730_v3 = vsel %vm1588_vm3, %v2725_v58, 0 }
 0x77a   : > { %v4697_v53 = vpop.eup %4696 }
 0x77b   : > { %v2463_v20 = vmul.f32 %v4697_v53, %v6402_v56  ;;  %v2444_v10 = vpop.xlane.xlu0 %2443 }
 0x77c   : > { %4698 = vrcp.f32 %v2444_v10 }
 0x77d   : > { %v2471_v29 = vpack.c.bf16 %v2463_v20, %v2463_v20 }
 0x77f   : > { %v2450_v39 = vpop.xlane.xlu0 %2449  ;;  %4309 = vmatmul.mubr.msk.bf16.vlgmr.msra.gmra.mrb[60].mxu1 %vm1112_vm2, %v2471_v29 }
 0x780   : > { %4700 = vrcp.f32 %v2450_v39  ;;  %4319 = vmatpush3.bf16.msra.mxu1 %v2632_v9  ;;  %4320 = vmatprep.mubr.msk.bf16.mxu1 %vm5364_vm1, %v5363_v15  ;;  %v2967_v39 = vsel %vm1588_vm3, %v1110_v21, 0 }
 0x781   : > { %4330 = vmatprep.subr.bf16.mxu1 %v5363_v15 }
 0x783   : > { %v2774_v46 = vpop.permute.xlu0 %2773 }
 0x784   : > { %v2779_v28 = vsel %vm1588_vm3, %v2774_v46, 0 }
 0x786   : > { %v4699_v31 = vpop.eup %4698 }
 0x787   : > { %v2466_v57 = vmul.f32 %v4699_v31, %v6410_v1 }
 0x789   : > { %v2474_v56 = vpack.c.bf16 %v2466_v57, %v2466_v57 }
 0x78a   : > { %v4701_v11 = vpop.eup %4700 }
 0x78b   : > { %4327 = vmatmul.mubr.msk.bf16.vlgmr.msra.gmra.mrb[68].mxu0 %vm1112_vm2, %v2474_v56  ;;  %v2468_v7 = vmul.f32 %v4701_v11, %v6414_v5 }
 0x78c   : > { %4337 = vmatpush3.bf16.msra.mxu0 %v2779_v28  ;;  %4338 = vmatprep.mubr.msk.bf16.mxu0 %vm5364_vm1, %v5363_v15 }
 0x78d   : > { %v2476_v54 = vpack.c.bf16 %v2468_v7, %v2468_v7  ;;  %4402 = vmatprep.subr.msk.bf16.mxu0 %vm1588_vm3, %v1111_v16 }
 0x793   : > { %4339 = vmatmul.mubr.msk.bf16.vlgmr.msra.gmra.mrb[72].mxu0 %vm1112_vm2, %v2476_v54 }
 0x7a4   : > { %v2441_v59 = vpop.xlane.xlu1 %2440 }
 0x7a5   : > { %4702 = vrcp.f32 %v2441_v59 }
 0x7a8   : > { %v2447_v50 = vpop.xlane.xlu1 %2446 }
 0x7a9   : > { %4704 = vrcp.f32 %v2447_v50 }
 0x7af   : > { %v4703_v27 = vpop.eup %4702 }
 0x7b0   : > { %v2465_v62 = vmul.f32 %v4703_v27, %v6424_v18 }
 0x7b2   : > { %v2473_v4 = vpack.c.bf16 %v2465_v62, %v2465_v62 }
 0x7b3   : > { %v4705_v1 = vpop.eup %4704 }
 0x7b4   : > { %4321 = vmatmul.mubr.msk.bf16.vlgmr.msra.gmra.mrb[64].mxu1 %vm1112_vm2, %v2473_v4  ;;  %v2467_v5 = vmul.f32 %v4705_v1, %v6428_v55  ;;  %v2887_v55 = vsel %vm1588_vm3, %v1111_v16, 0 }
 0x7b5   : > { %4331 = vmatpush3.bf16.msra.mxu1 %v2730_v3  ;;  %4332 = vmatprep.mubr.msk.bf16.mxu1 %vm5364_vm1, %v5363_v15 }
 0x7b6   : > { %4342 = vmatprep.subr.bf16.mxu1 %v5363_v15  ;;  %v2475_v14 = vpack.c.bf16 %v2467_v5, %v2467_v5  ;;  %4349 = vmatpush3.bf16.msra.mxu0 %v2887_v55 }
 0x7b7   : > { %4403 = vmatprep.subr.msk.bf16.mxu0 %vm1588_vm3, %v1110_v21  ;;  %v4746_v21 = vld [vmem:[%s5928_s26 + $0x38] sm:$0xff] }
 0x7b8   : > { %v2453_v12 = vpop.xlane.xlu1 %2452 }
 0x7b9   : > { %4706 = vrcp.f32 %v2453_v12 }
 0x7bc   : > { %4333 = vmatmul.mubr.msk.bf16.vlgmr.msra.gmra.mrb[68].mxu1 %vm1112_vm2, %v2475_v14  ;;  %v2823_v25 = vpop.permute.xlu1 %2822 }
 0x7bd   : > { %v2828_v35 = vsel %vm1588_vm3, %v2823_v25, 0  ;;  %4344 = vmatprep.mubr.msk.bf16.mxu1 %vm5364_vm1, %v5363_v15 }
 0x7be   : > { %4343 = vmatpush3.bf16.msra.mxu1 %v2828_v35 }
 0x7c3   : > { %v4707_v17 = vpop.eup %4706 }
 0x7c4   : > { %v2469_v18 = vmul.f32 %v4707_v17, %v6433_v6 }
 0x7c6   : > { %v2477_v52 = vpack.c.bf16 %v2469_v18, %v2469_v18  ;;  %v4743_v18 = vld [vmem:[%s5928_s26 + $0x18] sm:$0xff] }
 0x7c8   : > { %4345 = vmatmul.mubr.msk.bf16.vlgmr.msra.gmra.mrb[72].mxu1 %vm1112_vm2, %v2477_v52 }
 0x80a   : > { %v2521_v63 = vpop.f32.mrb[60].mxu0 }
 0x80b   : > { %v4304_v19 = vpop.f32.mrb[61].mxu0 }
 0x80c   : > { %v2524_v41 = vpop.f32.mrb[62].mxu0 }
 0x80d   : > { %v4305_v61 = vpop.f32.mrb[63].mxu0 }
 0x80e   : > { %v4744_v61 = vld [vmem:[%s5928_s26 + $0x28] sm:$0xff] }
 0x812   : > { %v2619_v24 = vpop.f32.mrb[64].mxu0 }
 0x813   : > { %v4316_v30 = vpop.f32.mrb[65].mxu0 }
 0x814   : > { %v2622_v15 = vpop.f32.mrb[66].mxu0  ;;  %v4745_v30 = vld [vmem:[%s5928_s26 + $0x20] sm:$0xff] }
 0x815   : > { %v4317_v34 = vpop.f32.mrb[67].mxu0 }
 0x852   : > { %v2570_v6 = vpop.f32.mrb[60].mxu1 }
 0x853   : > { %v2870_v42 = vpack.c.bf16 %v2570_v6, %v2521_v63  ;;  %v4310_v23 = vpop.f32.mrb[61].mxu1 }
 0x854   : > { %v2573_v26 = vpop.f32.mrb[62].mxu1  ;;  %v4747_v23 = vld [vmem:[%s5928_s26 + $0x30] sm:$0xff] }
 0x855   : > { %v4311_v37 = vpop.f32.mrb[63].mxu1  ;;  %4350 = vmatprep.mubr.msk.bf16.mxu0 %vm1112_vm2, %v2870_v42 }
 0x85e   : > { %v2717_v36 = vpop.f32.mrb[68].mxu0 }
 0x85f   : > { %v4328_v38 = vpop.f32.mrb[69].mxu0 }
 0x860   : > { %v2720_v32 = vpop.f32.mrb[70].mxu0 }
 0x861   : > { %v4329_v45 = vpop.f32.mrb[71].mxu0 }
 0x866   : > { %v2815_v44 = vpop.f32.mrb[72].mxu0 }
 0x867   : > { %v4340_v8 = vpop.f32.mrb[73].mxu0 }
 0x868   : > { %v2818_v53 = vpop.f32.mrb[74].mxu0 }
 0x869   : > { %v4341_v20 = vpop.f32.mrb[75].mxu0 }
 0x887   : > { %v2668_v10 = vpop.f32.mrb[64].mxu1 }
 0x888   : > { %v2871_v29 = vpack.c.bf16 %v2668_v10, %v2619_v24  ;;  %v4322_v9 = vpop.f32.mrb[65].mxu1 }
 0x889   : > { %v2671_v31 = vpop.f32.mrb[66].mxu1 }
 0x88a   : > { %v4323_v57 = vpop.f32.mrb[67].mxu1  ;;  %4351 = vmatmul.mubr.msk.bf16.vlgmr.msra.gmra.mrb[76].mxu0 %vm1112_vm2, %v2871_v29 }
 0x88b   : > { %4359 = vmatpush3.bf16.msra.mxu0 %v2967_v39 }
 0x88f   : > { %v2766_v46 = vpop.f32.mrb[68].mxu1 }
 0x890   : > { %v2872_v56 = vpack.c.bf16 %v2766_v46, %v2717_v36  ;;  %v4334_v11 = vpop.f32.mrb[69].mxu1 }
 0x891   : > { %v2769_v28 = vpop.f32.mrb[70].mxu1 }
 0x892   : > { %v4335_v7 = vpop.f32.mrb[71].mxu1  ;;  %4354 = vmatprep.mubr.msk.bf16.mxu0 %vm1112_vm2, %v2872_v56 }
 0x89b   : > { %v2864_v54 = vpop.f32.mrb[72].mxu1 }
 0x89c   : > { %v2873_v58 = vpack.c.bf16 %v2864_v54, %v2815_v44  ;;  %v4346_v59 = vpop.f32.mrb[73].mxu1 }
 0x89d   : > { %v2867_v50 = vpop.f32.mrb[74].mxu1 }
 0x89e   : > { %v4347_v27 = vpop.f32.mrb[75].mxu1  ;;  %4355 = vmatmul.mubr.msk.bf16.gmra.mrb[80].mxu0 %vm1112_vm2, %v2873_v58 }
 0x89f   : > { %4360 = vmatprep.mubr.msk.bf16.mxu0 %vm1112_vm2, %v1954_v51 }
 0x8a6   : > { %4361 = vmatmul.mubr.msk.bf16.vlgmr.msra.gmra.mrb[76].mxu0 %vm1112_vm2, %v1955_v2  ;;  %v4740_v2 = vld [vmem:[%s5928_s26] sm:$0xff] }
 0x8a7   : > { %4364 = vmatprep.mubr.msk.bf16.mxu0 %vm1112_vm2, %v1956_v40  ;;  %v4741_v40 = vld [vmem:[%s5928_s26 + $0x8] sm:$0xff]  ;;  %s5366_s26 = smov [#allocation31]  }
 0x8a8   : > { %s5230_s4 = sshll.u32 %s5366_s26, 4  ;;  %s5231_s4 = int_to_ptr.vmem [resolvable:$false] %s5230_s4 }
 0x8a9   : > { %s5232_s3 = scalar_lea.vmem %s5231_s4, 2048  ;;  %p5233_p0 = scmp.lt.s32.totalorder %s6704_s24, %s5231_s4 }
 0x8aa   : > { %p5234_p7 = scmp.lt.s32.totalorder %s5232_s3, %s5226_s23 }
 0x8ac   : > { %p5235_p5 = por %p5234_p7, %p5233_p0 }
 0x8ae   : > { %4365 = vmatmul.mubr.msk.bf16.gmra.mrb[80].mxu0 %vm1112_vm2, %v1957_v60  ;;  %p5236_p8 = pnand %p5235_p5, %p5229_p12 }
 0x979   : > { %v4362_v48 = vpop.f32.mrb[76].mxu0 }
 0x97a   : > { %v3003_v51 = vpop.f32.mrb[77].mxu0  ;;  %v3043_v62 = vadd.f32 %v4362_v48, %v3997_v47 }
 0x97b   : > { %v3041_v4 = vadd.f32 %v3997_v47, %v3003_v51  ;;  %v4363_v49 = vpop.f32.mrb[78].mxu0 }
 0x97c   : > { %v3006_v0 = vpop.f32.mrb[79].mxu0  ;;  %v3044_v33 = vadd.f32 %v4363_v49, %v3997_v47  ;;  %v3051_v43 = vadd.f32 %v4742_v13, %v3043_v62 }
 0x97d   : > { %v3042_v1 = vadd.f32 %v3997_v47, %v3006_v0  ;;  %v3049_v3 = vadd.f32 %v4740_v2, %v3041_v4 }
 0x97e   : > { %v3065_v17 = vsel %vm848_vm0, %v3051_v43, 0.0  ;;  %v3052_v52 = vadd.f32 %v4743_v18, %v3044_v33 }
 0x97f   : > { %v3059_v22 = vsel %vm848_vm0, %v3049_v3, 0.0  ;;  %v3050_v5 = vadd.f32 %v4741_v40, %v3042_v1 }
 0x980   : > { %3060 = vadd.xlane.f32.xlu0 %v3059_v22  ;;  %v3068_v41 = vsel %vm848_vm0, %v3052_v52, 0.0 }
 0x981   : > { %v4366_v60 = vpop.f32.mrb[80].mxu0  ;;  %v3062_v12 = vsel %vm848_vm0, %v3050_v5, 0.0 }
 0x982   : > { %3063 = vadd.xlane.f32.xlu1 %v3062_v12  ;;  %v3019_v14 = vpop.f32.mrb[81].mxu0  ;;  %v3047_v19 = vadd.f32 %v4366_v60, %v3997_v47  ;;  %v4639_v12 = vld [vmem:[#allocation19] sm:$0xff]  }
 0x983   : > { %v3045_v25 = vadd.f32 %v3997_v47, %v3019_v14  ;;  %v4367_v35 = vpop.f32.mrb[82].mxu0  ;;  %4368 = vmatprep.subr.bf16.mxu1 %v4639_v12  ;;  %v6557_v14 = vld [vmem:[#allocation22] sm:$0xff]  }
 0x984   : > { %3066 = vadd.xlane.f32.xlu0 %v3065_v17  ;;  %v3022_v16 = vpop.f32.mrb[83].mxu0  ;;  %v3048_v55 = vadd.f32 %v4367_v35, %v3997_v47  ;;  %v3055_v26 = vadd.f32 %v4747_v23, %v3047_v19  ;;  %4369 = vmatpush3.bf16.msra.mxu1 %v4639_v12 }
 0x985   : > { %v3046_v63 = vadd.f32 %v3997_v47, %v3022_v16  ;;  %v3053_v15 = vadd.f32 %v4745_v30, %v3045_v25  ;;  %4378 = vmatprep.subr.bf16.mxu1 %v6557_v14 }
 0x986   : > { %v3056_v6 = vadd.f32 %v4746_v21, %v3048_v55  ;;  %v3077_v36 = vsel %vm848_vm0, %v3055_v26, 0.0 }
 0x987   : > { %v3054_v24 = vadd.f32 %v4744_v61, %v3046_v63  ;;  %v3071_v42 = vsel %vm848_vm0, %v3053_v15, 0.0 }
 0x988   : > { %3069 = vadd.xlane.f32.xlu0 %v3068_v41  ;;  %v3080_v37 = vsel %vm848_vm0, %v3056_v6, 0.0 }
 0x989   : > { %v3074_v34 = vsel %vm848_vm0, %v3054_v24, 0.0 }
 0x98a   : > { %3075 = vadd.xlane.f32.xlu1 %v3074_v34 }
 0x98c   : > { %3072 = vadd.xlane.f32.xlu0 %v3071_v42  ;;  %v3998_v42 = vld [vmem:[#allocation25] ss:$0 sm:$0xff] }
 0x98e   : > { %3081 = vadd.xlane.f32.xlu1 %v3080_v37 }
 0x990   : > { %3078 = vadd.xlane.f32.xlu0 %v3077_v36 }
 0xa0d   : > { %v3061_v38 = vpop.xlane.xlu0 %3060 }
 0xa0e   : > { %v3084_v32 = vmul.f32 0.0625, %v3061_v38 }
 0xa0f   : > { %v3064_v45 = vpop.xlane.xlu1 %3063 }
 0xa10   : > { %v6517_v44 = vsub.f32 %v3049_v3, %v3084_v32  ;;  %v3085_v8 = vmul.f32 0.0625, %v3064_v45  ;;  %v3999_v45 = vld [vmem:[#allocation27] ss:$0 sm:$0xff] }
 0xa11   : > { %v3067_v53 = vpop.xlane.xlu0 %3066 }
 0xa12   : > { %v6519_v20 = vsub.f32 %v3050_v5, %v3085_v8  ;;  %v3086_v10 = vmul.f32 0.0625, %v3067_v53  ;;  %v3100_v29 = vmul.f32 %v6517_v44, %v6517_v44 }
 0xa14   : > { %v6523_v9 = vsub.f32 %v3051_v43, %v3086_v10  ;;  %v3108_v39 = vsel %vm848_vm0, %v3100_v29, 0.0  ;;  %v3101_v31 = vmul.f32 %v6519_v20, %v6519_v20 }
 0xa15   : > { %v3070_v57 = vpop.xlane.xlu0 %3069  ;;  %3109 = vadd.xlane.f32.xlu0 %v3108_v39 }
 0xa16   : > { %v3087_v46 = vmul.f32 0.0625, %v3070_v57  ;;  %v3111_v56 = vsel %vm848_vm0, %v3101_v31, 0.0  ;;  %v3102_v11 = vmul.f32 %v6523_v9, %v6523_v9 }
 0xa17   : > { %3112 = vadd.xlane.f32.xlu1 %v3111_v56  ;;  %v3076_v28 = vpop.xlane.xlu1 %3075 }
 0xa18   : > { %v6531_v7 = vsub.f32 %v3052_v52, %v3087_v46  ;;  %v3089_v54 = vmul.f32 0.0625, %v3076_v28  ;;  %v3114_v58 = vsel %vm848_vm0, %v3102_v11, 0.0 }
 0xa19   : > { %3115 = vadd.xlane.f32.xlu0 %v3114_v58  ;;  %v3073_v59 = vpop.xlane.xlu0 %3072 }
 0xa1a   : > { %v6534_v50 = vsub.f32 %v3054_v24, %v3089_v54  ;;  %v3088_v27 = vmul.f32 0.0625, %v3073_v59  ;;  %v3103_v47 = vmul.f32 %v6531_v7, %v6531_v7 }
 0xa1b   : > { %v3082_v48 = vpop.xlane.xlu1 %3081 }
 0xa1c   : > { %v6538_v51 = vsub.f32 %v3053_v15, %v3088_v27  ;;  %v3091_v62 = vmul.f32 0.0625, %v3082_v48  ;;  %v3117_v4 = vsel %vm848_vm0, %v3103_v47, 0.0  ;;  %v3105_v49 = vmul.f32 %v6534_v50, %v6534_v50 }
 0xa1d   : > { %v3079_v0 = vpop.xlane.xlu0 %3078  ;;  %3118 = vadd.xlane.f32.xlu1 %v3117_v4 }
 0xa1e   : > { %v6543_v1 = vsub.f32 %v3056_v6, %v3091_v62  ;;  %v3090_v2 = vmul.f32 0.0625, %v3079_v0  ;;  %v3104_v3 = vmul.f32 %v6538_v51, %v6538_v51  ;;  %v3123_v40 = vsel %vm848_vm0, %v3105_v49, 0.0 }
 0xa20   : > { %v6547_v33 = vsub.f32 %v3055_v26, %v3090_v2  ;;  %v3120_v22 = vsel %vm848_vm0, %v3104_v3, 0.0  ;;  %v3107_v5 = vmul.f32 %v6543_v1, %v6543_v1 }
 0xa21   : > { %3121 = vadd.xlane.f32.xlu0 %v3120_v22  ;;  %3124 = vadd.xlane.f32.xlu1 %v3123_v40 }
 0xa22   : > { %v3106_v13 = vmul.f32 %v6547_v33, %v6547_v33  ;;  %v3129_v60 = vsel %vm848_vm0, %v3107_v5, 0.0 }
 0xa24   : > { %v3126_v43 = vsel %vm848_vm0, %v3106_v13, 0.0 }
 0xa25   : > { %3127 = vadd.xlane.f32.xlu0 %v3126_v43  ;;  %3130 = vadd.xlane.f32.xlu1 %v3129_v60 }
 0xaa2   : > { %v3110_v25 = vpop.xlane.xlu0 %3109 }
 0xaa3   : > { %v3132_v35 = vmul.f32 0.0625, %v3110_v25 }
 0xaa4   : > { %v3113_v17 = vpop.xlane.xlu1 %3112 }
 0xaa5   : > { %v3140_v18 = vadd.f32 1e-05, %v3132_v35  ;;  %v3133_v52 = vmul.f32 0.0625, %v3113_v17 }
 0xaa6   : > { %v3116_v16 = vpop.xlane.xlu0 %3115 }
 0xaa7   : > { %4708 = vrsqrt.f32 %v3140_v18  ;;  %v3141_v55 = vadd.f32 1e-05, %v3133_v52  ;;  %v3134_v63 = vmul.f32 0.0625, %v3116_v16 }
 0xaa9   : > { %4710 = vrsqrt.f32 %v3141_v55  ;;  %v3142_v19 = vadd.f32 1e-05, %v3134_v63 }
 0xaaa   : > { %v3119_v41 = vpop.xlane.xlu1 %3118 }
 0xaab   : > { %4712 = vrsqrt.f32 %v3142_v19  ;;  %v3135_v61 = vmul.f32 0.0625, %v3119_v41  ;;  %v4642_v19 = vld [vmem:[#allocation22 + $0x10] sm:$0xff]   ;;  %v4000_v41 = vld [vmem:[#allocation21] ss:$0 sm:$0xff] }
 0xaad   : > { %v3143_v24 = vadd.f32 1e-05, %v3135_v61 }
 0xaae   : > { %v3122_v30 = vpop.xlane.xlu0 %3121  ;;  %v3125_v15 = vpop.xlane.xlu1 %3124 }
 0xaaf   : > { %4714 = vrsqrt.f32 %v3143_v24  ;;  %v3136_v34 = vmul.f32 0.0625, %v3122_v30  ;;  %v3137_v21 = vmul.f32 0.0625, %v3125_v15 }
 0xab1   : > { %v4709_v6 = vpop.eup %4708  ;;  %v3144_v23 = vadd.f32 1e-05, %v3136_v34  ;;  %v3145_v26 = vadd.f32 1e-05, %v3137_v21 }
 0xab2   : > { %v3156_v37 = vmul.f32 %v4709_v6, %v6517_v44  ;;  %v3128_v36 = vpop.xlane.xlu0 %3127  ;;  %v3131_v38 = vpop.xlane.xlu1 %3130 }
 0xab3   : > { %v4711_v32 = vpop.eup %4710  ;;  %4716 = vrsqrt.f32 %v3144_v23  ;;  %v3138_v8 = vmul.f32 0.0625, %v3128_v36  ;;  %v3139_v53 = vmul.f32 0.0625, %v3131_v38 }
 0xab4   : > { %v3170_v10 = vmul.f32 %v3998_v42, %v3156_v37  ;;  %v3157_v29 = vmul.f32 %v4711_v32, %v6519_v20  ;;  %4718 = vrsqrt.f32 %v3145_v26 }
 0xab5   : > { %v4713_v39 = vpop.eup %4712  ;;  %v3146_v31 = vadd.f32 1e-05, %v3138_v8  ;;  %v3147_v57 = vadd.f32 1e-05, %v3139_v53 }
 0xab6   : > { %v3184_v46 = vadd.f32 %v3999_v45, %v3170_v10  ;;  %v3171_v56 = vmul.f32 %v3998_v42, %v3157_v29  ;;  %v3158_v11 = vmul.f32 %v4713_v39, %v6523_v9 }
 0xab7   : > { %4720 = vrsqrt.f32 %v3146_v31 }
 0xab8   : > { %3192 = vst.msk [vmem:[#allocation2] sm:$0xff] %vm848_vm0, %v3184_v46  ;;  %v3185_v44 = vadd.f32 %v3999_v45, %v3171_v56  ;;  %v3172_v28 = vmul.f32 %v3998_v42, %v3158_v11  ;;  %4722 = vrsqrt.f32 %v3147_v57 }
 0xab9   : > { %v4715_v54 = vpop.eup %4714 }
 0xaba   : > { %3193 = vst.msk [vmem:[#allocation2 + $0x8] sm:$0xff] %vm848_vm0, %v3185_v44  ;;  %v3186_v58 = vadd.f32 %v3999_v45, %v3172_v28  ;;  %v3159_v20 = vmul.f32 %v4715_v54, %v6531_v7 }
 0xabc   : > { %3194 = vst.msk [vmem:[#allocation2 + $0x10] sm:$0xff] %vm848_vm0, %v3186_v58  ;;  %v3173_v59 = vmul.f32 %v3998_v42, %v3159_v20  ;;  %v3327_v58 = vld [vmem:[#allocation3 + $0x10] sm:$0xff]  ;;  %v3325_v20 = vld [vmem:[#allocation3] sm:$0xff] }
 0xabd   : > { %v4717_v27 = vpop.eup %4716 }
 0xabe   : > { %v4719_v47 = vpop.eup %4718  ;;  %v3187_v48 = vadd.f32 %v3999_v45, %v3173_v59  ;;  %v3160_v9 = vmul.f32 %v4717_v27, %v6538_v51  ;;  %v3328_v27 = vld [vmem:[#allocation3 + $0x18] sm:$0xff] }
 0xabf   : > { %v3161_v62 = vmul.f32 %v4719_v47, %v6534_v50  ;;  %v6570_v2 = vld [vmem:[#allocation2] sm:$0xff] }
 0xac0   : > { %3195 = vst.msk [vmem:[#allocation2 + $0x18] sm:$0xff] %vm848_vm0, %v3187_v48  ;;  %v3174_v4 = vmul.f32 %v3998_v42, %v3160_v9  ;;  %v3326_v9 = vld [vmem:[#allocation3 + $0x8] sm:$0xff] }
 0xac1   : > { %v4721_v49 = vpop.eup %4720  ;;  %v3175_v0 = vmul.f32 %v3998_v42, %v3161_v62  ;;  %v6572_v3 = vld [vmem:[#allocation2 + $0x8] sm:$0xff] }
 0xac2   : > { %v4723_v7 = vpop.eup %4722  ;;  %v3188_v22 = vadd.f32 %v3999_v45, %v3174_v4  ;;  %v3162_v40 = vmul.f32 %v4721_v49, %v6547_v33  ;;  %v3216_v5 = vpack.c.bf16 %v6572_v3, %v6570_v2 }
 0xac3   : > { %v3189_v13 = vadd.f32 %v3999_v45, %v3175_v0  ;;  %v3163_v51 = vmul.f32 %v4723_v7, %v6543_v1  ;;  %v6581_v25 = vld [vmem:[#allocation2 + $0x10] sm:$0xff]  ;;  %v4641_v1 = vld [vmem:[#allocation22 + $0x8] sm:$0xff]  }
 0xac4   : > { %3196 = vst.msk [vmem:[#allocation2 + $0x20] sm:$0xff] %vm848_vm0, %v3188_v22  ;;  %v3176_v50 = vmul.f32 %v3998_v42, %v3162_v40  ;;  %4370 = vmatprep.mubr.msk.bf16.mxu1 %vm848_vm0, %v3216_v5  ;;  %v3331_v22 = vld [vmem:[#allocation3 + $0x30] sm:$0xff]  ;;  %v3329_v40 = vld [vmem:[#allocation3 + $0x20] sm:$0xff] }
 0xac5   : > { %3197 = vst.msk [vmem:[#allocation2 + $0x28] sm:$0xff] %vm848_vm0, %v3189_v13  ;;  %v3177_v43 = vmul.f32 %v3998_v42, %v3163_v51  ;;  %v3332_v13 = vld [vmem:[#allocation3 + $0x38] sm:$0xff] }
 0xac6   : > { %v3190_v60 = vadd.f32 %v3999_v45, %v3176_v50 }
 0xac7   : > { %v3191_v12 = vadd.f32 %v3999_v45, %v3177_v43  ;;  %v6583_v35 = vld [vmem:[#allocation2 + $0x18] sm:$0xff]  ;;  %v3330_v43 = vld [vmem:[#allocation3 + $0x28] sm:$0xff] }
 0xac8   : > { %3198 = vst.msk [vmem:[#allocation2 + $0x30] sm:$0xff] %vm848_vm0, %v3190_v60  ;;  %v3217_v33 = vpack.c.bf16 %v6583_v35, %v6581_v25 }
 0xac9   : > { %3199 = vst.msk [vmem:[#allocation2 + $0x38] sm:$0xff] %vm848_vm0, %v3191_v12  ;;  %v4014_v12 = vld [vmem:[#allocation24] ss:$0 sm:$0xff] }
 0xaca   : > { %4371 = vmatmul.mubr.msk.bf16.vlgmr.msra.gmra.mrb[76].mxu1 %vm848_vm0, %v3217_v33 }
 0xacb   : > { %v6590_v17 = vld [vmem:[#allocation2 + $0x20] sm:$0xff]  ;;  %4379 = vmatpush3.bf16.msra.mxu1 %v6557_v14  ;;  %v4643_v14 = vld [vmem:[#allocation22 + $0x18] sm:$0xff]  }
 0xacc   : > { %v6593_v18 = vld [vmem:[#allocation2 + $0x28] sm:$0xff]  ;;  %4380 = vmatprep.subr.bf16.mxu1 %v4641_v1 }
 0xacd   : > { %v3218_v52 = vpack.c.bf16 %v6593_v18, %v6590_v17 }
 0xacf   : > { %4374 = vmatprep.mubr.msk.bf16.mxu1 %vm848_vm0, %v3218_v52  ;;  %v6598_v16 = vld [vmem:[#allocation2 + $0x30] sm:$0xff]  ;;  %4381 = vmatpush3.bf16.msra.mxu1 %v4641_v1 }
 0xad0   : > { %v6600_v55 = vld [vmem:[#allocation2 + $0x38] sm:$0xff]  ;;  %4382 = vmatprep.subr.bf16.mxu1 %v4642_v19 }
 0xad1   : > { %v3219_v63 = vpack.c.bf16 %v6600_v55, %v6598_v16 }
 0xad3   : > { %4375 = vmatmul.mubr.msk.bf16.gmra.mrb[80].mxu1 %vm848_vm0, %v3219_v63 }
 0xad4   : > { %4383 = vmatpush3.bf16.msra.mxu1 %v4642_v19 }
 0xad5   : > { %4384 = vmatprep.subr.bf16.mxu1 %v4643_v14 }
 0xad8   : > { %4385 = vmatpush3.bf16.msra.mxu1 %v4643_v14 }
 0xb9d   : > { %v4372_v61 = vpop.f32.mrb[76].mxu1 }
 0xb9e   : > { %v3291_v24 = vadd.f32 %v4372_v61, %v4000_v41  ;;  %v3282_v30 = vpop.f32.mrb[77].mxu1 }
 0xb9f   : > { %v3283_v15 = vadd.f32 %v4000_v41, %v3282_v30  ;;  %v4373_v34 = vpop.f32.mrb[78].mxu1 }
 0xba0   : > { %v3294_v21 = vadd.f32 %v4373_v34, %v4000_v41  ;;  %v3285_v6 = vpop.f32.mrb[79].mxu1  ;;  %v3315_v23 = vmax.f32 %v3291_v24, 0.0 }
 0xba1   : > { %v3286_v42 = vadd.f32 %v4000_v41, %v3285_v6  ;;  %v3313_v37 = vmax.f32 %v3283_v15, 0.0 }
 0xba2   : > { %v3316_v26 = vmax.f32 %v3294_v21, 0.0 }
 0xba3   : > { %v3314_v36 = vmax.f32 %v3286_v42, 0.0 }
 0xba4   : > { %v3322_v38 = vpack.c.bf16 %v3316_v26, %v3315_v23 }
 0xba5   : > { %v3321_v32 = vpack.c.bf16 %v3314_v36, %v3313_v37 }
 0xba6   : > { %v4376_v45 = vpop.f32.mrb[80].mxu1 }
 0xba7   : > { %v3307_v8 = vadd.f32 %v4376_v45, %v4000_v41  ;;  %v3298_v53 = vpop.f32.mrb[81].mxu1  ;;  %4386 = vmatprep.mubr.msk.bf16.mxu1 %vm3365_vm4, %v3321_v32 }
 0xba8   : > { %v3299_v10 = vadd.f32 %v4000_v41, %v3298_v53  ;;  %v4377_v29 = vpop.f32.mrb[82].mxu1  ;;  %4387 = vmatmul.mubr.msk.bf16.vlgmr.msra.gmra.mrb[84].mxu1 %vm3365_vm4, %v3322_v38 }
 0xba9   : > { %v3310_v39 = vadd.f32 %v4377_v29, %v4000_v41  ;;  %v3301_v31 = vpop.f32.mrb[83].mxu1  ;;  %v3319_v46 = vmax.f32 %v3307_v8, 0.0 }
 0xbaa   : > { %v3302_v57 = vadd.f32 %v4000_v41, %v3301_v31  ;;  %v3317_v11 = vmax.f32 %v3299_v10, 0.0 }
 0xbab   : > { %v3320_v56 = vmax.f32 %v3310_v39, 0.0 }
 0xbac   : > { %v3318_v44 = vmax.f32 %v3302_v57, 0.0 }
 0xbad   : > { %v3324_v28 = vpack.c.bf16 %v3320_v56, %v3319_v46 }
 0xbae   : > { %v3323_v54 = vpack.c.bf16 %v3318_v44, %v3317_v11 }
 0xbb0   : > { %4390 = vmatprep.mubr.msk.bf16.mxu1 %vm3365_vm4, %v3323_v54 }
 0xbb1   : > { %4391 = vmatmul.mubr.msk.bf16.gmra.mrb[88].mxu1 %vm3365_vm4, %v3324_v28 }
 0xc7b   : > { %v4388_v59 = vpop.f32.mrb[84].mxu1 }
 0xc7c   : > { %v3445_v47 = vadd.f32 %v4388_v59, %v3327_v58  ;;  %v3412_v48 = vpop.f32.mrb[85].mxu1 }
 0xc7d   : > { %v3443_v62 = vadd.f32 %v3412_v48, %v3325_v20  ;;  %v4389_v4 = vpop.f32.mrb[86].mxu1 }
 0xc7e   : > { %3453 = vst.msk [vmem:[#allocation3 + $0x10] sm:$0xff] %vm848_vm0, %v3445_v47  ;;  %v3446_v49 = vadd.f32 %v4389_v4, %v3328_v27  ;;  %v3415_v0 = vpop.f32.mrb[87].mxu1 }
 0xc7f   : > { %3451 = vst.msk [vmem:[#allocation3] sm:$0xff] %vm848_vm0, %v3443_v62  ;;  %v3444_v7 = vadd.f32 %v3415_v0, %v3326_v9 }
 0xc80   : > { %3454 = vst.msk [vmem:[#allocation3 + $0x18] sm:$0xff] %vm848_vm0, %v3446_v49 }
 0xc81   : > { %3452 = vst.msk [vmem:[#allocation3 + $0x8] sm:$0xff] %vm848_vm0, %v3444_v7 }
 0xc84   : > { %v4392_v5 = vpop.f32.mrb[88].mxu1 }
 0xc85   : > { %v3449_v51 = vadd.f32 %v4392_v5, %v3331_v22  ;;  %v3428_v50 = vpop.f32.mrb[89].mxu1  ;;  %v3472_v60 = vld [vmem:[#allocation3 + $0x10] sm:$0xff] }
 0xc86   : > { %v3447_v33 = vadd.f32 %v3428_v50, %v3329_v40  ;;  %v4393_v1 = vpop.f32.mrb[90].mxu1  ;;  %v3480_v52 = vadd.f32 %v3472_v60, %v6581_v25  ;;  %v3470_v63 = vld [vmem:[#allocation3] sm:$0xff] }
 0xc87   : > { %3457 = vst.msk [vmem:[#allocation3 + $0x30] sm:$0xff] %vm848_vm0, %v3449_v51  ;;  %v3450_v19 = vadd.f32 %v4393_v1, %v3332_v13  ;;  %v3431_v14 = vpop.f32.mrb[91].mxu1  ;;  %v3473_v41 = vld [vmem:[#allocation3 + $0x18] sm:$0xff]  ;;  %v3478_v61 = vadd.f32 %v3470_v63, %v6570_v2 }
 0xc88   : > { %3455 = vst.msk [vmem:[#allocation3 + $0x20] sm:$0xff] %vm848_vm0, %v3447_v33  ;;  %v3448_v24 = vadd.f32 %v3431_v14, %v3330_v43  ;;  %v3495_v30 = vadd.f32 %v4014_v12, %v3480_v52  ;;  %v3481_v15 = vadd.f32 %v3473_v41, %v6583_v35  ;;  %v3471_v34 = vld [vmem:[#allocation3 + $0x8] sm:$0xff] }
 0xc89   : > { %3458 = vst.msk [vmem:[#allocation3 + $0x38] sm:$0xff] %vm848_vm0, %v3450_v19  ;;  %v3479_v21 = vadd.f32 %v3471_v34, %v6572_v3  ;;  %v3493_v42 = vadd.f32 %v4014_v12, %v3478_v61 }
 0xc8a   : > { %3456 = vst.msk [vmem:[#allocation3 + $0x28] sm:$0xff] %vm848_vm0, %v3448_v24  ;;  %v3509_v25 = vsel %vm848_vm0, %v3495_v30, 0.0  ;;  %v3496_v6 = vadd.f32 %v4014_v12, %v3481_v15 }
 0xc8b   : > { %3510 = vadd.xlane.f32.xlu0 %v3509_v25  ;;  %v3494_v23 = vadd.f32 %v4014_v12, %v3479_v21  ;;  %v3503_v26 = vsel %vm848_vm0, %v3493_v42, 0.0 }
 0xc8c   : > { %v3512_v2 = vsel %vm848_vm0, %v3496_v6, 0.0 }
 0xc8d   : > { %3513 = vadd.xlane.f32.xlu1 %v3512_v2  ;;  %v3506_v36 = vsel %vm848_vm0, %v3494_v23, 0.0 }
 0xc8e   : > { %v3476_v37 = vld [vmem:[#allocation3 + $0x30] sm:$0xff] }
 0xc8f   : > { %3504 = vadd.xlane.f32.xlu0 %v3503_v26  ;;  %v3474_v35 = vld [vmem:[#allocation3 + $0x20] sm:$0xff]  ;;  %v3484_v38 = vadd.f32 %v3476_v37, %v6598_v16 }
 0xc90   : > { %v3482_v3 = vadd.f32 %v3474_v35, %v6590_v17  ;;  %v3477_v32 = vld [vmem:[#allocation3 + $0x38] sm:$0xff] }
 0xc91   : > { %3507 = vadd.xlane.f32.xlu1 %v3506_v36  ;;  %v3475_v45 = vld [vmem:[#allocation3 + $0x28] sm:$0xff]  ;;  %v3485_v10 = vadd.f32 %v3477_v32, %v6600_v55  ;;  %v3499_v31 = vadd.f32 %v4014_v12, %v3484_v38 }
 0xc92   : > { %v3497_v8 = vadd.f32 %v4014_v12, %v3482_v3  ;;  %v3483_v53 = vadd.f32 %v3475_v45, %v6593_v18 }
 0xc93   : > { %v3500_v46 = vadd.f32 %v4014_v12, %v3485_v10  ;;  %v3521_v17 = vsel %vm848_vm0, %v3499_v31, 0.0 }
 0xc94   : > { %v3515_v29 = vsel %vm848_vm0, %v3497_v8, 0.0  ;;  %v3498_v39 = vadd.f32 %v4014_v12, %v3483_v53 }
 0xc95   : > { %3516 = vadd.xlane.f32.xlu0 %v3515_v29  ;;  %v3524_v16 = vsel %vm848_vm0, %v3500_v46, 0.0 }
 0xc96   : > { %v3518_v57 = vsel %vm848_vm0, %v3498_v39, 0.0 }
 0xc97   : > { %3519 = vadd.xlane.f32.xlu1 %v3518_v57 }
 0xc99   : > { %3522 = vadd.xlane.f32.xlu0 %v3521_v17 }
 0xc9b   : > { %3525 = vadd.xlane.f32.xlu1 %v3524_v16 }
 0xd18   : > { %v3511_v56 = vpop.xlane.xlu0 %3510 }
 0xd19   : > { %v3530_v11 = vmul.f32 0.0625, %v3511_v56 }
 0xd1a   : > { %v3514_v18 = vpop.xlane.xlu1 %3513 }
 0xd1b   : > { %v6633_v44 = vsub.f32 %v3495_v30, %v3530_v11  ;;  %v3531_v55 = vmul.f32 0.0625, %v3514_v18  ;;  %v4016_v11 = vld [vmem:[#allocation30] ss:$0 sm:$0xff] }
 0xd1c   : > { %v3505_v28 = vpop.xlane.xlu0 %3504 }
 0xd1d   : > { %v6635_v54 = vsub.f32 %v3496_v6, %v3531_v55  ;;  %v3528_v58 = vmul.f32 0.0625, %v3505_v28  ;;  %v3546_v20 = vmul.f32 %v6633_v44, %v6633_v44 }
 0xd1e   : > { %v3508_v59 = vpop.xlane.xlu1 %3507 }
 0xd1f   : > { %v6639_v27 = vsub.f32 %v3493_v42, %v3528_v58  ;;  %v3529_v47 = vmul.f32 0.0625, %v3508_v59  ;;  %v3558_v48 = vsel %vm848_vm0, %v3546_v20, 0.0  ;;  %v3547_v9 = vmul.f32 %v6635_v54, %v6635_v54 }
 0xd20   : > { %3559 = vadd.xlane.f32.xlu0 %v3558_v48 }
 0xd21   : > { %v6644_v62 = vsub.f32 %v3494_v23, %v3529_v47  ;;  %v3561_v4 = vsel %vm848_vm0, %v3547_v9, 0.0  ;;  %v3544_v49 = vmul.f32 %v6639_v27, %v6639_v27 }
 0xd22   : > { %v3517_v0 = vpop.xlane.xlu0 %3516  ;;  %3562 = vadd.xlane.f32.xlu1 %v3561_v4 }
 0xd23   : > { %v3532_v7 = vmul.f32 0.0625, %v3517_v0  ;;  %v3552_v22 = vsel %vm848_vm0, %v3544_v49, 0.0  ;;  %v3545_v40 = vmul.f32 %v6644_v62, %v6644_v62 }
 0xd24   : > { %v3520_v5 = vpop.xlane.xlu1 %3519  ;;  %3553 = vadd.xlane.f32.xlu0 %v3552_v22 }
 0xd25   : > { %v6652_v13 = vsub.f32 %v3497_v8, %v3532_v7  ;;  %v3533_v51 = vmul.f32 0.0625, %v3520_v5  ;;  %v3555_v50 = vsel %vm848_vm0, %v3545_v40, 0.0 }
 0xd26   : > { %v3523_v43 = vpop.xlane.xlu0 %3522  ;;  %3556 = vadd.xlane.f32.xlu1 %v3555_v50 }
 0xd27   : > { %v6655_v60 = vsub.f32 %v3498_v39, %v3533_v51  ;;  %v3534_v12 = vmul.f32 0.0625, %v3523_v43  ;;  %v3548_v33 = vmul.f32 %v6652_v13, %v6652_v13 }
 0xd28   : > { %v3526_v1 = vpop.xlane.xlu1 %3525 }
 0xd29   : > { %v6659_v52 = vsub.f32 %v3499_v31, %v3534_v12  ;;  %v3535_v63 = vmul.f32 0.0625, %v3526_v1  ;;  %v3564_v19 = vsel %vm848_vm0, %v3548_v33, 0.0  ;;  %v3549_v14 = vmul.f32 %v6655_v60, %v6655_v60  ;;  %v4015_v31 = vld [vmem:[#allocation28] ss:$0 sm:$0xff] }
 0xd2a   : > { %3565 = vadd.xlane.f32.xlu0 %v3564_v19 }
 0xd2b   : > { %v6664_v41 = vsub.f32 %v3500_v46, %v3535_v63  ;;  %v3567_v61 = vsel %vm848_vm0, %v3549_v14, 0.0  ;;  %v3550_v24 = vmul.f32 %v6659_v52, %v6659_v52 }
 0xd2c   : > { %3568 = vadd.xlane.f32.xlu1 %v3567_v61 }
 0xd2d   : > { %v3570_v30 = vsel %vm848_vm0, %v3550_v24, 0.0  ;;  %v3551_v15 = vmul.f32 %v6664_v41, %v6664_v41 }
 0xd2e   : > { %3571 = vadd.xlane.f32.xlu0 %v3570_v30 }
 0xd2f   : > { %v3573_v34 = vsel %vm848_vm0, %v3551_v15, 0.0 }
 0xd30   : > { %3574 = vadd.xlane.f32.xlu1 %v3573_v34 }
 0xdad   : > { %v3560_v21 = vpop.xlane.xlu0 %3559 }
 0xdae   : > { %v3578_v25 = vmul.f32 0.0625, %v3560_v21 }
 0xdaf   : > { %v3563_v6 = vpop.xlane.xlu1 %3562 }
 0xdb0   : > { %v3586_v42 = vadd.f32 1e-05, %v3578_v25  ;;  %v3579_v2 = vmul.f32 0.0625, %v3563_v6 }
 0xdb1   : > { %v3554_v23 = vpop.xlane.xlu0 %3553 }
 0xdb2   : > { %4724 = vrsqrt.f32 %v3586_v42  ;;  %v3587_v26 = vadd.f32 1e-05, %v3579_v2  ;;  %v3576_v37 = vmul.f32 0.0625, %v3554_v23 }
 0xdb3   : > { %v3557_v35 = vpop.xlane.xlu1 %3556 }
 0xdb4   : > { %4726 = vrsqrt.f32 %v3587_v26  ;;  %v3584_v36 = vadd.f32 1e-05, %v3576_v37  ;;  %v3577_v3 = vmul.f32 0.0625, %v3557_v35 }
 0xdb6   : > { %4728 = vrsqrt.f32 %v3584_v36  ;;  %v3585_v38 = vadd.f32 1e-05, %v3577_v3 }
 0xdb7   : > { %v3566_v32 = vpop.xlane.xlu0 %3565 }
 0xdb8   : > { %4730 = vrsqrt.f32 %v3585_v38  ;;  %v3580_v45 = vmul.f32 0.0625, %v3566_v32 }
 0xdb9   : > { %v3569_v8 = vpop.xlane.xlu1 %3568 }
 0xdba   : > { %v3588_v53 = vadd.f32 1e-05, %v3580_v45  ;;  %v3581_v10 = vmul.f32 0.0625, %v3569_v8 }
 0xdbb   : > { %v3572_v29 = vpop.xlane.xlu0 %3571 }
 0xdbc   : > { %v4725_v39 = vpop.eup %4724  ;;  %4732 = vrsqrt.f32 %v3588_v53  ;;  %v3589_v57 = vadd.f32 1e-05, %v3581_v10  ;;  %v3582_v46 = vmul.f32 0.0625, %v3572_v29 }
 0xdbd   : > { %v3602_v17 = vmul.f32 %v4725_v39, %v6633_v44  ;;  %v3575_v16 = vpop.xlane.xlu1 %3574 }
 0xdbe   : > { %v4727_v56 = vpop.eup %4726  ;;  %4734 = vrsqrt.f32 %v3589_v57  ;;  %v3590_v18 = vadd.f32 1e-05, %v3582_v46  ;;  %v3583_v55 = vmul.f32 0.0625, %v3575_v16 }
 0xdbf   : > { %v3616_v28 = vmul.f32 %v4015_v31, %v3602_v17  ;;  %v3603_v58 = vmul.f32 %v4727_v56, %v6635_v54 }
 0xdc0   : > { %v4729_v20 = vpop.eup %4728  ;;  %4736 = vrsqrt.f32 %v3590_v18  ;;  %v3591_v59 = vadd.f32 1e-05, %v3583_v55 }
 0xdc1   : > { %v3630_v47 = vadd.f32 %v4016_v11, %v3616_v28  ;;  %v3617_v48 = vmul.f32 %v4015_v31, %v3603_v58  ;;  %v3600_v9 = vmul.f32 %v4729_v20, %v6639_v27 }
 0xdc2   : > { %v4731_v4 = vpop.eup %4730  ;;  %4738 = vrsqrt.f32 %v3591_v59 }
 0xdc3   : > { %3638 = vst.msk [vmem:[%s6678_s0 + $0x10] sm:$0xff] %vm848_vm0, %v3630_v47  ;;  %v3631_v44 = vadd.f32 %v4016_v11, %v3617_v48  ;;  %v3614_v54 = vmul.f32 %v4015_v31, %v3600_v9  ;;  %v3601_v49 = vmul.f32 %v4731_v4, %v6644_v62 }
 0xdc5   : > { %3639 = vst.msk [vmem:[%s6678_s0 + $0x18] sm:$0xff] %vm848_vm0, %v3631_v44  ;;  %v3628_v0 = vadd.f32 %v4016_v11, %v3614_v54  ;;  %v3615_v27 = vmul.f32 %v4015_v31, %v3601_v49 }
 0xdc6   : > { %v4733_v7 = vpop.eup %4732 }
 0xdc7   : > { %3636 = vst.msk [vmem:[%s6678_s0] sm:$0xff] %vm848_vm0, %v3628_v0  ;;  %v3629_v22 = vadd.f32 %v4016_v11, %v3615_v27  ;;  %v3604_v40 = vmul.f32 %v4733_v7, %v6652_v13 }
 0xdc8   : > { %v4735_v5 = vpop.eup %4734 }
 0xdc9   : > { %3637 = vst.msk [vmem:[%s6678_s0 + $0x8] sm:$0xff] %vm848_vm0, %v3629_v22  ;;  %v3618_v51 = vmul.f32 %v4015_v31, %v3604_v40  ;;  %v3605_v62 = vmul.f32 %v4735_v5, %v6655_v60 }
 0xdca   : > { %v4737_v50 = vpop.eup %4736 }
 0xdcb   : > { %v3632_v43 = vadd.f32 %v4016_v11, %v3618_v51  ;;  %v3619_v12 = vmul.f32 %v4015_v31, %v3605_v62  ;;  %v3606_v33 = vmul.f32 %v4737_v50, %v6659_v52 }
 0xdcc   : > { %v4739_v1 = vpop.eup %4738 }
 0xdcd   : > { %3640 = vst.msk [vmem:[%s6678_s0 + $0x20] sm:$0xff] %vm848_vm0, %v3632_v43  ;;  %v3633_v63 = vadd.f32 %v4016_v11, %v3619_v12  ;;  %v3620_v13 = vmul.f32 %v4015_v31, %v3606_v33  ;;  %v3607_v19 = vmul.f32 %v4739_v1, %v6664_v41 }
 0xdcf   : > { %3641 = vst.msk [vmem:[%s6678_s0 + $0x28] sm:$0xff] %vm848_vm0, %v3633_v63  ;;  %v3634_v60 = vadd.f32 %v4016_v11, %v3620_v13  ;;  %v3621_v14 = vmul.f32 %v4015_v31, %v3607_v19 }
 0xdd1   : > { %3642 = vst.msk [vmem:[%s6678_s0 + $0x30] sm:$0xff] %vm848_vm0, %v3634_v60  ;;  %v3635_v52 = vadd.f32 %v4016_v11, %v3621_v14 }
 0xdd3   : > { %3643 = vst.msk [vmem:[%s6678_s0 + $0x38] sm:$0xff] %vm848_vm0, %v3635_v52 }
 0xdd4   : > { %5239 = shalt.err (!%p5236_p8)
}
 0xdd5   : > { %s5240_s0 = scalar_lea.hbm %s6702_s1, 1024  ;;  %s5244_s18 = scalar_lea.hbm %s6840_s30, 2048 }
 0xdd6   : > { %p5241_p3 = scmp.ne.s32.totalorder %s6702_s1, %s5240_s0  ;;  %p5245_p13 = scmp.lt.u32.totalorder %s6702_s1, %s6840_s30 }
 0xdd7   : > { %p5246_p1 = scmp.lt.u32.totalorder %s5244_s18, %s5240_s0  ;;  %p5248_p2 = scmp.lt.u32.totalorder %s5240_s0, %s6702_s1 }
 0xdd8   : > { %p5242_p11 = pnand %p5241_p3, %p6841_p9 }
 0xdd9   : > { %p5247_p4 = por %p5246_p1, %p5245_p13 }
 0xdda   : > { %p5243_p6 = pneg %p5242_p11 }
 0xddb   : > { %p5249_p10 = por %p5248_p2, %p5247_p4 }
 0xddd   : > { %p5250_p12 = pnand %p5249_p10, %p5243_p6 }
 0xddf   : > { %5253 = shalt.err (!%p5250_p12)
}
 0xde0   : > { %s5367_s23 = smov 128   ;;  %s5368_s4 = smov 8  }
 0xde1   : > { %4470 = dma.vmem_to_hbm [thread:$0]  (%p6841_p9), %s6704_s24, 1024, %s6702_s1, %s3645_s28, %s5367_s23, %s5367_s23, %s5368_s4  }
 0xde2 PF: > { %s6842_s3 = sld [smem:[#allocation42_spill]]  ;;  %s6843_s20 = sld [smem:[#allocation47_spill]] }
 0xde3   : > { %p6844_p0 = scmp.ne.s32.totalorder %s6831_s25, 0 }
 0xde8   : > { %s3673_s29 = sand.u32 1, %s6842_s3   ;;  %p6845_p7 = scmp.ge.s32.totalorder %s6843_s20, 2 }
 0xde9   : > { %s3674_s0 = scalar_lea.sflag [#allocation6], %s3673_s29 }
 0xdea   : > { %p4526_p5 = pnand %p6845_p7, %p6844_p0 }
 0xdec   : > { %5315 = dma.done.wait (!%p4526_p5), %s3674_s0, 1024  }
 0xded   : > { %5317 = vsyncadd (!%p4526_p5), %s3674_s0, 4294966272  ;;  %s41_s29 = sadd.s32 1, %s6843_s20   ;;  %s6846_s24 = sld [smem:[#allocation43_spill]] }
 0xdee   : > { %p38_p8 = scmp.ge.s32.totalorder %s41_s29, 4   ;;  %s6847_s25 = sld [smem:[#allocation44_spill]] }
 0xdef   : > { %s6848_s27 = sld [smem:[#allocation46_spill]]  ;;  %s6849_s26 = smov %s5869_s17 }
 0xdf0   : > { %s6850_s28 = smov %s6852_s19  ;;  %40 = sbr.rel (!%p38_p8) target bundleno = 22 (0x16), region = 208 }
 0xdf7   :  { %3679 = vsyncpa [#allocation5], 1 }
 0xdf8   :  { %3681 = vsyncpa [#allocation5 + $0x1], 1 }
 0xdf9   :  { %3682 = vsyncpa [#allocation8], 1 }
 0xdfa   :  { %3683 = vsyncpa [#allocation11], 1 }
 0xdfb   :  { %3684 = vsyncpa [#allocation14], 1 }
 0xdfc   :  { %3685 = vsyncpa [#allocation17], 1 }
 0xdfd   :  { %3686 = vsyncpa [#allocation20], 1 }
 0xdfe   :  { %3687 = vsyncpa [#allocation23], 1 }
 0xdff   :  { %3688 = vsyncpa [#allocation26], 1 }
 0xe00   :  { %3689 = vsyncpa [#allocation29], 1 }
 0xe01   :  { %3690 = vsyncpa [#allocation6], 1 }
 0xe02   :  { %3692 = vsyncpa [#allocation6 + $0x1], 1 }

</bundles_post_ra>
